<compile_context>
chip_gen: v5e
topology: v5e:2x2
jax: 0.10.0
libtpu: 0.0.40
codegen_flags: <defaults>
</compile_context>

<pallas_src>
import functools

import jax
import jax.numpy as jnp
from jax import lax
from jax.experimental import pallas as pl
from jax.experimental.pallas import tpu as pltpu

EPS = 1e-5


def _basic_block_kernel(xpad_ref, mask_ref, w1_ref, w2_ref,
                        g1_ref, b1_ref, g2_ref, b2_ref, out_ref,
                        *, wp, nhw):
    # xpad_ref : (Np, Cin) f32   zero-padded input, flattened over N*(H+2)*(W+2)
    # mask_ref : (Np, 1)   f32   1.0 on interior (real output) rows, 0.0 on halo
    # w1_ref   : (9, Cin,  Cout) bf16   conv1 weights, offset-major (dy*3+dx)
    # w2_ref   : (9, Cout, Cout) bf16   conv2 weights
    # g*/b*    : (1, Cout) f32          BN gamma / beta
    # out_ref  : (Np, Cout) f32         padded output (halo rows are garbage)
    np_rows, _ = xpad_ref.shape
    cout = w1_ref.shape[-1]

    mask = mask_ref[...]                          # (Np, 1)
    x_f32 = xpad_ref[...]                         # (Np, Cin) — also the residual
    x_bf = x_f32.astype(jnp.bfloat16)
    inv_nhw = 1.0 / float(nhw)

    def conv3x3(inp_bf, w_ref):
        # "same" 3x3 conv: 9 full-slab bf16 matmuls; the (dy,dx) spatial shift
        # becomes a static sublane roll of the f32 partial product.  Zero
        # padding in the slab makes boundary contributions vanish naturally.
        acc = jnp.zeros((np_rows, cout), jnp.float32)
        for dy in range(3):
            for dx in range(3):
                k = dy * 3 + dx
                s = (dy - 1) * wp + (dx - 1)      # flat-row offset of the tap
                part = jnp.dot(inp_bf, w_ref[k],
                               preferred_element_type=jnp.float32)
                if s != 0:
                    part = pltpu.roll(part, shift=(-s) % np_rows, axis=0)
                acc = acc + part
        return acc                                 # (Np, Cout)

    def bn_scale_bias(z, g_ref, b_ref):
        # Single-pass training-mode BN stats over the NHW interior rows
        # (halo rows are masked to zero so they do not contribute).
        zm = z * mask
        s1 = jnp.sum(zm, axis=0, keepdims=True)
        s2 = jnp.sum(zm * zm, axis=0, keepdims=True)
        mean = s1 * inv_nhw
        var = s2 * inv_nhw - mean * mean           # biased variance
        scale = lax.rsqrt(var + EPS) * g_ref[...]
        bias = b_ref[...] - mean * scale
        return scale, bias                         # each (1, Cout)

    # ---- conv1 -> bn1 -> relu; re-zero halo so it is conv2's zero padding ---
    z1 = conv3x3(x_bf, w1_ref)
    sc1, bi1 = bn_scale_bias(z1, g1_ref, b1_ref)
    y1 = jnp.maximum(z1 * sc1 + bi1, 0.0) * mask

    # ---- conv2 -> bn2 -> residual add (reuse x_f32) -> relu -----------------
    z2 = conv3x3(y1.astype(jnp.bfloat16), w2_ref)
    sc2, bi2 = bn_scale_bias(z2, g2_ref, b2_ref)
    out_ref[...] = jnp.maximum(z2 * sc2 + bi2 + x_f32, 0.0)


def basic_block_forward(x_nchw, params):
    """x_nchw: (N, C, H, W) float32. Returns (N, C, H, W) float32."""
    N, Cin, H, W = x_nchw.shape
    Cout = params["conv1_w"].shape[0]
    Hp, Wp = H + 2, W + 2
    Np = N * Hp * Wp
    NHW = N * H * W

    # Glue (XLA side): NCHW -> NHWC, zero-pad spatial dims, flatten rows so the
    # kernel sees a contiguous (Np, C) lane-dense slab (no in-kernel reshapes).
    x_nhwc = jnp.transpose(x_nchw, (0, 2, 3, 1))
    xpad = jnp.pad(x_nhwc, ((0, 0), (1, 1), (1, 1), (0, 0))).reshape(Np, Cin)

    # OIHW -> (dy*3+dx, I, O), bf16 for the MXU (f32 accumulation in-kernel).
    w1 = jnp.transpose(params["conv1_w"], (2, 3, 1, 0)).reshape(9, Cin, Cout)
    w2 = jnp.transpose(params["conv2_w"], (2, 3, 1, 0)).reshape(9, Cout, Cout)
    w1 = w1.astype(jnp.bfloat16)
    w2 = w2.astype(jnp.bfloat16)
    g1 = params["bn1_g"].reshape(1, Cout)
    b1 = params["bn1_b"].reshape(1, Cout)
    g2 = params["bn2_g"].reshape(1, Cout)
    b2 = params["bn2_b"].reshape(1, Cout)

    # Interior mask over the flattened padded rows (1 on real output pixels).
    idx = jnp.arange(Np, dtype=jnp.int32)
    rem = idx % (Hp * Wp)
    py = rem // Wp
    px = rem % Wp
    interior = (py >= 1) & (py <= H) & (px >= 1) & (px <= W)
    mask = interior.astype(jnp.float32).reshape(Np, 1)

    kernel = functools.partial(_basic_block_kernel, wp=Wp, nhw=NHW)

    flops = 2 * (2 * Np * Cin * Cout * 9)          # two 3x3 convs (padded rows)
    bytes_accessed = (xpad.size * 4 + mask.size * 4 + w1.size * 2 +
                      w2.size * 2 + 4 * Cout * 4 + Np * Cout * 4)

    vmem_spec = pl.BlockSpec(memory_space=pltpu.MemorySpace.VMEM)
    out_pad = pl.pallas_call(
        kernel,
        out_shape=jax.ShapeDtypeStruct((Np, Cout), jnp.float32),
        in_specs=[vmem_spec] * 8,
        out_specs=vmem_spec,
        cost_estimate=pl.CostEstimate(flops=flops, transcendentals=0,
                                      bytes_accessed=bytes_accessed),
    )(xpad, mask, w1, w2, g1, b1, g2, b2)

    # Drop the halo rows and go back to NCHW (fuses with the transpose in XLA).
    out_nhwc = out_pad.reshape(N, Hp, Wp, Cout)[:, 1:H + 1, 1:W + 1, :]
    return jnp.transpose(out_nhwc, (0, 3, 1, 2))


def _reference(x, p):
    """Pure-JAX f32 reference (conv_general_dilated + training-mode BN)."""
    def bn(y, g, b):
        mean = y.mean(axis=(0, 2, 3), keepdims=True)
        var = ((y - mean) ** 2).mean(axis=(0, 2, 3), keepdims=True)
        return (y - mean) / jnp.sqrt(var + EPS) * g[None, :, None, None] \
               + b[None, :, None, None]

    conv = lambda z, w: lax.conv_general_dilated(
        z, w, (1, 1), "SAME", dimension_numbers=("NCHW", "OIHW", "NCHW"))

    out = conv(x, p["conv1_w"])
    out = jnp.maximum(bn(out, p["bn1_g"], p["bn1_b"]), 0.0)
    out = conv(out, p["conv2_w"])
    out = bn(out, p["bn2_g"], p["bn2_b"])
    return jnp.maximum(out + x, 0.0)


if __name__ == "__main__":
    # stride=1, downsample=None => inplanes == planes. C=128 keeps the channel
    # (lane) axis fully dense; N*(H+2)*(W+2)=200 rows is a multiple of 8.
    N, C, H, W = 2, 128, 8, 8

    key = jax.random.PRNGKey(0)
    k_x, k_w1, k_w2, k_g1, k_b1, k_g2, k_b2 = jax.random.split(key, 7)

    x = jax.random.normal(k_x, (N, C, H, W), jnp.float32)
    params = {
        "conv1_w": 0.05 * jax.random.normal(k_w1, (C, C, 3, 3), jnp.float32),
        "conv2_w": 0.05 * jax.random.normal(k_w2, (C, C, 3, 3), jnp.float32),
        "bn1_g": 1.0 + 0.1 * jax.random.normal(k_g1, (C,), jnp.float32),
        "bn1_b": 0.1 * jax.random.normal(k_b1, (C,), jnp.float32),
        "bn2_g": 1.0 + 0.1 * jax.random.normal(k_g2, (C,), jnp.float32),
        "bn2_b": 0.1 * jax.random.normal(k_b2, (C,), jnp.float32),
    }

    out = basic_block_forward(x, params)
    out = jax.block_until_ready(out)

    ref = jax.block_until_ready(_reference(x, params))
    assert out.shape == (N, C, H, W)
    # Tolerance accounts for bf16 MXU operands with f32 accumulation (the
    # review-recommended trade-off); with f32 operands agreement is <= 2e-3.
    assert jnp.allclose(out, ref, atol=3e-2, rtol=3e-2), \
        f"max abs err {jnp.max(jnp.abs(out - ref))}"

    print("KERNEL_OK")
</pallas_src>

<mosaic_0001>
module attributes {stable_mosaic.version = 11 : i64} {
  func.func @_basic_block_kernel(%arg0: memref<200x128xf32, #tpu.memory_space<vmem>>, %arg1: memref<200x1xf32, #tpu.memory_space<vmem>>, %arg2: memref<9x128x128xbf16, #tpu.memory_space<vmem>>, %arg3: memref<9x128x128xbf16, #tpu.memory_space<vmem>>, %arg4: memref<1x128xf32, #tpu.memory_space<vmem>>, %arg5: memref<1x128xf32, #tpu.memory_space<vmem>>, %arg6: memref<1x128xf32, #tpu.memory_space<vmem>>, %arg7: memref<1x128xf32, #tpu.memory_space<vmem>>, %arg8: memref<200x128xf32, #tpu.memory_space<vmem>>) attributes {dimension_semantics = [], scalar_prefetch = 0 : i64, scratch_operands = 0 : i64, tpu.core_type = #tpu.core_type<tc>} {
    %c0 = arith.constant 0 : index
    %c0_0 = arith.constant 0 : index
    %0 = vector.load %arg1[%c0, %c0_0] : memref<200x1xf32, #tpu.memory_space<vmem>>, vector<200x1xf32>
    %c0_1 = arith.constant 0 : index
    %c0_2 = arith.constant 0 : index
    %1 = vector.load %arg0[%c0_1, %c0_2] : memref<200x128xf32, #tpu.memory_space<vmem>>, vector<200x128xf32>
    %2 = arith.truncf %1 : vector<200x128xf32> to vector<200x128xbf16>
    %cst = arith.constant 0.000000e+00 : f32
    %3 = vector.broadcast %cst : f32 to vector<200x128xf32>
    %c0_3 = arith.constant 0 : index
    %c0_4 = arith.constant 0 : index
    %c0_5 = arith.constant 0 : index
    %4 = vector.load %arg2[%c0_3, %c0_4, %c0_5] : memref<9x128x128xbf16, #tpu.memory_space<vmem>>, vector<1x128x128xbf16>
    %5 = vector.shape_cast %4 : vector<1x128x128xbf16> to vector<128x128xbf16>
    %cst_6 = arith.constant dense<0.000000e+00> : vector<200x128xf32>
    %6 = tpu.matmul %2, %5, %cst_6 {dimension_numbers = #tpu.dot_dimension_numbers<[1], [0], [0], [1], [0, 0, 1, 1], [], []>} : vector<200x128xbf16>, vector<128x128xbf16>, vector<200x128xf32> -> vector<200x128xf32>
    %c11_i32 = arith.constant 11 : i32
    %7 = tpu.dynamic_rotate %6 by %c11_i32 dim 0 : vector<200x128xf32>, i32 -> vector<200x128xf32>
    %8 = arith.addf %3, %7 : vector<200x128xf32>
    %c1 = arith.constant 1 : index
    %c0_7 = arith.constant 0 : index
    %c0_8 = arith.constant 0 : index
    %9 = vector.load %arg2[%c1, %c0_7, %c0_8] : memref<9x128x128xbf16, #tpu.memory_space<vmem>>, vector<1x128x128xbf16>
    %10 = vector.shape_cast %9 : vector<1x128x128xbf16> to vector<128x128xbf16>
    %cst_9 = arith.constant dense<0.000000e+00> : vector<200x128xf32>
    %11 = tpu.matmul %2, %10, %cst_9 {dimension_numbers = #tpu.dot_dimension_numbers<[1], [0], [0], [1], [0, 0, 1, 1], [], []>} : vector<200x128xbf16>, vector<128x128xbf16>, vector<200x128xf32> -> vector<200x128xf32>
    %c10_i32 = arith.constant 10 : i32
    %12 = tpu.dynamic_rotate %11 by %c10_i32 dim 0 : vector<200x128xf32>, i32 -> vector<200x128xf32>
    %13 = arith.addf %8, %12 : vector<200x128xf32>
    %c2 = arith.constant 2 : index
    %c0_10 = arith.constant 0 : index
    %c0_11 = arith.constant 0 : index
    %14 = vector.load %arg2[%c2, %c0_10, %c0_11] : memref<9x128x128xbf16, #tpu.memory_space<vmem>>, vector<1x128x128xbf16>
    %15 = vector.shape_cast %14 : vector<1x128x128xbf16> to vector<128x128xbf16>
    %cst_12 = arith.constant dense<0.000000e+00> : vector<200x128xf32>
    %16 = tpu.matmul %2, %15, %cst_12 {dimension_numbers = #tpu.dot_dimension_numbers<[1], [0], [0], [1], [0, 0, 1, 1], [], []>} : vector<200x128xbf16>, vector<128x128xbf16>, vector<200x128xf32> -> vector<200x128xf32>
    %c9_i32 = arith.constant 9 : i32
    %17 = tpu.dynamic_rotate %16 by %c9_i32 dim 0 : vector<200x128xf32>, i32 -> vector<200x128xf32>
    %18 = arith.addf %13, %17 : vector<200x128xf32>
    %c3 = arith.constant 3 : index
    %c0_13 = arith.constant 0 : index
    %c0_14 = arith.constant 0 : index
    %19 = vector.load %arg2[%c3, %c0_13, %c0_14] : memref<9x128x128xbf16, #tpu.memory_space<vmem>>, vector<1x128x128xbf16>
    %20 = vector.shape_cast %19 : vector<1x128x128xbf16> to vector<128x128xbf16>
    %cst_15 = arith.constant dense<0.000000e+00> : vector<200x128xf32>
    %21 = tpu.matmul %2, %20, %cst_15 {dimension_numbers = #tpu.dot_dimension_numbers<[1], [0], [0], [1], [0, 0, 1, 1], [], []>} : vector<200x128xbf16>, vector<128x128xbf16>, vector<200x128xf32> -> vector<200x128xf32>
    %c1_i32 = arith.constant 1 : i32
    %22 = tpu.dynamic_rotate %21 by %c1_i32 dim 0 : vector<200x128xf32>, i32 -> vector<200x128xf32>
    %23 = arith.addf %18, %22 : vector<200x128xf32>
    %c4 = arith.constant 4 : index
    %c0_16 = arith.constant 0 : index
    %c0_17 = arith.constant 0 : index
    %24 = vector.load %arg2[%c4, %c0_16, %c0_17] : memref<9x128x128xbf16, #tpu.memory_space<vmem>>, vector<1x128x128xbf16>
    %25 = vector.shape_cast %24 : vector<1x128x128xbf16> to vector<128x128xbf16>
    %cst_18 = arith.constant dense<0.000000e+00> : vector<200x128xf32>
    %26 = tpu.matmul %2, %25, %cst_18 {dimension_numbers = #tpu.dot_dimension_numbers<[1], [0], [0], [1], [0, 0, 1, 1], [], []>} : vector<200x128xbf16>, vector<128x128xbf16>, vector<200x128xf32> -> vector<200x128xf32>
    %27 = arith.addf %23, %26 : vector<200x128xf32>
    %c5 = arith.constant 5 : index
    %c0_19 = arith.constant 0 : index
    %c0_20 = arith.constant 0 : index
    %28 = vector.load %arg2[%c5, %c0_19, %c0_20] : memref<9x128x128xbf16, #tpu.memory_space<vmem>>, vector<1x128x128xbf16>
    %29 = vector.shape_cast %28 : vector<1x128x128xbf16> to vector<128x128xbf16>
    %cst_21 = arith.constant dense<0.000000e+00> : vector<200x128xf32>
    %30 = tpu.matmul %2, %29, %cst_21 {dimension_numbers = #tpu.dot_dimension_numbers<[1], [0], [0], [1], [0, 0, 1, 1], [], []>} : vector<200x128xbf16>, vector<128x128xbf16>, vector<200x128xf32> -> vector<200x128xf32>
    %c199_i32 = arith.constant 199 : i32
    %31 = tpu.dynamic_rotate %30 by %c199_i32 dim 0 : vector<200x128xf32>, i32 -> vector<200x128xf32>
    %32 = arith.addf %27, %31 : vector<200x128xf32>
    %c6 = arith.constant 6 : index
    %c0_22 = arith.constant 0 : index
    %c0_23 = arith.constant 0 : index
    %33 = vector.load %arg2[%c6, %c0_22, %c0_23] : memref<9x128x128xbf16, #tpu.memory_space<vmem>>, vector<1x128x128xbf16>
    %34 = vector.shape_cast %33 : vector<1x128x128xbf16> to vector<128x128xbf16>
    %cst_24 = arith.constant dense<0.000000e+00> : vector<200x128xf32>
    %35 = tpu.matmul %2, %34, %cst_24 {dimension_numbers = #tpu.dot_dimension_numbers<[1], [0], [0], [1], [0, 0, 1, 1], [], []>} : vector<200x128xbf16>, vector<128x128xbf16>, vector<200x128xf32> -> vector<200x128xf32>
    %c191_i32 = arith.constant 191 : i32
    %36 = tpu.dynamic_rotate %35 by %c191_i32 dim 0 : vector<200x128xf32>, i32 -> vector<200x128xf32>
    %37 = arith.addf %32, %36 : vector<200x128xf32>
    %c7 = arith.constant 7 : index
    %c0_25 = arith.constant 0 : index
    %c0_26 = arith.constant 0 : index
    %38 = vector.load %arg2[%c7, %c0_25, %c0_26] : memref<9x128x128xbf16, #tpu.memory_space<vmem>>, vector<1x128x128xbf16>
    %39 = vector.shape_cast %38 : vector<1x128x128xbf16> to vector<128x128xbf16>
    %cst_27 = arith.constant dense<0.000000e+00> : vector<200x128xf32>
    %40 = tpu.matmul %2, %39, %cst_27 {dimension_numbers = #tpu.dot_dimension_numbers<[1], [0], [0], [1], [0, 0, 1, 1], [], []>} : vector<200x128xbf16>, vector<128x128xbf16>, vector<200x128xf32> -> vector<200x128xf32>
    %c190_i32 = arith.constant 190 : i32
    %41 = tpu.dynamic_rotate %40 by %c190_i32 dim 0 : vector<200x128xf32>, i32 -> vector<200x128xf32>
    %42 = arith.addf %37, %41 : vector<200x128xf32>
    %c8 = arith.constant 8 : index
    %c0_28 = arith.constant 0 : index
    %c0_29 = arith.constant 0 : index
    %43 = vector.load %arg2[%c8, %c0_28, %c0_29] : memref<9x128x128xbf16, #tpu.memory_space<vmem>>, vector<1x128x128xbf16>
    %44 = vector.shape_cast %43 : vector<1x128x128xbf16> to vector<128x128xbf16>
    %cst_30 = arith.constant dense<0.000000e+00> : vector<200x128xf32>
    %45 = tpu.matmul %2, %44, %cst_30 {dimension_numbers = #tpu.dot_dimension_numbers<[1], [0], [0], [1], [0, 0, 1, 1], [], []>} : vector<200x128xbf16>, vector<128x128xbf16>, vector<200x128xf32> -> vector<200x128xf32>
    %c189_i32 = arith.constant 189 : i32
    %46 = tpu.dynamic_rotate %45 by %c189_i32 dim 0 : vector<200x128xf32>, i32 -> vector<200x128xf32>
    %47 = arith.addf %42, %46 : vector<200x128xf32>
    %48 = vector.broadcast %0 : vector<200x1xf32> to vector<200x128xf32>
    %49 = arith.mulf %47, %48 : vector<200x128xf32>
    %cst_31 = arith.constant dense<0.000000e+00> : vector<128xf32>
    %50 = vector.multi_reduction <add>, %49, %cst_31 [0] : vector<200x128xf32> to vector<128xf32>
    %51 = vector.shape_cast %50 : vector<128xf32> to vector<1x128xf32>
    %52 = arith.mulf %49, %49 : vector<200x128xf32>
    %cst_32 = arith.constant dense<0.000000e+00> : vector<128xf32>
    %53 = vector.multi_reduction <add>, %52, %cst_32 [0] : vector<200x128xf32> to vector<128xf32>
    %54 = vector.shape_cast %53 : vector<128xf32> to vector<1x128xf32>
    %cst_33 = arith.constant 7.812500e-03 : f32
    %55 = vector.broadcast %cst_33 : f32 to vector<1x128xf32>
    %56 = arith.mulf %51, %55 : vector<1x128xf32>
    %cst_34 = arith.constant 7.812500e-03 : f32
    %57 = vector.broadcast %cst_34 : f32 to vector<1x128xf32>
    %58 = arith.mulf %54, %57 : vector<1x128xf32>
    %59 = arith.mulf %56, %56 : vector<1x128xf32>
    %60 = arith.subf %58, %59 : vector<1x128xf32>
    %cst_35 = arith.constant 9.99999974E-6 : f32
    %61 = vector.broadcast %cst_35 : f32 to vector<1x128xf32>
    %62 = arith.addf %60, %61 : vector<1x128xf32>
    %63 = math.rsqrt %62 : vector<1x128xf32>
    %c0_36 = arith.constant 0 : index
    %c0_37 = arith.constant 0 : index
    %64 = vector.load %arg4[%c0_36, %c0_37] : memref<1x128xf32, #tpu.memory_space<vmem>>, vector<1x128xf32>
    %65 = arith.mulf %63, %64 : vector<1x128xf32>
    %c0_38 = arith.constant 0 : index
    %c0_39 = arith.constant 0 : index
    %66 = vector.load %arg5[%c0_38, %c0_39] : memref<1x128xf32, #tpu.memory_space<vmem>>, vector<1x128xf32>
    %67 = arith.mulf %56, %65 : vector<1x128xf32>
    %68 = arith.subf %66, %67 : vector<1x128xf32>
    %69 = vector.broadcast %65 : vector<1x128xf32> to vector<200x128xf32>
    %70 = arith.mulf %47, %69 : vector<200x128xf32>
    %71 = vector.broadcast %68 : vector<1x128xf32> to vector<200x128xf32>
    %72 = arith.addf %70, %71 : vector<200x128xf32>
    %cst_40 = arith.constant 0.000000e+00 : f32
    %73 = vector.broadcast %cst_40 : f32 to vector<200x128xf32>
    %74 = arith.maximumf %72, %73 : vector<200x128xf32>
    %75 = vector.broadcast %0 : vector<200x1xf32> to vector<200x128xf32>
    %76 = arith.mulf %74, %75 : vector<200x128xf32>
    %77 = arith.truncf %76 : vector<200x128xf32> to vector<200x128xbf16>
    %cst_41 = arith.constant 0.000000e+00 : f32
    %78 = vector.broadcast %cst_41 : f32 to vector<200x128xf32>
    %c0_42 = arith.constant 0 : index
    %c0_43 = arith.constant 0 : index
    %c0_44 = arith.constant 0 : index
    %79 = vector.load %arg3[%c0_42, %c0_43, %c0_44] : memref<9x128x128xbf16, #tpu.memory_space<vmem>>, vector<1x128x128xbf16>
    %80 = vector.shape_cast %79 : vector<1x128x128xbf16> to vector<128x128xbf16>
    %cst_45 = arith.constant dense<0.000000e+00> : vector<200x128xf32>
    %81 = tpu.matmul %77, %80, %cst_45 {dimension_numbers = #tpu.dot_dimension_numbers<[1], [0], [0], [1], [0, 0, 1, 1], [], []>} : vector<200x128xbf16>, vector<128x128xbf16>, vector<200x128xf32> -> vector<200x128xf32>
    %c11_i32_46 = arith.constant 11 : i32
    %82 = tpu.dynamic_rotate %81 by %c11_i32_46 dim 0 : vector<200x128xf32>, i32 -> vector<200x128xf32>
    %83 = arith.addf %78, %82 : vector<200x128xf32>
    %c1_47 = arith.constant 1 : index
    %c0_48 = arith.constant 0 : index
    %c0_49 = arith.constant 0 : index
    %84 = vector.load %arg3[%c1_47, %c0_48, %c0_49] : memref<9x128x128xbf16, #tpu.memory_space<vmem>>, vector<1x128x128xbf16>
    %85 = vector.shape_cast %84 : vector<1x128x128xbf16> to vector<128x128xbf16>
    %cst_50 = arith.constant dense<0.000000e+00> : vector<200x128xf32>
    %86 = tpu.matmul %77, %85, %cst_50 {dimension_numbers = #tpu.dot_dimension_numbers<[1], [0], [0], [1], [0, 0, 1, 1], [], []>} : vector<200x128xbf16>, vector<128x128xbf16>, vector<200x128xf32> -> vector<200x128xf32>
    %c10_i32_51 = arith.constant 10 : i32
    %87 = tpu.dynamic_rotate %86 by %c10_i32_51 dim 0 : vector<200x128xf32>, i32 -> vector<200x128xf32>
    %88 = arith.addf %83, %87 : vector<200x128xf32>
    %c2_52 = arith.constant 2 : index
    %c0_53 = arith.constant 0 : index
    %c0_54 = arith.constant 0 : index
    %89 = vector.load %arg3[%c2_52, %c0_53, %c0_54] : memref<9x128x128xbf16, #tpu.memory_space<vmem>>, vector<1x128x128xbf16>
    %90 = vector.shape_cast %89 : vector<1x128x128xbf16> to vector<128x128xbf16>
    %cst_55 = arith.constant dense<0.000000e+00> : vector<200x128xf32>
    %91 = tpu.matmul %77, %90, %cst_55 {dimension_numbers = #tpu.dot_dimension_numbers<[1], [0], [0], [1], [0, 0, 1, 1], [], []>} : vector<200x128xbf16>, vector<128x128xbf16>, vector<200x128xf32> -> vector<200x128xf32>
    %c9_i32_56 = arith.constant 9 : i32
    %92 = tpu.dynamic_rotate %91 by %c9_i32_56 dim 0 : vector<200x128xf32>, i32 -> vector<200x128xf32>
    %93 = arith.addf %88, %92 : vector<200x128xf32>
    %c3_57 = arith.constant 3 : index
    %c0_58 = arith.constant 0 : index
    %c0_59 = arith.constant 0 : index
    %94 = vector.load %arg3[%c3_57, %c0_58, %c0_59] : memref<9x128x128xbf16, #tpu.memory_space<vmem>>, vector<1x128x128xbf16>
    %95 = vector.shape_cast %94 : vector<1x128x128xbf16> to vector<128x128xbf16>
    %cst_60 = arith.constant dense<0.000000e+00> : vector<200x128xf32>
    %96 = tpu.matmul %77, %95, %cst_60 {dimension_numbers = #tpu.dot_dimension_numbers<[1], [0], [0], [1], [0, 0, 1, 1], [], []>} : vector<200x128xbf16>, vector<128x128xbf16>, vector<200x128xf32> -> vector<200x128xf32>
    %c1_i32_61 = arith.constant 1 : i32
    %97 = tpu.dynamic_rotate %96 by %c1_i32_61 dim 0 : vector<200x128xf32>, i32 -> vector<200x128xf32>
    %98 = arith.addf %93, %97 : vector<200x128xf32>
    %c4_62 = arith.constant 4 : index
    %c0_63 = arith.constant 0 : index
    %c0_64 = arith.constant 0 : index
    %99 = vector.load %arg3[%c4_62, %c0_63, %c0_64] : memref<9x128x128xbf16, #tpu.memory_space<vmem>>, vector<1x128x128xbf16>
    %100 = vector.shape_cast %99 : vector<1x128x128xbf16> to vector<128x128xbf16>
    %cst_65 = arith.constant dense<0.000000e+00> : vector<200x128xf32>
    %101 = tpu.matmul %77, %100, %cst_65 {dimension_numbers = #tpu.dot_dimension_numbers<[1], [0], [0], [1], [0, 0, 1, 1], [], []>} : vector<200x128xbf16>, vector<128x128xbf16>, vector<200x128xf32> -> vector<200x128xf32>
    %102 = arith.addf %98, %101 : vector<200x128xf32>
    %c5_66 = arith.constant 5 : index
    %c0_67 = arith.constant 0 : index
    %c0_68 = arith.constant 0 : index
    %103 = vector.load %arg3[%c5_66, %c0_67, %c0_68] : memref<9x128x128xbf16, #tpu.memory_space<vmem>>, vector<1x128x128xbf16>
    %104 = vector.shape_cast %103 : vector<1x128x128xbf16> to vector<128x128xbf16>
    %cst_69 = arith.constant dense<0.000000e+00> : vector<200x128xf32>
    %105 = tpu.matmul %77, %104, %cst_69 {dimension_numbers = #tpu.dot_dimension_numbers<[1], [0], [0], [1], [0, 0, 1, 1], [], []>} : vector<200x128xbf16>, vector<128x128xbf16>, vector<200x128xf32> -> vector<200x128xf32>
    %c199_i32_70 = arith.constant 199 : i32
    %106 = tpu.dynamic_rotate %105 by %c199_i32_70 dim 0 : vector<200x128xf32>, i32 -> vector<200x128xf32>
    %107 = arith.addf %102, %106 : vector<200x128xf32>
    %c6_71 = arith.constant 6 : index
    %c0_72 = arith.constant 0 : index
    %c0_73 = arith.constant 0 : index
    %108 = vector.load %arg3[%c6_71, %c0_72, %c0_73] : memref<9x128x128xbf16, #tpu.memory_space<vmem>>, vector<1x128x128xbf16>
    %109 = vector.shape_cast %108 : vector<1x128x128xbf16> to vector<128x128xbf16>
    %cst_74 = arith.constant dense<0.000000e+00> : vector<200x128xf32>
    %110 = tpu.matmul %77, %109, %cst_74 {dimension_numbers = #tpu.dot_dimension_numbers<[1], [0], [0], [1], [0, 0, 1, 1], [], []>} : vector<200x128xbf16>, vector<128x128xbf16>, vector<200x128xf32> -> vector<200x128xf32>
    %c191_i32_75 = arith.constant 191 : i32
    %111 = tpu.dynamic_rotate %110 by %c191_i32_75 dim 0 : vector<200x128xf32>, i32 -> vector<200x128xf32>
    %112 = arith.addf %107, %111 : vector<200x128xf32>
    %c7_76 = arith.constant 7 : index
    %c0_77 = arith.constant 0 : index
    %c0_78 = arith.constant 0 : index
    %113 = vector.load %arg3[%c7_76, %c0_77, %c0_78] : memref<9x128x128xbf16, #tpu.memory_space<vmem>>, vector<1x128x128xbf16>
    %114 = vector.shape_cast %113 : vector<1x128x128xbf16> to vector<128x128xbf16>
    %cst_79 = arith.constant dense<0.000000e+00> : vector<200x128xf32>
    %115 = tpu.matmul %77, %114, %cst_79 {dimension_numbers = #tpu.dot_dimension_numbers<[1], [0], [0], [1], [0, 0, 1, 1], [], []>} : vector<200x128xbf16>, vector<128x128xbf16>, vector<200x128xf32> -> vector<200x128xf32>
    %c190_i32_80 = arith.constant 190 : i32
    %116 = tpu.dynamic_rotate %115 by %c190_i32_80 dim 0 : vector<200x128xf32>, i32 -> vector<200x128xf32>
    %117 = arith.addf %112, %116 : vector<200x128xf32>
    %c8_81 = arith.constant 8 : index
    %c0_82 = arith.constant 0 : index
    %c0_83 = arith.constant 0 : index
    %118 = vector.load %arg3[%c8_81, %c0_82, %c0_83] : memref<9x128x128xbf16, #tpu.memory_space<vmem>>, vector<1x128x128xbf16>
    %119 = vector.shape_cast %118 : vector<1x128x128xbf16> to vector<128x128xbf16>
    %cst_84 = arith.constant dense<0.000000e+00> : vector<200x128xf32>
    %120 = tpu.matmul %77, %119, %cst_84 {dimension_numbers = #tpu.dot_dimension_numbers<[1], [0], [0], [1], [0, 0, 1, 1], [], []>} : vector<200x128xbf16>, vector<128x128xbf16>, vector<200x128xf32> -> vector<200x128xf32>
    %c189_i32_85 = arith.constant 189 : i32
    %121 = tpu.dynamic_rotate %120 by %c189_i32_85 dim 0 : vector<200x128xf32>, i32 -> vector<200x128xf32>
    %122 = arith.addf %117, %121 : vector<200x128xf32>
    %123 = vector.broadcast %0 : vector<200x1xf32> to vector<200x128xf32>
    %124 = arith.mulf %122, %123 : vector<200x128xf32>
    %cst_86 = arith.constant dense<0.000000e+00> : vector<128xf32>
    %125 = vector.multi_reduction <add>, %124, %cst_86 [0] : vector<200x128xf32> to vector<128xf32>
    %126 = vector.shape_cast %125 : vector<128xf32> to vector<1x128xf32>
    %127 = arith.mulf %124, %124 : vector<200x128xf32>
    %cst_87 = arith.constant dense<0.000000e+00> : vector<128xf32>
    %128 = vector.multi_reduction <add>, %127, %cst_87 [0] : vector<200x128xf32> to vector<128xf32>
    %129 = vector.shape_cast %128 : vector<128xf32> to vector<1x128xf32>
    %cst_88 = arith.constant 7.812500e-03 : f32
    %130 = vector.broadcast %cst_88 : f32 to vector<1x128xf32>
    %131 = arith.mulf %126, %130 : vector<1x128xf32>
    %cst_89 = arith.constant 7.812500e-03 : f32
    %132 = vector.broadcast %cst_89 : f32 to vector<1x128xf32>
    %133 = arith.mulf %129, %132 : vector<1x128xf32>
    %134 = arith.mulf %131, %131 : vector<1x128xf32>
    %135 = arith.subf %133, %134 : vector<1x128xf32>
    %cst_90 = arith.constant 9.99999974E-6 : f32
    %136 = vector.broadcast %cst_90 : f32 to vector<1x128xf32>
    %137 = arith.addf %135, %136 : vector<1x128xf32>
    %138 = math.rsqrt %137 : vector<1x128xf32>
    %c0_91 = arith.constant 0 : index
    %c0_92 = arith.constant 0 : index
    %139 = vector.load %arg6[%c0_91, %c0_92] : memref<1x128xf32, #tpu.memory_space<vmem>>, vector<1x128xf32>
    %140 = arith.mulf %138, %139 : vector<1x128xf32>
    %c0_93 = arith.constant 0 : index
    %c0_94 = arith.constant 0 : index
    %141 = vector.load %arg7[%c0_93, %c0_94] : memref<1x128xf32, #tpu.memory_space<vmem>>, vector<1x128xf32>
    %142 = arith.mulf %131, %140 : vector<1x128xf32>
    %143 = arith.subf %141, %142 : vector<1x128xf32>
    %144 = vector.broadcast %140 : vector<1x128xf32> to vector<200x128xf32>
    %145 = arith.mulf %122, %144 : vector<200x128xf32>
    %146 = vector.broadcast %143 : vector<1x128xf32> to vector<200x128xf32>
    %147 = arith.addf %145, %146 : vector<200x128xf32>
    %148 = arith.addf %147, %1 : vector<200x128xf32>
    %cst_95 = arith.constant 0.000000e+00 : f32
    %149 = vector.broadcast %cst_95 : f32 to vector<200x128xf32>
    %150 = arith.maximumf %148, %149 : vector<200x128xf32>
    %c0_96 = arith.constant 0 : index
    %c0_97 = arith.constant 0 : index
    %151 = vector.load %arg8[%c0_96, %c0_97] : memref<200x128xf32, #tpu.memory_space<vmem>>, vector<200x128xf32>
    tpu.vector_store %arg8[%c0_96, %c0_97], %150 {strides = array<i32>} : memref<200x128xf32, #tpu.memory_space<vmem>>, vector<200x128xf32>,
    return
  }
}

</mosaic_0001>

<bundles_post_ra>
// kernel: tpu_custom_call.1
= control target key start
LH: loop header
LB: loop body
LE: loop exit
PB: predicated region body
PF: predicated region fallthrough
CT: control target
= control target key end

     0   :  { %13 = vsyncpa [#allocation3], 0  ;;  %s7689_s0 = inlined_call_operand.vmem [shape: f32[200,128], index: 0, kind: input, shape index: {}]   ;;  %s7690_s1 = inlined_call_operand.vmem [shape: f32[200,1], index: 1, kind: input, shape index: {}]   ;;  %s7691_s2 = inlined_call_operand.hbm [shape: bf16[9,128,128], index: 2, kind: input, shape index: {}]   ;;  %s7692_s3 = inlined_call_operand.hbm [shape: bf16[9,128,128], index: 3, kind: input, shape index: {}]   ;;  %s7693_s4 = inlined_call_operand.vmem [shape: f32[1,128], index: 4, kind: input, shape index: {}]   ;;  %s7694_s5 = inlined_call_operand.vmem [shape: f32[1,128], index: 5, kind: input, shape index: {}]   ;;  %s7695_s6 = inlined_call_operand.vmem [shape: f32[1,128], index: 6, kind: input, shape index: {}]   ;;  %s7696_s7 = inlined_call_operand.vmem [shape: f32[1,128], index: 7, kind: input, shape index: {}]   ;;  %s7697_s8 = inlined_call_operand.hbm [shape: f32[200,128], index: 8, kind: output, shape index: {}]  }
   0x1   :  { %14 = vsyncpa [#allocation6], 0 }
   0x2   :  { %15 = vsyncpa [#allocation4], 0  ;;  %s24_s29 = sshll.u32 %s7691_s2, 4  ;;  %s5370_s30 = smov [#allocation2]   ;;  %s25_s29 = int_to_ptr.hbm [resolvable:$true] %s24_s29 }
   0x3   :  { %s26_s9 = sshll.u32 %s5370_s30, 4  ;;  %s37_s12 = sshll.u32 %s7692_s3, 4  ;;  %s27_s9 = int_to_ptr.vmem [resolvable:$true] %s26_s9  ;;  %s38_s12 = int_to_ptr.hbm [resolvable:$true] %s37_s12 }
   0x4   :  { %s5371_s13 = smov 64   ;;  %s5372_s14 = smov 4  }
   0x5   :  { %32 = dma.hbm_to_vmem [thread:$0]  %s25_s29, 9216, %s27_s9, [#allocation3], %s5371_s13, %s5371_s13, %s5372_s14  }
   0x6   :  { %s5373_s15 = smov [#allocation5]  }
   0x7   :  { %s39_s16 = sshll.u32 %s5373_s15, 4  ;;  %s40_s16 = int_to_ptr.vmem [resolvable:$true] %s39_s16 }
   0x8   :  { %45 = dma.hbm_to_vmem [thread:$0]  %s38_s12, 9216, %s40_s16, [#allocation6], %s5371_s13, %s5371_s13, %s5372_s14  }
   0x9   :  { %5364 = dma.done.wait [#allocation3], 9216  }
   0xa   :  { %5365 = vsyncadd [#allocation3], 4294958080 }
   0xb   :  { %5366 = dma.done.wait [#allocation6], 9216  }
   0xc   :  { %5367 = vsyncadd [#allocation6], 4294958080  ;;  %v5099_v0 = vld [vmem:[#allocation2 + $0x38] sm:$0xff]  ;;  %v5098_v2 = vld [vmem:[#allocation2 + $0x30] sm:$0xff] }
   0xd   :  { %v5107_v1 = vld [vmem:[#allocation2 + $0x78] sm:$0xff]  ;;  %189 = vmatpush.bf16.msra.mxu0 %v5099_v0  ;;  %5236 = vmatpush.bf16.msra.mxu2 %v5099_v0  ;;  %v5106_v3 = vld [vmem:[#allocation2 + $0x70] sm:$0xff]  ;;  %v5097_v4 = vld [vmem:[#allocation2 + $0x28] sm:$0xff] }
   0xe   :  { %405 = vmatpush.bf16.msra.mxu1 %v5107_v1  ;;  %5244 = vmatpush.bf16.msra.mxu3 %v5107_v1  ;;  %v5105_v5 = vld [vmem:[#allocation2 + $0x68] sm:$0xff]  ;;  %v5096_v6 = vld [vmem:[#allocation2 + $0x20] sm:$0xff]  ;;  %v5095_v8 = vld [vmem:[#allocation2 + $0x18] sm:$0xff] }
   0xf   :  { %v5104_v7 = vld [vmem:[#allocation2 + $0x60] sm:$0xff]  ;;  %v5103_v9 = vld [vmem:[#allocation2 + $0x58] sm:$0xff]  ;;  %v5094_v10 = vld [vmem:[#allocation2 + $0x10] sm:$0xff] }
  0x10   :  { %v5102_v11 = vld [vmem:[#allocation2 + $0x50] sm:$0xff]  ;;  %v5093_v12 = vld [vmem:[#allocation2 + $0x8] sm:$0xff]  ;;  %v5092_v14 = vld [vmem:[#allocation2] sm:$0xff] }
  0x11   :  { %190 = vmatpush.bf16.msra.mxu0 %v5098_v2  ;;  %5237 = vmatpush.bf16.msra.mxu2 %v5098_v2  ;;  %v5101_v13 = vld [vmem:[#allocation2 + $0x48] sm:$0xff]  ;;  %v87_v15 = vld [vmem:[%s7689_s0] sm:$0xff]  ;;  %v101_v17 = vld [vmem:[%s7689_s0 + $0x70] sm:$0xff] }
  0x12   :  { %406 = vmatpush.bf16.msra.mxu1 %v5106_v3  ;;  %5245 = vmatpush.bf16.msra.mxu3 %v5106_v3  ;;  %v88_v16 = vld [vmem:[%s7689_s0 + $0x8] sm:$0xff]  ;;  %v102_v18 = vld [vmem:[%s7689_s0 + $0x78] sm:$0xff]  ;;  %v5100_v19 = vld [vmem:[#allocation2 + $0x40] sm:$0xff] }
  0x13   :  { %v5131_v20 = vld [vmem:[#allocation2 + $0x138] sm:$0xff]  ;;  %v5441_v22 = vpack.c.bf16 %v88_v16, %v87_v15  ;;  %v5443_v23 = vpack.c.bf16 %v102_v18, %v101_v17  ;;  %v5130_v25 = vld [vmem:[#allocation2 + $0x130] sm:$0xff]  ;;  %v5129_v28 = vld [vmem:[#allocation2 + $0x128] sm:$0xff] }
  0x14   :  { %v5115_v21 = vld [vmem:[#allocation2 + $0xb8] sm:$0xff]  ;;  %v5114_v26 = vld [vmem:[#allocation2 + $0xb0] sm:$0xff]  ;;  %v5113_v29 = vld [vmem:[#allocation2 + $0xa8] sm:$0xff] }
  0x15   :  { %191 = vmatpush.bf16.msra.mxu0 %v5097_v4  ;;  %5238 = vmatpush.bf16.msra.mxu2 %v5097_v4  ;;  %v5123_v24 = vld [vmem:[#allocation2 + $0xf8] sm:$0xff]  ;;  %v5122_v27 = vld [vmem:[#allocation2 + $0xf0] sm:$0xff]  ;;  %v5121_v30 = vld [vmem:[#allocation2 + $0xe8] sm:$0xff] }
  0x16   :  { %407 = vmatpush.bf16.msra.mxu1 %v5105_v5  ;;  %5246 = vmatpush.bf16.msra.mxu3 %v5105_v5  ;;  %v5112_v31 = vld [vmem:[#allocation2 + $0xa0] sm:$0xff]  ;;  %v89_v33 = vld [vmem:[%s7689_s0 + $0x10] sm:$0xff]  ;;  %v90_v34 = vld [vmem:[%s7689_s0 + $0x18] sm:$0xff] }
  0x17   :  { %v5128_v32 = vld [vmem:[#allocation2 + $0x120] sm:$0xff]  ;;  %v104_v36 = vld [vmem:[%s7689_s0 + $0x88] sm:$0xff]  ;;  %v5461_v38 = vpack.c.bf16 %v90_v34, %v89_v33  ;;  %v5111_v40 = vld [vmem:[#allocation2 + $0x98] sm:$0xff] }
  0x18   :  { %v103_v35 = vld [vmem:[%s7689_s0 + $0x80] sm:$0xff]  ;;  %v5119_v41 = vld [vmem:[#allocation2 + $0xd8] sm:$0xff]  ;;  %v92_v44 = vld [vmem:[%s7689_s0 + $0x28] sm:$0xff] }
  0x19   :  { %192 = vmatpush.bf16.msra.mxu0 %v5096_v6  ;;  %5239 = vmatpush.bf16.msra.mxu2 %v5096_v6  ;;  %v5120_v37 = vld [vmem:[#allocation2 + $0xe0] sm:$0xff]  ;;  %v5463_v39 = vpack.c.bf16 %v104_v36, %v103_v35  ;;  %v5127_v42 = vld [vmem:[#allocation2 + $0x118] sm:$0xff]  ;;  %v105_v45 = vld [vmem:[%s7689_s0 + $0x90] sm:$0xff] }
  0x1a   :  { %408 = vmatpush.bf16.msra.mxu1 %v5104_v7  ;;  %5247 = vmatpush.bf16.msra.mxu3 %v5104_v7  ;;  %v91_v43 = vld [vmem:[%s7689_s0 + $0x20] sm:$0xff]  ;;  %v106_v46 = vld [vmem:[%s7689_s0 + $0x98] sm:$0xff]  ;;  %v5110_v49 = vld [vmem:[#allocation2 + $0x90] sm:$0xff] }
  0x1b   :  { %v5481_v47 = vpack.c.bf16 %v92_v44, %v91_v43  ;;  %v5483_v48 = vpack.c.bf16 %v106_v46, %v105_v45  ;;  %v5118_v50 = vld [vmem:[#allocation2 + $0xd0] sm:$0xff]  ;;  %v5109_v52 = vld [vmem:[#allocation2 + $0x88] sm:$0xff]  ;;  %v94_v54 = vld [vmem:[%s7689_s0 + $0x38] sm:$0xff] }
  0x1c   :  { %v5126_v51 = vld [vmem:[#allocation2 + $0x110] sm:$0xff]  ;;  %v107_v55 = vld [vmem:[%s7689_s0 + $0xa0] sm:$0xff]  ;;  %v108_v56 = vld [vmem:[%s7689_s0 + $0xa8] sm:$0xff] }
  0x1d   :  { %193 = vmatpush.bf16.msra.mxu0 %v5095_v8  ;;  %5240 = vmatpush.bf16.msra.mxu2 %v5095_v8  ;;  %7758 = vst [vmem:[#allocation11_spill] sm:$0xff] %v5483_v48  ;;  %v93_v53 = vld [vmem:[%s7689_s0 + $0x30] sm:$0xff]  ;;  %v5503_v58 = vpack.c.bf16 %v108_v56, %v107_v55  ;;  %v5139_v59 = vld [vmem:[#allocation2 + $0x178] sm:$0xff]  ;;  %v5117_v60 = vld [vmem:[#allocation2 + $0xc8] sm:$0xff] }
  0x1e   :  { %409 = vmatpush.bf16.msra.mxu1 %v5103_v9  ;;  %5248 = vmatpush.bf16.msra.mxu3 %v5103_v9  ;;  %v5501_v57 = vpack.c.bf16 %v94_v54, %v93_v53  ;;  %v5125_v61 = vld [vmem:[#allocation2 + $0x108] sm:$0xff]  ;;  %v5138_v62 = vld [vmem:[#allocation2 + $0x170] sm:$0xff]  ;;  %v5108_v63 = vld [vmem:[#allocation2 + $0x80] sm:$0xff] }
  0x1f   :  { %v5116_v0 = vld [vmem:[#allocation2 + $0xc0] sm:$0xff]  ;;  %v5137_v1 = vld [vmem:[#allocation2 + $0x168] sm:$0xff]  ;;  %v109_v4 = vld [vmem:[%s7689_s0 + $0xb0] sm:$0xff] }
  0x20   :  { %v95_v2 = vld [vmem:[%s7689_s0 + $0x40] sm:$0xff]  ;;  %v96_v3 = vld [vmem:[%s7689_s0 + $0x48] sm:$0xff]  ;;  %v110_v5 = vld [vmem:[%s7689_s0 + $0xb8] sm:$0xff] }
  0x21   :  { %194 = vmatpush.bf16.msra.mxu0 %v5094_v10  ;;  %5241 = vmatpush.bf16.msra.mxu2 %v5094_v10  ;;  %v5136_v6 = vld [vmem:[#allocation2 + $0x160] sm:$0xff]  ;;  %v5521_v7 = vpack.c.bf16 %v96_v3, %v95_v2  ;;  %v5523_v8 = vpack.c.bf16 %v110_v5, %v109_v4  ;;  %v5135_v9 = vld [vmem:[#allocation2 + $0x158] sm:$0xff]  ;;  %v97_v15 = vld [vmem:[%s7689_s0 + $0x50] sm:$0xff] }
  0x22   :  { %410 = vmatpush.bf16.msra.mxu1 %v5102_v11  ;;  %5249 = vmatpush.bf16.msra.mxu3 %v5102_v11  ;;  %v5124_v10 = vld [vmem:[#allocation2 + $0x100] sm:$0xff]  ;;  %v5147_v11 = vld [vmem:[#allocation2 + $0x1b8] sm:$0xff]  ;;  %v5153_v34 = vld [vmem:[#allocation2 + $0x1e8] sm:$0xff] }
  0x23   :  { %v98_v16 = vld [vmem:[%s7689_s0 + $0x58] sm:$0xff]  ;;  %v111_v17 = vld [vmem:[%s7689_s0 + $0xc0] sm:$0xff] }
  0x24   :  { %v5132_v18 = vld [vmem:[#allocation2 + $0x140] sm:$0xff] }
  0x25   :  { %195 = vmatpush.bf16.msra.mxu0 %v5093_v12  ;;  %5242 = vmatpush.bf16.msra.mxu2 %v5093_v12  ;;  %v5134_v12 = vld [vmem:[#allocation2 + $0x150] sm:$0xff] }
  0x26   :  { %411 = vmatpush.bf16.msra.mxu1 %v5101_v13  ;;  %5250 = vmatpush.bf16.msra.mxu3 %v5101_v13  ;;  %v5155_v13 = vld [vmem:[#allocation2 + $0x1f8] sm:$0xff] }
  0x29   :  { %196 = vmatpush.bf16.msra.mxu0 %v5092_v14  ;;  %5243 = vmatpush.bf16.msra.mxu2 %v5092_v14  ;;  %v5133_v14 = vld [vmem:[#allocation2 + $0x148] sm:$0xff] }
  0x2a   :  { %412 = vmatpush.bf16.msra.mxu1 %v5100_v19  ;;  %5251 = vmatpush.bf16.msra.mxu3 %v5100_v19  ;;  %v5538_v19 = vpack.c.bf16 %v98_v16, %v97_v15 }
  0x2c   :  { %197 = vmatmul.bf16.vlgmr.msra.gmra.mxu0 %v5441_v22  ;;  %232 = vmatmul.bf16.vlgmr.msra.gmra.mxu2 %v5443_v23 }
  0x2d   :  { %1046 = vmatpush.bf16.msrb.mxu0 %v5131_v20  ;;  %619 = vmatpush.bf16.msrb.mxu2 %v5115_v21  ;;  %v5540_v20 = vpack.c.bf16 %v111_v17, %v111_v17  ;;  %v5163_v21 = vld [vmem:[#allocation2 + $0x238] sm:$0xff] }
  0x2e   :  { %413 = vmatmul.bf16.vlgmr.msra.gmra.mxu1 %v5441_v22  ;;  %448 = vmatmul.bf16.vlgmr.msra.gmra.mxu3 %v5443_v23 }
  0x2f   :  { %833 = vmatpush.bf16.msrb.mxu3 %v5123_v24  ;;  %1209 = vmatpush.bf16.msrb.mxu1 %v5139_v59  ;;  %v99_v24 = vld [vmem:[%s7689_s0 + $0x60] sm:$0xff] }
  0x31   :  { %1047 = vmatpush.bf16.msrb.mxu0 %v5130_v25  ;;  %620 = vmatpush.bf16.msrb.mxu2 %v5114_v26  ;;  %v100_v25 = vld [vmem:[%s7689_s0 + $0x68] sm:$0xff] }
  0x32   :  { %v5552_v26 = vpack.c.bf16 %v100_v25, %v99_v24  ;;  %v5144_v24 = vld [vmem:[#allocation2 + $0x1a0] sm:$0xff] }
  0x33   :  { %834 = vmatpush.bf16.msrb.mxu3 %v5122_v27  ;;  %1210 = vmatpush.bf16.msrb.mxu1 %v5138_v62  ;;  %v5146_v27 = vld [vmem:[#allocation2 + $0x1b0] sm:$0xff] }
  0x35   :  { %1048 = vmatpush.bf16.msrb.mxu0 %v5129_v28  ;;  %621 = vmatpush.bf16.msrb.mxu2 %v5113_v29  ;;  %v5154_v28 = vld [vmem:[#allocation2 + $0x1f0] sm:$0xff] }
  0x36   :  { %v5162_v29 = vld [vmem:[#allocation2 + $0x230] sm:$0xff] }
  0x37   :  { %835 = vmatpush.bf16.msrb.mxu3 %v5121_v30  ;;  %1211 = vmatpush.bf16.msrb.mxu1 %v5137_v1  ;;  %v5145_v30 = vld [vmem:[#allocation2 + $0x1a8] sm:$0xff] }
  0x39   :  { %622 = vmatpush.bf16.msrb.mxu2 %v5112_v31  ;;  %1049 = vmatpush.bf16.msrb.mxu0 %v5128_v32  ;;  %v287_v32 = vlaneseq }
  0x3b   :  { %836 = vmatpush.bf16.msrb.mxu3 %v5120_v37  ;;  %1212 = vmatpush.bf16.msrb.mxu1 %v5136_v6  ;;  %v5570_v35 = vshrl.u32 %v287_v32, 7 }
  0x3c   :  { %202 = vmatmul.bf16.gmra.mxu0 %v5461_v38  ;;  %237 = vmatmul.bf16.gmra.mxu2 %v5463_v39 }
  0x3d   :  { %623 = vmatpush.bf16.msrb.mxu2 %v5111_v40  ;;  %1050 = vmatpush.bf16.msrb.mxu0 %v5127_v42  ;;  %vm289_vm0 = vcmp.lt.s32.totalorder %v5570_v35, 3  ;;  %vm503_vm1 = vcmp.lt.s32.totalorder %v5570_v35, 2  ;;  %vm717_vm2 = vcmp.lt.s32.totalorder %v5570_v35, 1  ;;  %vm1307_vm3 = vcmp.lt.s32.totalorder %v5570_v35, 7 }
  0x3e   :  { %418 = vmatmul.bf16.gmra.mxu1 %v5461_v38  ;;  %453 = vmatmul.bf16.gmra.mxu3 %v5463_v39  ;;  %vm1734_vm4 = vcmp.lt.s32.totalorder %v5570_v35, 6  ;;  %vm1948_vm5 = vcmp.lt.s32.totalorder %v5570_v35, 5 }
  0x3f   :  { %837 = vmatpush.bf16.msrb.mxu3 %v5119_v41  ;;  %1213 = vmatpush.bf16.msrb.mxu1 %v5135_v9 }
  0x41   :  { %624 = vmatpush.bf16.msrb.mxu2 %v5110_v49  ;;  %1051 = vmatpush.bf16.msrb.mxu0 %v5126_v51  ;;  %v5161_v49 = vld [vmem:[#allocation2 + $0x228] sm:$0xff] }
  0x43   :  { %838 = vmatpush.bf16.msrb.mxu3 %v5118_v50  ;;  %1214 = vmatpush.bf16.msrb.mxu1 %v5134_v12 }
  0x45   :  { %625 = vmatpush.bf16.msrb.mxu2 %v5109_v52  ;;  %1052 = vmatpush.bf16.msrb.mxu0 %v5125_v61 }
  0x47   :  { %839 = vmatpush.bf16.msrb.mxu3 %v5117_v60  ;;  %1215 = vmatpush.bf16.msrb.mxu1 %v5133_v14 }
  0x49   :  { %626 = vmatpush.bf16.msrb.mxu2 %v5108_v63  ;;  %1053 = vmatpush.bf16.msrb.mxu0 %v5124_v10 }
  0x4b   :  { %840 = vmatpush.bf16.msrb.mxu3 %v5116_v0  ;;  %1216 = vmatpush.bf16.msrb.mxu1 %v5132_v18 }
  0x4c   :  { %207 = vmatmul.bf16.gmra.mxu0 %v5481_v47  ;;  %242 = vmatmul.bf16.gmra.mxu2 %v5483_v48 }
  0x4d   :  { %1423 = vmatpush.bf16.msra.mxu2 %v5147_v11  ;;  %1850 = vmatpush.bf16.msra.mxu0 %v5163_v21 }
  0x4e   :  { %423 = vmatmul.bf16.gmra.mxu1 %v5481_v47  ;;  %458 = vmatmul.bf16.gmra.mxu3 %v5483_v48 }
  0x4f   :  { %1636 = vmatpush.bf16.msra.mxu3 %v5155_v13 }
  0x51   :  { %1424 = vmatpush.bf16.msra.mxu2 %v5146_v27  ;;  %1851 = vmatpush.bf16.msra.mxu0 %v5162_v29  ;;  %v5152_v27 = vld [vmem:[#allocation2 + $0x1e0] sm:$0xff] }
  0x53   :  { %1637 = vmatpush.bf16.msra.mxu3 %v5154_v28 }
  0x55   :  { %1425 = vmatpush.bf16.msra.mxu2 %v5145_v30  ;;  %1852 = vmatpush.bf16.msra.mxu0 %v5161_v49 }
  0x57   :  { %1638 = vmatpush.bf16.msra.mxu3 %v5153_v34 }
  0x59   :  { %1426 = vmatpush.bf16.msra.mxu2 %v5144_v24 }
  0x5b   :  { %1639 = vmatpush.bf16.msra.mxu3 %v5152_v27 }
  0x5c   :  { %212 = vmatmul.bf16.gmra.mxu0 %v5501_v57  ;;  %247 = vmatmul.bf16.gmra.mxu2 %v5503_v58 }
  0x5e   :  { %428 = vmatmul.bf16.gmra.mxu1 %v5501_v57  ;;  %463 = vmatmul.bf16.gmra.mxu3 %v5503_v58 }
  0x6c   :  { %217 = vmatmul.bf16.gmra.mxu0 %v5521_v7  ;;  %252 = vmatmul.bf16.gmra.mxu2 %v5523_v8 }
  0x6e   :  { %433 = vmatmul.bf16.gmra.mxu1 %v5521_v7  ;;  %468 = vmatmul.bf16.gmra.mxu3 %v5523_v8 }
  0x7c   :  { %222 = vmatmul.bf16.gmra.mxu0 %v5538_v19  ;;  %257 = vmatmul.bf16.gmra.mxu2 %v5540_v20 }
  0x7e   :  { %438 = vmatmul.bf16.gmra.mxu1 %v5538_v19  ;;  %473 = vmatmul.bf16.gmra.mxu3 %v5540_v20 }
  0x8c   :  { %227 = vmatmul.bf16.gmra.mxu0 %v5552_v26  ;;  %627 = vmatmul.bf16.vlgmr.msrb.gmra.mxu2 %v5441_v22 }
  0x8e   :  { %443 = vmatmul.bf16.gmra.mxu1 %v5552_v26  ;;  %841 = vmatmul.bf16.vlgmr.msrb.gmra.mxu3 %v5441_v22 }
  0x9c   :  { %632 = vmatmul.bf16.gmra.mxu2 %v5461_v38  ;;  %1054 = vmatmul.bf16.vlgmr.msrb.gmra.mxu0 %v5441_v22 }
  0x9e   :  { %846 = vmatmul.bf16.gmra.mxu3 %v5461_v38  ;;  %1217 = vmatmul.bf16.vlgmr.msrb.gmra.mxu1 %v5441_v22 }
  0xa9   :  { %v5562_v31 = vpop.f32.mrf.mxu0 }
  0xaa   :  { %v262_v42 = vrot.slane %v5562_v31, 5 }
  0xab   :  { %v5564_v33 = vpop.f32.mrf.mxu1 }
  0xac   :  { %637 = vmatmul.bf16.gmra.mxu2 %v5481_v47  ;;  %1059 = vmatmul.bf16.gmra.mxu0 %v5461_v38  ;;  %v478_v40 = vrot.slane %v5564_v33, 6 }
  0xae   :  { %851 = vmatmul.bf16.gmra.mxu3 %v5481_v47  ;;  %1222 = vmatmul.bf16.gmra.mxu1 %v5461_v38 }
  0xaf   :  { %v5572_v36 = vpop.f32.mrf.mxu2 }
  0xb0   :  { %v276_v54 = vrot.slane %v5572_v36, 5 }
  0xb1   :  { %v5574_v37 = vpop.f32.mrf.mxu3  ;;  %v200_v41 = vpop.f32.mrf.mxu0 }
  0xb2   :  { %v263_v43 = vrot.slane %v200_v41, 5  ;;  %v492_v52 = vrot.slane %v5574_v37, 6 }
  0xb3   :  { %v416_v44 = vpop.f32.mrf.mxu1 }
  0xb4   :  { %v479_v45 = vrot.slane %v416_v44, 6  ;;  %v313_v46 = vsel %vm289_vm0, %v262_v42, %v263_v43 }
  0xb6   :  { %v527_v50 = vsel %vm503_vm1, %v478_v40, %v479_v45 }
  0xb7   :  { %v5588_v51 = vadd.f32 %v527_v50, %v313_v46  ;;  %v235_v53 = vpop.f32.mrf.mxu2 }
  0xb8   :  { %v277_v55 = vrot.slane %v235_v53, 5 }
  0xb9   :  { %v451_v56 = vpop.f32.mrf.mxu3  ;;  %v203_v60 = vpop.f32.mrf.mxu0 }
  0xba   :  { %v493_v59 = vrot.slane %v451_v56, 6  ;;  %v299_v61 = vsel %vm289_vm0, %v276_v54, %v277_v55  ;;  %v264_v62 = vrot.slane %v203_v60, 5 }
  0xbb   :  { %v419_v63 = vpop.f32.mrf.mxu1 }
  0xbc   :  { %v513_v0 = vsel %vm503_vm1, %v492_v52, %v493_v59  ;;  %v480_v1 = vrot.slane %v419_v63, 6  ;;  %v312_v2 = vsel %vm289_vm0, %v263_v43, %v264_v62  ;;  %642 = vmatmul.bf16.gmra.mxu2 %v5501_v57  ;;  %1064 = vmatmul.bf16.gmra.mxu0 %v5481_v47 }
  0xbd   :  { %v5604_v3 = vadd.f32 %v513_v0, %v299_v61 }
  0xbe   :  { %v526_v4 = vsel %vm503_vm1, %v479_v45, %v480_v1  ;;  %856 = vmatmul.bf16.gmra.mxu3 %v5501_v57  ;;  %1227 = vmatmul.bf16.gmra.mxu1 %v5481_v47 }
  0xbf   :  { %v5610_v5 = vadd.f32 %v526_v4, %v312_v2  ;;  %v238_v6 = vpop.f32.mrf.mxu2 }
  0xc0   :  { %v278_v9 = vrot.slane %v238_v6, 5 }
  0xc1   :  { %v454_v10 = vpop.f32.mrf.mxu3  ;;  %v205_v12 = vpop.f32.mrf.mxu0 }
  0xc2   :  { %v494_v11 = vrot.slane %v454_v10, 6  ;;  %v298_v13 = vsel %vm289_vm0, %v277_v55, %v278_v9  ;;  %v265_v14 = vrot.slane %v205_v12, 5 }
  0xc3   :  { %v421_v15 = vpop.f32.mrf.mxu1 }
  0xc4   :  { %v512_v16 = vsel %vm503_vm1, %v493_v59, %v494_v11  ;;  %v481_v17 = vrot.slane %v421_v15, 6  ;;  %v311_v21 = vsel %vm289_vm0, %v264_v62, %v265_v14  ;;  %v5160_v59 = vld [vmem:[#allocation2 + $0x220] sm:$0xff] }
  0xc5   :  { %v5616_v18 = vadd.f32 %v512_v16, %v298_v13  ;;  %1853 = vmatpush.bf16.msra.mxu0 %v5160_v59 }
  0xc6   :  { %v525_v25 = vsel %vm503_vm1, %v480_v1, %v481_v17 }
  0xc7   :  { %v5622_v28 = vadd.f32 %v525_v25, %v311_v21  ;;  %v240_v29 = vpop.f32.mrf.mxu2 }
  0xc8   :  { %v279_v30 = vrot.slane %v240_v29, 5 }
  0xc9   :  { %v456_v32 = vpop.f32.mrf.mxu3  ;;  %v208_v41 = vpop.f32.mrf.mxu0 }
  0xca   :  { %v495_v34 = vrot.slane %v456_v32, 6  ;;  %v297_v43 = vsel %vm289_vm0, %v278_v9, %v279_v30  ;;  %v266_v44 = vrot.slane %v208_v41, 5 }
  0xcb   :  { %v424_v45 = vpop.f32.mrf.mxu1 }
  0xcc   :  { %v511_v46 = vsel %vm503_vm1, %v494_v11, %v495_v34  ;;  %v482_v49 = vrot.slane %v424_v45, 6  ;;  %v310_v50 = vsel %vm289_vm0, %v265_v14, %v266_v44  ;;  %647 = vmatmul.bf16.gmra.mxu2 %v5521_v7  ;;  %1069 = vmatmul.bf16.gmra.mxu0 %v5501_v57  ;;  %v5151_v45 = vld [vmem:[#allocation2 + $0x1d8] sm:$0xff] }
  0xcd   :  { %v5632_v53 = vadd.f32 %v511_v46, %v297_v43  ;;  %1640 = vmatpush.bf16.msra.mxu3 %v5151_v45 }
  0xce   :  { %v524_v55 = vsel %vm503_vm1, %v481_v17, %v482_v49  ;;  %861 = vmatmul.bf16.gmra.mxu3 %v5521_v7  ;;  %1232 = vmatmul.bf16.gmra.mxu1 %v5501_v57 }
  0xcf   :  { %v5638_v56 = vadd.f32 %v524_v55, %v310_v50  ;;  %v243_v60 = vpop.f32.mrf.mxu2 }
  0xd0   :  { %v280_v61 = vrot.slane %v243_v60, 5 }
  0xd1   :  { %v459_v62 = vpop.f32.mrf.mxu3  ;;  %v210_v0 = vpop.f32.mrf.mxu0 }
  0xd2   :  { %v496_v63 = vrot.slane %v459_v62, 6  ;;  %v296_v1 = vsel %vm289_vm0, %v279_v30, %v280_v61  ;;  %v267_v2 = vrot.slane %v210_v0, 5 }
  0xd3   :  { %v426_v4 = vpop.f32.mrf.mxu1 }
  0xd4   :  { %v510_v6 = vsel %vm503_vm1, %v495_v34, %v496_v63  ;;  %v483_v9 = vrot.slane %v426_v4, 6  ;;  %v309_v11 = vsel %vm289_vm0, %v266_v44, %v267_v2  ;;  %v5143_v44 = vld [vmem:[#allocation2 + $0x198] sm:$0xff] }
  0xd5   :  { %v5644_v10 = vadd.f32 %v510_v6, %v296_v1  ;;  %1427 = vmatpush.bf16.msra.mxu2 %v5143_v44  ;;  %v5159_v6 = vld [vmem:[#allocation2 + $0x218] sm:$0xff] }
  0xd6   :  { %v523_v12 = vsel %vm503_vm1, %v482_v49, %v483_v9  ;;  %1854 = vmatpush.bf16.msra.mxu0 %v5159_v6  ;;  %v5150_v6 = vld [vmem:[#allocation2 + $0x1d0] sm:$0xff] }
  0xd7   :  { %v5650_v13 = vadd.f32 %v523_v12, %v309_v11  ;;  %v245_v14 = vpop.f32.mrf.mxu2  ;;  %1641 = vmatpush.bf16.msra.mxu3 %v5150_v6 }
  0xd8   :  { %v281_v15 = vrot.slane %v245_v14, 5 }
  0xd9   :  { %v461_v16 = vpop.f32.mrf.mxu3  ;;  %v213_v21 = vpop.f32.mrf.mxu0 }
  0xda   :  { %v497_v17 = vrot.slane %v461_v16, 6  ;;  %v295_v24 = vsel %vm289_vm0, %v280_v61, %v281_v15  ;;  %v268_v25 = vrot.slane %v213_v21, 5 }
  0xdb   :  { %v429_v27 = vpop.f32.mrf.mxu1 }
  0xdc   :  { %v509_v29 = vsel %vm503_vm1, %v496_v63, %v497_v17  ;;  %v484_v30 = vrot.slane %v429_v27, 6  ;;  %v308_v32 = vsel %vm289_vm0, %v267_v2, %v268_v25  ;;  %652 = vmatmul.bf16.gmra.mxu2 %v5538_v19  ;;  %1074 = vmatmul.bf16.gmra.mxu0 %v5521_v7 }
  0xdd   :  { %v5660_v34 = vadd.f32 %v509_v29, %v295_v24 }
  0xde   :  { %v522_v41 = vsel %vm503_vm1, %v483_v9, %v484_v30  ;;  %866 = vmatmul.bf16.gmra.mxu3 %v5538_v19  ;;  %1237 = vmatmul.bf16.gmra.mxu1 %v5521_v7 }
  0xdf   :  { %v5666_v43 = vadd.f32 %v522_v41, %v308_v32  ;;  %v248_v46 = vpop.f32.mrf.mxu2 }
  0xe0   :  { %v282_v49 = vrot.slane %v248_v46, 5 }
  0xe1   :  { %v464_v50 = vpop.f32.mrf.mxu3  ;;  %v215_v59 = vpop.f32.mrf.mxu0 }
  0xe2   :  { %v498_v55 = vrot.slane %v464_v50, 6  ;;  %v294_v60 = vsel %vm289_vm0, %v281_v15, %v282_v49  ;;  %v269_v61 = vrot.slane %v215_v59, 5 }
  0xe3   :  { %v431_v62 = vpop.f32.mrf.mxu1 }
  0xe4   :  { %v508_v63 = vsel %vm503_vm1, %v497_v17, %v498_v55  ;;  %v485_v0 = vrot.slane %v431_v62, 6  ;;  %v307_v2 = vsel %vm289_vm0, %v268_v25, %v269_v61 }
  0xe5   :  { %v5672_v1 = vadd.f32 %v508_v63, %v294_v60 }
  0xe6   :  { %v521_v4 = vsel %vm503_vm1, %v484_v30, %v485_v0 }
  0xe7   :  { %v5678_v9 = vadd.f32 %v521_v4, %v307_v2  ;;  %v250_v11 = vpop.f32.mrf.mxu2  ;;  %v5142_v4 = vld [vmem:[#allocation2 + $0x190] sm:$0xff] }
  0xe8   :  { %v283_v12 = vrot.slane %v250_v11, 5  ;;  %1428 = vmatpush.bf16.msra.mxu2 %v5142_v4 }
  0xe9   :  { %v466_v14 = vpop.f32.mrf.mxu3  ;;  %v218_v16 = vpop.f32.mrf.mxu0 }
  0xea   :  { %v499_v15 = vrot.slane %v466_v14, 6  ;;  %v293_v17 = vsel %vm289_vm0, %v282_v49, %v283_v12  ;;  %v270_v21 = vrot.slane %v218_v16, 5 }
  0xeb   :  { %v434_v24 = vpop.f32.mrf.mxu1 }
  0xec   :  { %v507_v25 = vsel %vm503_vm1, %v498_v55, %v499_v15  ;;  %v486_v27 = vrot.slane %v434_v24, 6  ;;  %v306_v29 = vsel %vm289_vm0, %v269_v61, %v270_v21  ;;  %657 = vmatmul.bf16.gmra.mxu2 %v5552_v26  ;;  %1079 = vmatmul.bf16.gmra.mxu0 %v5538_v19 }
  0xed   :  { %v5688_v30 = vadd.f32 %v507_v25, %v293_v17 }
  0xee   :  { %v520_v32 = vsel %vm503_vm1, %v485_v0, %v486_v27  ;;  %871 = vmatmul.bf16.gmra.mxu3 %v5552_v26  ;;  %1242 = vmatmul.bf16.gmra.mxu1 %v5538_v19 }
  0xef   :  { %v5694_v41 = vadd.f32 %v520_v32, %v306_v29  ;;  %v253_v44 = vpop.f32.mrf.mxu2 }
  0xf0   :  { %v284_v45 = vrot.slane %v253_v44, 5 }
  0xf1   :  { %v469_v46 = vpop.f32.mrf.mxu3  ;;  %v220_v50 = vpop.f32.mrf.mxu0 }
  0xf2   :  { %v500_v49 = vrot.slane %v469_v46, 6  ;;  %v292_v55 = vsel %vm289_vm0, %v283_v12, %v284_v45  ;;  %v271_v59 = vrot.slane %v220_v50, 5 }
  0xf3   :  { %v436_v60 = vpop.f32.mrf.mxu1 }
  0xf4   :  { %v506_v61 = vsel %vm503_vm1, %v499_v15, %v500_v49  ;;  %v487_v62 = vrot.slane %v436_v60, 6  ;;  %v305_v0 = vsel %vm289_vm0, %v270_v21, %v271_v59 }
  0xf5   :  { %v5700_v63 = vadd.f32 %v506_v61, %v292_v55 }
  0xf6   :  { %v519_v2 = vsel %vm503_vm1, %v486_v27, %v487_v62 }
  0xf7   :  { %v5706_v11 = vadd.f32 %v519_v2, %v305_v0  ;;  %v255_v14 = vpop.f32.mrf.mxu2 }
  0xf8   :  { %v285_v12 = vrot.slane %v255_v14, 5 }
  0xf9   :  { %v471_v16 = vpop.f32.mrf.mxu3  ;;  %v223_v15 = vpop.f32.mrf.mxu0 }
  0xfa   :  { %v501_v17 = vrot.slane %v471_v16, 6  ;;  %v291_v24 = vsel %vm289_vm0, %v284_v45, %v285_v12  ;;  %v272_v25 = vrot.slane %v223_v15, 5  ;;  %v5158_v45 = vld [vmem:[#allocation2 + $0x210] sm:$0xff] }
  0xfb   :  { %v439_v29 = vpop.f32.mrf.mxu1  ;;  %1855 = vmatpush.bf16.msra.mxu0 %v5158_v45 }
  0xfc   :  { %v505_v21 = vsel %vm503_vm1, %v500_v49, %v501_v17  ;;  %v488_v27 = vrot.slane %v439_v29, 6  ;;  %v304_v32 = vsel %vm289_vm0, %v271_v59, %v272_v25  ;;  %662 = vmatmul.bf16.gmra.mxu2 %v5443_v23  ;;  %1084 = vmatmul.bf16.gmra.mxu0 %v5552_v26 }
  0xfd   :  { %v5716_v44 = vadd.f32 %v505_v21, %v291_v24 }
  0xfe   :  { %v518_v46 = vsel %vm503_vm1, %v487_v62, %v488_v27  ;;  %876 = vmatmul.bf16.gmra.mxu3 %v5443_v23  ;;  %1247 = vmatmul.bf16.gmra.mxu1 %v5552_v26 }
  0xff   :  { %v5722_v50 = vadd.f32 %v518_v46, %v304_v32  ;;  %v258_v49 = vpop.f32.mrf.mxu2 }
 0x100   :  { %v286_v55 = vrot.slane %v258_v49, 5 }
 0x101   :  { %v474_v59 = vpop.f32.mrf.mxu3  ;;  %v225_v61 = vpop.f32.mrf.mxu0 }
 0x102   :  { %v502_v60 = vrot.slane %v474_v59, 6  ;;  %v290_v0 = vsel %vm289_vm0, %v285_v12, %v286_v55  ;;  %v314_v62 = vsel %vm289_vm0, %v286_v55, %v262_v42  ;;  %v273_v2 = vrot.slane %v225_v61, 5 }
 0x103   :  { %v441_v4 = vpop.f32.mrf.mxu1 }
 0x104   :  { %v504_v6 = vsel %vm503_vm1, %v501_v17, %v502_v60  ;;  %v528_v14 = vsel %vm503_vm1, %v502_v60, %v478_v40  ;;  %v489_v16 = vrot.slane %v441_v4, 6  ;;  %v303_v31 = vsel %vm289_vm0, %v272_v25, %v273_v2 }
 0x105   :  { %v5736_v15 = vadd.f32 %v504_v6, %v290_v0  ;;  %v5738_v24 = vadd.f32 %v528_v14, %v314_v62  ;;  %v5149_v0 = vld [vmem:[#allocation2 + $0x1c8] sm:$0xff] }
 0x106   :  { %v517_v42 = vsel %vm503_vm1, %v488_v27, %v489_v16  ;;  %v5141_v27 = vld [vmem:[#allocation2 + $0x188] sm:$0xff]  ;;  %1642 = vmatpush.bf16.msra.mxu3 %v5149_v0 }
 0x107   :  { %v5744_v12 = vadd.f32 %v517_v42, %v303_v31  ;;  %v260_v29 = vpop.f32.mrf.mxu2  ;;  %1429 = vmatpush.bf16.msra.mxu2 %v5141_v27 }
 0x109   :  { %v476_v17 = vpop.f32.mrf.mxu3  ;;  %v228_v21 = vpop.f32.mrf.mxu0 }
 0x10a   :  { %v274_v33 = vrot.slane %v228_v21, 5 }
 0x10b   :  { %v444_v32 = vpop.f32.mrf.mxu1 }
 0x10c   :  { %v490_v46 = vrot.slane %v444_v32, 6  ;;  %v302_v40 = vsel %vm289_vm0, %v273_v2, %v274_v33  ;;  %667 = vmatmul.bf16.gmra.mxu2 %v5463_v39  ;;  %1089 = vmatmul.bf16.gmra.mxu0 %v5443_v23 }
 0x10e   :  { %v516_v25 = vsel %vm503_vm1, %v489_v16, %v490_v46  ;;  %881 = vmatmul.bf16.gmra.mxu3 %v5463_v39  ;;  %1252 = vmatmul.bf16.gmra.mxu1 %v5443_v23 }
 0x10f   :  { %v5754_v45 = vadd.f32 %v516_v25, %v302_v40  ;;  %v5756_v49 = vpop.f32.mrf.mxu2 }
 0x111   :  { %v5758_v55 = vpop.f32.mrf.mxu3  ;;  %v230_v59 = vpop.f32.mrf.mxu0 }
 0x112   :  { %v275_v60 = vrot.slane %v230_v59, 5  ;;  %v7698_v36 = vrot.slane %v5758_v55, 7 }
 0x113   :  { %v446_v61 = vpop.f32.mrf.mxu1 }
 0x114   :  { %v491_v62 = vrot.slane %v446_v61, 6  ;;  %v300_v2 = vsel %vm289_vm0, %v275_v60, %v276_v54  ;;  %v301_v4 = vsel %vm289_vm0, %v274_v33, %v275_v60  ;;  %v7700_v54 = vrot.slane %v5756_v49, 7 }
 0x116   :  { %v514_v6 = vsel %vm503_vm1, %v491_v62, %v492_v52  ;;  %v515_v14 = vsel %vm503_vm1, %v490_v46, %v491_v62  ;;  %v5157_v52 = vld [vmem:[#allocation2 + $0x208] sm:$0xff] }
 0x117   :  { %v5772_v16 = vadd.f32 %v514_v6, %v300_v2  ;;  %v5774_v31 = vadd.f32 %v515_v14, %v301_v4  ;;  %v630_v42 = vpop.f32.mrf.mxu2  ;;  %1856 = vmatpush.bf16.msra.mxu0 %v5157_v52 }
 0x118   :  { %v693_v29 = vrot.slane %v630_v42, 7  ;;  %v5374_v42 = vmov 0  }
 0x119   :  { %v844_v17 = vpop.f32.mrf.mxu3  ;;  %v5779_v21 = vpop.f32.mrf.mxu0  ;;  %5260 = vset.pattern.permute.xlu0 %v5374_v42  ;;  %5261 = vset.pattern.permute.xlu1 %v5374_v42 }
 0x11a   :  { %v907_v37 = vrot.slane %v844_v17, 7  ;;  %v741_v32 = vsel %vm717_vm2, %v7700_v54, %v693_v29  ;;  %v62_v17 = vld [vmem:[%s7690_s1] sm:$0xff]  ;;  %5262 = vset.pattern.permute.xlu2 %v5374_v42 }
 0x11b   :  { %v5781_v33 = vpop.f32.mrf.mxu1  ;;  %v745_v40 = vadd.f32 %v741_v32, %v5588_v51  ;;  %2001 = vperm.xlu0 %5260, %v62_v17  }
 0x11c   :  { %v5791_v46 = vsel %vm717_vm2, %v7698_v36, %v907_v37  ;;  %672 = vmatmul.bf16.gmra.mxu2 %v5483_v48  ;;  %1094 = vmatmul.bf16.gmra.mxu0 %v5463_v39  ;;  %v7699_v60 = vrot.slane %v5781_v33, 1 }
 0x11e   :  { %886 = vmatmul.bf16.gmra.mxu3 %v5483_v48  ;;  %1257 = vmatmul.bf16.gmra.mxu1 %v5463_v39 }
 0x11f   :  { %v633_v25 = vpop.f32.mrf.mxu2 }
 0x120   :  { %v694_v27 = vrot.slane %v633_v25, 7  ;;  %v5140_v25 = vld [vmem:[#allocation2 + $0x180] sm:$0xff] }
 0x121   :  { %v847_v59 = vpop.f32.mrf.mxu3  ;;  %v5799_v0 = vpop.f32.mrf.mxu0  ;;  %1430 = vmatpush.bf16.msra.mxu2 %v5140_v25 }
 0x122   :  { %v908_v61 = vrot.slane %v847_v59, 7  ;;  %v740_v51 = vsel %vm717_vm2, %v693_v29, %v694_v27 }
 0x123   :  { %v1220_v62 = vpop.f32.mrf.mxu1  ;;  %v746_v6 = vadd.f32 %v740_v51, %v5610_v5 }
 0x124   :  { %v1283_v2 = vrot.slane %v1220_v62, 1  ;;  %v953_v4 = vsel %vm717_vm2, %v907_v37, %v908_v61 }
 0x125   :  { %v958_v14 = vadd.f32 %v953_v4, %v745_v40 }
 0x126   :  { %v5814_v29 = vsel %vm1307_vm3, %v7699_v60, %v1283_v2 }
 0x127   :  { %v635_v37 = vpop.f32.mrf.mxu2 }
 0x128   :  { %v695_v5 = vrot.slane %v635_v37, 7 }
 0x129   :  { %v849_v52 = vpop.f32.mrf.mxu3  ;;  %v1060_v40 = vpop.f32.mrf.mxu0 }
 0x12a   :  { %v909_v32 = vrot.slane %v849_v52, 7  ;;  %v1121_v59 = vadd.f32 %v1060_v40, %v958_v14  ;;  %v739_v62 = vsel %vm717_vm2, %v694_v27, %v695_v5  ;;  %v63_v14 = vld [vmem:[%s7690_s1 + $0x8] sm:$0xff]  ;;  %v5148_v27 = vld [vmem:[#allocation2 + $0x1c0] sm:$0xff] }
 0x12b   :  { %v1223_v51 = vpop.f32.mrf.mxu1  ;;  %v747_v60 = vadd.f32 %v739_v62, %v5622_v28  ;;  %2006 = vperm.xlu0 %5260, %v63_v14   ;;  %1643 = vmatpush.bf16.msra.mxu3 %v5148_v27  ;;  %v68_v14 = vld [vmem:[%s7690_s1 + $0x30] sm:$0xff] }
 0x12c   :  { %v1284_v4 = vrot.slane %v1223_v51, 1  ;;  %v952_v36 = vsel %vm717_vm2, %v908_v61, %v909_v32  ;;  %677 = vmatmul.bf16.gmra.mxu2 %v5503_v58  ;;  %1099 = vmatmul.bf16.gmra.mxu0 %v5483_v48 }
 0x12d   :  { %v959_v42 = vadd.f32 %v952_v36, %v746_v6 }
 0x12e   :  { %v5828_v17 = vsel %vm1307_vm3, %v1283_v2, %v1284_v4  ;;  %891 = vmatmul.bf16.gmra.mxu3 %v5503_v58  ;;  %1262 = vmatmul.bf16.gmra.mxu1 %v5483_v48 }
 0x12f   :  { %v638_v28 = vpop.f32.mrf.mxu2 }
 0x130   :  { %v696_v61 = vrot.slane %v638_v28, 7 }
 0x131   :  { %v852_v37 = vpop.f32.mrf.mxu3  ;;  %v1062_v36 = vpop.f32.mrf.mxu0 }
 0x132   :  { %v910_v52 = vrot.slane %v852_v37, 7  ;;  %v738_v6 = vsel %vm717_vm2, %v695_v5, %v696_v61  ;;  %v1122_v40 = vadd.f32 %v1062_v36, %v959_v42  ;;  %v5156_v37 = vld [vmem:[#allocation2 + $0x200] sm:$0xff] }
 0x133   :  { %v1225_v25 = vpop.f32.mrf.mxu1  ;;  %v748_v62 = vadd.f32 %v738_v6, %v5638_v56  ;;  %2031 = vperm.xlu0 %5260, %v68_v14   ;;  %1857 = vmatpush.bf16.msra.mxu0 %v5156_v37  ;;  %v71_v14 = vld [vmem:[%s7690_s1 + $0x48] sm:$0xff] }
 0x134   :  { %v1285_v51 = vrot.slane %v1225_v25, 1  ;;  %v951_v2 = vsel %vm717_vm2, %v909_v32, %v910_v52 }
 0x135   :  { %v960_v54 = vadd.f32 %v951_v2, %v747_v60 }
 0x136   :  { %v1329_v27 = vsel %vm1307_vm3, %v1284_v4, %v1285_v51 }
 0x137   :  { %v5842_v28 = vadd.f32 %v1329_v27, %v1121_v59  ;;  %v640_v5 = vpop.f32.mrf.mxu2 }
 0x138   :  { %v697_v42 = vrot.slane %v640_v5, 7 }
 0x139   :  { %v854_v36 = vpop.f32.mrf.mxu3  ;;  %v1065_v32 = vpop.f32.mrf.mxu0 }
 0x13a   :  { %v911_v25 = vrot.slane %v854_v36, 7  ;;  %v1123_v48 = vadd.f32 %v1065_v32, %v960_v54  ;;  %v737_v60 = vsel %vm717_vm2, %v696_v61, %v697_v42 }
 0x13b   :  { %v1228_v56 = vpop.f32.mrf.mxu1  ;;  %v749_v59 = vadd.f32 %v737_v60, %v5650_v13  ;;  %2046 = vperm.xlu0 %5260, %v71_v14  }
 0x13c   :  { %v1286_v6 = vrot.slane %v1228_v56, 1  ;;  %v950_v2 = vsel %vm717_vm2, %v910_v52, %v911_v25  ;;  %682 = vmatmul.bf16.gmra.mxu2 %v5523_v8  ;;  %1104 = vmatmul.bf16.gmra.mxu0 %v5503_v58 }
 0x13d   :  { %v961_v4 = vadd.f32 %v950_v2, %v748_v62 }
 0x13e   :  { %v1328_v54 = vsel %vm1307_vm3, %v1285_v51, %v1286_v6  ;;  %896 = vmatmul.bf16.gmra.mxu3 %v5523_v8  ;;  %1267 = vmatmul.bf16.gmra.mxu1 %v5503_v58 }
 0x13f   :  { %v5858_v61 = vadd.f32 %v1328_v54, %v1122_v40  ;;  %v643_v13 = vpop.f32.mrf.mxu2  ;;  %v74_v40 = vld [vmem:[%s7690_s1 + $0x60] sm:$0xff] }
 0x140   :  { %v698_v52 = vrot.slane %v643_v13, 7 }
 0x141   :  { %v857_v27 = vpop.f32.mrf.mxu3  ;;  %v1067_v5 = vpop.f32.mrf.mxu0 }
 0x142   :  { %v912_v37 = vrot.slane %v857_v27, 7  ;;  %v736_v62 = vsel %vm717_vm2, %v697_v42, %v698_v52  ;;  %v1124_v36 = vadd.f32 %v1067_v5, %v961_v4 }
 0x143   :  { %v1230_v32 = vpop.f32.mrf.mxu1  ;;  %v750_v60 = vadd.f32 %v736_v62, %v5666_v43  ;;  %2061 = vperm.xlu0 %5260, %v74_v40  }
 0x144   :  { %v1287_v56 = vrot.slane %v1230_v32, 1  ;;  %v949_v51 = vsel %vm717_vm2, %v911_v25, %v912_v37 }
 0x145   :  { %v962_v2 = vadd.f32 %v949_v51, %v749_v59 }
 0x146   :  { %v1327_v14 = vsel %vm1307_vm3, %v1286_v6, %v1287_v56  ;;  %v77_v6 = vld [vmem:[%s7690_s1 + $0x78] sm:$0xff] }
 0x147   :  { %v5870_v54 = vadd.f32 %v1327_v14, %v1123_v48  ;;  %v645_v42 = vpop.f32.mrf.mxu2 }
 0x148   :  { %v699_v4 = vrot.slane %v645_v42, 7 }
 0x149   :  { %v859_v13 = vpop.f32.mrf.mxu3  ;;  %v1070_v5 = vpop.f32.mrf.mxu0 }
 0x14a   :  { %v913_v27 = vrot.slane %v859_v13, 7  ;;  %v1125_v32 = vadd.f32 %v1070_v5, %v962_v2  ;;  %v735_v43 = vsel %vm717_vm2, %v698_v52, %v699_v4 }
 0x14b   :  { %v1233_v25 = vpop.f32.mrf.mxu1  ;;  %v751_v51 = vadd.f32 %v735_v43, %v5678_v9  ;;  %2076 = vperm.xlu0 %5260, %v77_v6  }
 0x14c   :  { %v1288_v59 = vrot.slane %v1233_v25, 1  ;;  %v948_v62 = vsel %vm717_vm2, %v912_v37, %v913_v27  ;;  %687 = vmatmul.bf16.gmra.mxu2 %v5540_v20  ;;  %1109 = vmatmul.bf16.gmra.mxu0 %v5523_v8 }
 0x14d   :  { %v963_v48 = vadd.f32 %v948_v62, %v750_v60 }
 0x14e   :  { %v1326_v2 = vsel %vm1307_vm3, %v1287_v56, %v1288_v59  ;;  %901 = vmatmul.bf16.gmra.mxu3 %v5540_v20  ;;  %1272 = vmatmul.bf16.gmra.mxu1 %v5523_v8 }
 0x14f   :  { %v5886_v52 = vadd.f32 %v1326_v2, %v1124_v36  ;;  %v648_v9 = vpop.f32.mrf.mxu2  ;;  %v80_v36 = vld [vmem:[%s7690_s1 + $0x90] sm:$0xff] }
 0x150   :  { %v700_v37 = vrot.slane %v648_v9, 7 }
 0x151   :  { %v862_v40 = vpop.f32.mrf.mxu3  ;;  %v1072_v42 = vpop.f32.mrf.mxu0 }
 0x152   :  { %v914_v14 = vrot.slane %v862_v40, 7  ;;  %v734_v60 = vsel %vm717_vm2, %v699_v4, %v700_v37  ;;  %v1126_v13 = vadd.f32 %v1072_v42, %v963_v48 }
 0x153   :  { %v1235_v5 = vpop.f32.mrf.mxu1  ;;  %v752_v43 = vadd.f32 %v734_v60, %v5694_v41  ;;  %2091 = vperm.xlu0 %5260, %v80_v36  }
 0x154   :  { %v1289_v25 = vrot.slane %v1235_v5, 1  ;;  %v947_v56 = vsel %vm717_vm2, %v913_v27, %v914_v14 }
 0x155   :  { %v964_v62 = vadd.f32 %v947_v56, %v751_v51 }
 0x156   :  { %v1325_v6 = vsel %vm1307_vm3, %v1288_v59, %v1289_v25  ;;  %v83_v59 = vld [vmem:[%s7690_s1 + $0xa8] sm:$0xff] }
 0x157   :  { %v5898_v2 = vadd.f32 %v1325_v6, %v1125_v32  ;;  %v650_v4 = vpop.f32.mrf.mxu2 }
 0x158   :  { %v701_v48 = vrot.slane %v650_v4, 7 }
 0x159   :  { %v864_v9 = vpop.f32.mrf.mxu3  ;;  %v1075_v42 = vpop.f32.mrf.mxu0 }
 0x15a   :  { %v915_v40 = vrot.slane %v864_v9, 7  ;;  %v1127_v5 = vadd.f32 %v1075_v42, %v964_v62  ;;  %v733_v41 = vsel %vm717_vm2, %v700_v37, %v701_v48 }
 0x15b   :  { %v1238_v27 = vpop.f32.mrf.mxu1  ;;  %v753_v56 = vadd.f32 %v733_v41, %v5706_v11  ;;  %2106 = vperm.xlu0 %5260, %v83_v59  }
 0x15c   :  { %v1290_v51 = vrot.slane %v1238_v27, 1  ;;  %v946_v60 = vsel %vm717_vm2, %v914_v14, %v915_v40  ;;  %1114 = vmatmul.bf16.gmra.mxu0 %v5540_v20  ;;  %1431 = vmatmul.bf16.vlgmr.msra.gmra.mxu2 %v5441_v22 }
 0x15d   :  { %v965_v32 = vadd.f32 %v946_v60, %v752_v43 }
 0x15e   :  { %v1324_v62 = vsel %vm1307_vm3, %v1289_v25, %v1290_v51  ;;  %1277 = vmatmul.bf16.gmra.mxu1 %v5540_v20  ;;  %1644 = vmatmul.bf16.vlgmr.msra.gmra.mxu3 %v5441_v22 }
 0x15f   :  { %v5914_v37 = vadd.f32 %v1324_v62, %v1126_v13  ;;  %v653_v11 = vpop.f32.mrf.mxu2  ;;  %v86_v13 = vld [vmem:[%s7690_s1 + $0xc0] sm:$0xff] }
 0x160   :  { %v702_v14 = vrot.slane %v653_v11, 7 }
 0x161   :  { %v867_v36 = vpop.f32.mrf.mxu3  ;;  %v1077_v4 = vpop.f32.mrf.mxu0 }
 0x162   :  { %v916_v6 = vrot.slane %v867_v36, 7  ;;  %v732_v43 = vsel %vm717_vm2, %v701_v48, %v702_v14  ;;  %v1128_v9 = vadd.f32 %v1077_v4, %v965_v32 }
 0x163   :  { %v1240_v42 = vpop.f32.mrf.mxu1  ;;  %v754_v41 = vadd.f32 %v732_v43, %v5722_v50  ;;  %2121 = vperm.xlu0 %5260, %v86_v13  }
 0x164   :  { %v1291_v27 = vrot.slane %v1240_v42, 1  ;;  %v945_v25 = vsel %vm717_vm2, %v915_v40, %v916_v6 }
 0x165   :  { %v966_v60 = vadd.f32 %v945_v25, %v753_v56 }
 0x166   :  { %v1323_v59 = vsel %vm1307_vm3, %v1290_v51, %v1291_v27 }
 0x167   :  { %v5926_v62 = vadd.f32 %v1323_v59, %v1127_v5  ;;  %v655_v48 = vpop.f32.mrf.mxu2 }
 0x168   :  { %v703_v32 = vrot.slane %v655_v48, 7 }
 0x169   :  { %v869_v11 = vpop.f32.mrf.mxu3  ;;  %v1080_v4 = vpop.f32.mrf.mxu0 }
 0x16a   :  { %v917_v36 = vrot.slane %v869_v11, 7  ;;  %v1129_v42 = vadd.f32 %v1080_v4, %v966_v60  ;;  %v731_v50 = vsel %vm717_vm2, %v702_v14, %v703_v32 }
 0x16b   :  { %v1243_v40 = vpop.f32.mrf.mxu1  ;;  %v755_v25 = vadd.f32 %v731_v50, %v5744_v12 }
 0x16c   :  { %v1292_v56 = vrot.slane %v1243_v40, 1  ;;  %v944_v43 = vsel %vm717_vm2, %v916_v6, %v917_v36  ;;  %1436 = vmatmul.bf16.gmra.mxu2 %v5461_v38  ;;  %1858 = vmatmul.bf16.vlgmr.msra.gmra.mxu0 %v5441_v22 }
 0x16d   :  { %v967_v5 = vadd.f32 %v944_v43, %v754_v41 }
 0x16e   :  { %v1322_v51 = vsel %vm1307_vm3, %v1291_v27, %v1292_v56  ;;  %1649 = vmatmul.bf16.gmra.mxu3 %v5461_v38 }
 0x16f   :  { %v5938_v60 = vadd.f32 %v1322_v51, %v1128_v9  ;;  %v658_v13 = vpop.f32.mrf.mxu2 }
 0x170   :  { %v704_v14 = vrot.slane %v658_v13, 7 }
 0x171   :  { %7759 = vst [vmem:[#allocation12_spill] sm:$0xff] %v5938_v60  ;;  %v872_v59 = vpop.f32.mrf.mxu3  ;;  %v1082_v11 = vpop.f32.mrf.mxu0 }
 0x172   :  { %v918_v48 = vrot.slane %v872_v59, 7  ;;  %v730_v12 = vsel %vm717_vm2, %v703_v32, %v704_v14  ;;  %v1130_v6 = vadd.f32 %v1082_v11, %v967_v5 }
 0x173   :  { %v1245_v4 = vpop.f32.mrf.mxu1  ;;  %v756_v27 = vadd.f32 %v730_v12, %v5754_v45 }
 0x174   :  { %v1293_v40 = vrot.slane %v1245_v4, 1  ;;  %v943_v22 = vsel %vm717_vm2, %v917_v36, %v918_v48 }
 0x175   :  { %v968_v41 = vadd.f32 %v943_v22, %v755_v25 }
 0x176   :  { %v1321_v9 = vsel %vm1307_vm3, %v1292_v56, %v1293_v40  ;;  %v64_v56 = vld [vmem:[%s7690_s1 + $0x10] sm:$0xff] }
 0x177   :  { %v5947_v50 = vadd.f32 %v1321_v9, %v1129_v42  ;;  %v660_v43 = vpop.f32.mrf.mxu2  ;;  %2011 = vperm.xlu1 %5261, %v64_v56  }
 0x178   :  { %v705_v51 = vrot.slane %v660_v43, 7 }
 0x179   :  { %v874_v13 = vpop.f32.mrf.mxu3  ;;  %v1085_v60 = vpop.f32.mrf.mxu0 }
 0x17a   :  { %v919_v59 = vrot.slane %v874_v13, 7  ;;  %v1131_v32 = vadd.f32 %v1085_v60, %v968_v41  ;;  %v729_v11 = vsel %vm717_vm2, %v704_v14, %v705_v51 }
 0x17b   :  { %v1248_v5 = vpop.f32.mrf.mxu1  ;;  %v757_v36 = vadd.f32 %v729_v11, %v5774_v31 }
 0x17c   :  { %v1294_v4 = vrot.slane %v1248_v5, 1  ;;  %v942_v45 = vsel %vm717_vm2, %v918_v48, %v919_v59  ;;  %1441 = vmatmul.bf16.gmra.mxu2 %v5481_v47  ;;  %1863 = vmatmul.bf16.gmra.mxu0 %v5461_v38 }
 0x17d   :  { %v969_v42 = vadd.f32 %v942_v45, %v756_v27 }
 0x17e   :  { %v1320_v25 = vsel %vm1307_vm3, %v1293_v40, %v1294_v4  ;;  %1654 = vmatmul.bf16.gmra.mxu3 %v5481_v47 }
 0x17f   :  { %v5962_v60 = vadd.f32 %v1320_v25, %v1130_v6  ;;  %v663_v14 = vpop.f32.mrf.mxu2  ;;  %v65_v6 = vld [vmem:[%s7690_s1 + $0x18] sm:$0xff] }
 0x180   :  { %v706_v48 = vrot.slane %v663_v14, 7  ;;  %2016 = vperm.xlu1 %5261, %v65_v6  }
 0x181   :  { %v877_v31 = vpop.f32.mrf.mxu3  ;;  %v1087_v22 = vpop.f32.mrf.mxu0 }
 0x182   :  { %v920_v12 = vrot.slane %v877_v31, 7  ;;  %v728_v38 = vsel %vm717_vm2, %v705_v51, %v706_v48  ;;  %v1132_v27 = vadd.f32 %v1087_v22, %v969_v42 }
 0x183   :  { %v1250_v41 = vpop.f32.mrf.mxu1  ;;  %v758_v40 = vadd.f32 %v728_v38, %v5772_v16 }
 0x184   :  { %v1295_v9 = vrot.slane %v1250_v41, 1  ;;  %v941_v43 = vsel %vm717_vm2, %v919_v59, %v920_v12 }
 0x185   :  { %v970_v13 = vadd.f32 %v941_v43, %v757_v36 }
 0x186   :  { %v1319_v5 = vsel %vm1307_vm3, %v1294_v4, %v1295_v9 }
 0x187   :  { %v5974_v11 = vadd.f32 %v1319_v5, %v1131_v32  ;;  %v665_v51 = vpop.f32.mrf.mxu2 }
 0x188   :  { %v707_v45 = vrot.slane %v665_v51, 7 }
 0x189   :  { %v879_v42 = vpop.f32.mrf.mxu3  ;;  %v1090_v25 = vpop.f32.mrf.mxu0 }
 0x18a   :  { %v921_v56 = vrot.slane %v879_v42, 7  ;;  %v1133_v14 = vadd.f32 %v1090_v25, %v970_v13  ;;  %v727_v16 = vsel %vm717_vm2, %v706_v48, %v707_v45 }
 0x18b   :  { %v1253_v59 = vpop.f32.mrf.mxu1  ;;  %v759_v22 = vadd.f32 %v727_v16, %v5604_v3 }
 0x18c   :  { %v1296_v36 = vrot.slane %v1253_v59, 1  ;;  %v940_v31 = vsel %vm717_vm2, %v920_v12, %v921_v56  ;;  %1446 = vmatmul.bf16.gmra.mxu2 %v5501_v57  ;;  %1868 = vmatmul.bf16.gmra.mxu0 %v5481_v47 }
 0x18d   :  { %v971_v32 = vadd.f32 %v940_v31, %v758_v40 }
 0x18e   :  { %v1318_v4 = vsel %vm1307_vm3, %v1295_v9, %v1296_v36  ;;  %1659 = vmatmul.bf16.gmra.mxu3 %v5501_v57 }
 0x18f   :  { %v5986_v38 = vadd.f32 %v1318_v4, %v1132_v27  ;;  %v668_v41 = vpop.f32.mrf.mxu2 }
 0x190   :  { %v708_v48 = vrot.slane %v668_v41, 7 }
 0x191   :  { %v882_v43 = vpop.f32.mrf.mxu3  ;;  %v1092_v6 = vpop.f32.mrf.mxu0 }
 0x192   :  { %v922_v13 = vrot.slane %v882_v43, 7  ;;  %v726_v3 = vsel %vm717_vm2, %v707_v45, %v708_v48  ;;  %v1134_v12 = vadd.f32 %v1092_v6, %v971_v32 }
 0x193   :  { %v1255_v5 = vpop.f32.mrf.mxu1  ;;  %v760_v9 = vadd.f32 %v726_v3, %v5616_v18 }
 0x194   :  { %v1297_v51 = vrot.slane %v1255_v5, 1  ;;  %v939_v47 = vsel %vm717_vm2, %v921_v56, %v922_v13 }
 0x195   :  { %v972_v40 = vadd.f32 %v939_v47, %v759_v22 }
 0x196   :  { %v1317_v27 = vsel %vm1307_vm3, %v1296_v36, %v1297_v51 }
 0x197   :  { %v5995_v42 = vadd.f32 %v1317_v27, %v1133_v14  ;;  %v670_v25 = vpop.f32.mrf.mxu2 }
 0x198   :  { %v709_v59 = vrot.slane %v670_v25, 7  ;;  %v69_v25 = vld [vmem:[%s7690_s1 + $0x38] sm:$0xff] }
 0x199   :  { %v884_v16 = vpop.f32.mrf.mxu3  ;;  %v1095_v4 = vpop.f32.mrf.mxu0  ;;  %2036 = vperm.xlu1 %5261, %v69_v25  }
 0x19a   :  { %v923_v31 = vrot.slane %v884_v16, 7  ;;  %v1135_v45 = vadd.f32 %v1095_v4, %v972_v40  ;;  %v725_v41 = vsel %vm717_vm2, %v708_v48, %v709_v59 }
 0x19b   :  { %v1258_v32 = vpop.f32.mrf.mxu1  ;;  %v761_v56 = vadd.f32 %v725_v41, %v5632_v53 }
 0x19c   :  { %v1298_v43 = vrot.slane %v1258_v32, 1  ;;  %v938_v18 = vsel %vm717_vm2, %v922_v13, %v923_v31  ;;  %1451 = vmatmul.bf16.gmra.mxu2 %v5521_v7  ;;  %1873 = vmatmul.bf16.gmra.mxu0 %v5501_v57 }
 0x19d   :  { %v973_v14 = vadd.f32 %v938_v18, %v760_v9 }
 0x19e   :  { %v1316_v36 = vsel %vm1307_vm3, %v1297_v51, %v1298_v43  ;;  %1664 = vmatmul.bf16.gmra.mxu3 %v5521_v7 }
 0x19f   :  { %v6007_v22 = vadd.f32 %v1316_v36, %v1134_v12  ;;  %v673_v6 = vpop.f32.mrf.mxu2  ;;  %v66_v12 = vld [vmem:[%s7690_s1 + $0x20] sm:$0xff] }
 0x1a0   :  { %v710_v48 = vrot.slane %v673_v6, 7  ;;  %2021 = vperm.xlu2 %5262, %v66_v12  }
 0x1a1   :  { %v887_v3 = vpop.f32.mrf.mxu3  ;;  %v1097_v47 = vpop.f32.mrf.mxu0 }
 0x1a2   :  { %v924_v5 = vrot.slane %v887_v3, 7  ;;  %v724_v53 = vsel %vm717_vm2, %v709_v59, %v710_v48  ;;  %v1136_v13 = vadd.f32 %v1097_v47, %v973_v14  ;;  %v67_v3 = vld [vmem:[%s7690_s1 + $0x28] sm:$0xff] }
 0x1a3   :  { %v1260_v40 = vpop.f32.mrf.mxu1  ;;  %v762_v51 = vadd.f32 %v724_v53, %v5644_v10 }
 0x1a4   :  { %v1299_v27 = vrot.slane %v1260_v40, 1  ;;  %v937_v57 = vsel %vm717_vm2, %v923_v31, %v924_v5 }
 0x1a5   :  { %v974_v9 = vadd.f32 %v937_v57, %v761_v56 }
 0x1a6   :  { %v1315_v59 = vsel %vm1307_vm3, %v1298_v43, %v1299_v27 }
 0x1a7   :  { %v6022_v16 = vadd.f32 %v1315_v59, %v1135_v45  ;;  %v675_v4 = vpop.f32.mrf.mxu2 }
 0x1a8   :  { %v711_v31 = vrot.slane %v675_v4, 7  ;;  %2026 = vperm.xlu2 %5262, %v67_v3  }
 0x1a9   :  { %v889_v32 = vpop.f32.mrf.mxu3  ;;  %v1100_v41 = vpop.f32.mrf.mxu0 }
 0x1aa   :  { %v925_v10 = vrot.slane %v889_v32, 7  ;;  %v1137_v18 = vadd.f32 %v1100_v41, %v974_v9  ;;  %v723_v14 = vsel %vm717_vm2, %v710_v48, %v711_v31 }
 0x1ab   :  { %v1263_v56 = vpop.f32.mrf.mxu1  ;;  %v763_v43 = vadd.f32 %v723_v14, %v5660_v34 }
 0x1ac   :  { %v1300_v36 = vrot.slane %v1263_v56, 1  ;;  %v936_v6 = vsel %vm717_vm2, %v924_v5, %v925_v10  ;;  %1456 = vmatmul.bf16.gmra.mxu2 %v5538_v19  ;;  %1878 = vmatmul.bf16.gmra.mxu0 %v5521_v7 }
 0x1ad   :  { %v975_v45 = vadd.f32 %v936_v6, %v762_v51 }
 0x1ae   :  { %v1314_v47 = vsel %vm1307_vm3, %v1299_v27, %v1300_v36  ;;  %1669 = vmatmul.bf16.gmra.mxu3 %v5538_v19 }
 0x1af   :  { %v6037_v48 = vadd.f32 %v1314_v47, %v1136_v13  ;;  %v678_v5 = vpop.f32.mrf.mxu2 }
 0x1b0   :  { %v712_v53 = vrot.slane %v678_v5, 7 }
 0x1b1   :  { %v892_v34 = vpop.f32.mrf.mxu3  ;;  %v1102_v57 = vpop.f32.mrf.mxu0 }
 0x1b2   :  { %v926_v40 = vrot.slane %v892_v34, 7  ;;  %v722_v7 = vsel %vm717_vm2, %v711_v31, %v712_v53  ;;  %v1138_v51 = vadd.f32 %v1102_v57, %v975_v45 }
 0x1b3   :  { %v1265_v9 = vpop.f32.mrf.mxu1  ;;  %v764_v27 = vadd.f32 %v722_v7, %v5672_v1 }
 0x1b4   :  { %v1301_v12 = vrot.slane %v1265_v9, 1  ;;  %v935_v25 = vsel %vm717_vm2, %v925_v10, %v926_v40 }
 0x1b5   :  { %v976_v59 = vadd.f32 %v935_v25, %v763_v43  ;;  %v72_v43 = vld [vmem:[%s7690_s1 + $0x50] sm:$0xff] }
 0x1b6   :  { %v1313_v13 = vsel %vm1307_vm3, %v1300_v36, %v1301_v12  ;;  %2051 = vperm.xlu1 %5261, %v72_v43  }
 0x1b7   :  { %v6046_v4 = vadd.f32 %v1313_v13, %v1137_v18  ;;  %v680_v32 = vpop.f32.mrf.mxu2 }
 0x1b8   :  { %v713_v41 = vrot.slane %v680_v32, 7 }
 0x1b9   :  { %v894_v56 = vpop.f32.mrf.mxu3  ;;  %v1105_v6 = vpop.f32.mrf.mxu0 }
 0x1ba   :  { %v927_v14 = vrot.slane %v894_v56, 7  ;;  %v1139_v31 = vadd.f32 %v1105_v6, %v976_v59  ;;  %v721_v3 = vsel %vm717_vm2, %v712_v53, %v713_v41 }
 0x1bb   :  { %v1268_v45 = vpop.f32.mrf.mxu1  ;;  %v765_v10 = vadd.f32 %v721_v3, %v5688_v30 }
 0x1bc   :  { %v1302_v47 = vrot.slane %v1268_v45, 1  ;;  %v934_v1 = vsel %vm717_vm2, %v926_v40, %v927_v14  ;;  %1461 = vmatmul.bf16.gmra.mxu2 %v5552_v26  ;;  %1883 = vmatmul.bf16.gmra.mxu0 %v5538_v19  ;;  %v70_v19 = vld [vmem:[%s7690_s1 + $0x40] sm:$0xff] }
 0x1bd   :  { %v977_v18 = vadd.f32 %v934_v1, %v764_v27  ;;  %2041 = vperm.xlu2 %5262, %v70_v19   ;;  %v7760_v19 = vrot.slane %v5756_v49, 7 }
 0x1be   :  { %v1312_v36 = vsel %vm1307_vm3, %v1301_v12, %v1302_v47  ;;  %1674 = vmatmul.bf16.gmra.mxu3 %v5552_v26 }
 0x1bf   :  { %v6061_v5 = vadd.f32 %v1312_v36, %v1138_v51  ;;  %v683_v53 = vpop.f32.mrf.mxu2 }
 0x1c0   :  { %v714_v34 = vrot.slane %v683_v53, 7 }
 0x1c1   :  { %v897_v30 = vpop.f32.mrf.mxu3  ;;  %v1107_v57 = vpop.f32.mrf.mxu0 }
 0x1c2   :  { %v928_v40 = vrot.slane %v897_v30, 7  ;;  %v720_v7 = vsel %vm717_vm2, %v713_v41, %v714_v34  ;;  %v1140_v9 = vadd.f32 %v1107_v57, %v977_v18 }
 0x1c3   :  { %v1270_v12 = vpop.f32.mrf.mxu1  ;;  %v766_v27 = vadd.f32 %v720_v7, %v5700_v63 }
 0x1c4   :  { %v1303_v25 = vrot.slane %v1270_v12, 1  ;;  %v933_v51 = vsel %vm717_vm2, %v927_v14, %v928_v40 }
 0x1c5   :  { %v978_v59 = vadd.f32 %v933_v51, %v765_v10  ;;  %v75_v10 = vld [vmem:[%s7690_s1 + $0x68] sm:$0xff] }
 0x1c6   :  { %v1311_v13 = vsel %vm1307_vm3, %v1302_v47, %v1303_v25  ;;  %2066 = vperm.xlu1 %5261, %v75_v10  }
 0x1c7   :  { %v6073_v32 = vadd.f32 %v1311_v13, %v1139_v31  ;;  %v685_v56 = vpop.f32.mrf.mxu2 }
 0x1c8   :  { %v715_v6 = vrot.slane %v685_v56, 7 }
 0x1c9   :  { %v899_v45 = vpop.f32.mrf.mxu3  ;;  %v1110_v41 = vpop.f32.mrf.mxu0 }
 0x1ca   :  { %v929_v3 = vrot.slane %v899_v45, 7  ;;  %v1141_v1 = vadd.f32 %v1110_v41, %v978_v59  ;;  %v719_v36 = vsel %vm717_vm2, %v714_v34, %v715_v6 }
 0x1cb   :  { %v1273_v18 = vpop.f32.mrf.mxu1  ;;  %v767_v14 = vadd.f32 %v719_v36, %v5716_v44 }
 0x1cc   :  { %v1304_v43 = vrot.slane %v1273_v18, 1  ;;  %v932_v63 = vsel %vm717_vm2, %v928_v40, %v929_v3  ;;  %1466 = vmatmul.bf16.gmra.mxu2 %v5443_v23  ;;  %1888 = vmatmul.bf16.gmra.mxu0 %v5552_v26 }
 0x1cd   :  { %v979_v31 = vadd.f32 %v932_v63, %v766_v27  ;;  %v7761_v27 = vrot.slane %v5758_v55, 7 }
 0x1ce   :  { %v1310_v47 = vsel %vm1307_vm3, %v1303_v25, %v1304_v43  ;;  %1679 = vmatmul.bf16.gmra.mxu3 %v5443_v23 }
 0x1cf   :  { %v6088_v53 = vadd.f32 %v1310_v47, %v1140_v9  ;;  %v688_v34 = vpop.f32.mrf.mxu2 }
 0x1d0   :  { %v716_v30 = vrot.slane %v688_v34, 7 }
 0x1d1   :  { %v902_v44 = vpop.f32.mrf.mxu3  ;;  %v1112_v57 = vpop.f32.mrf.mxu0 }
 0x1d2   :  { %v930_v40 = vrot.slane %v902_v44, 7  ;;  %v718_v26 = vsel %vm717_vm2, %v715_v6, %v716_v30  ;;  %v742_v7 = vsel %vm717_vm2, %v716_v30, %v7760_v19  ;;  %v1142_v12 = vadd.f32 %v1112_v57, %v979_v31  ;;  %v76_v19 = vld [vmem:[%s7690_s1 + $0x70] sm:$0xff] }
 0x1d3   :  { %v1275_v25 = vpop.f32.mrf.mxu1  ;;  %v743_v51 = vadd.f32 %v718_v26, %v5736_v15  ;;  %v744_v9 = vadd.f32 %v742_v7, %v5738_v24  ;;  %v78_v15 = vld [vmem:[%s7690_s1 + $0x80] sm:$0xff] }
 0x1d4   :  { %v955_v59 = vsel %vm717_vm2, %v930_v40, %v7761_v27  ;;  %v1305_v13 = vrot.slane %v1275_v25, 1  ;;  %v931_v56 = vsel %vm717_vm2, %v929_v3, %v930_v40  ;;  %2081 = vperm.xlu1 %5261, %v78_v15   ;;  %v84_v40 = vld [vmem:[%s7690_s1 + $0xb0] sm:$0xff] }
 0x1d5   :  { %v957_v49 = vadd.f32 %v5791_v46, %v744_v9  ;;  %v956_v6 = vadd.f32 %v955_v59, %v743_v51  ;;  %v980_v41 = vadd.f32 %v931_v56, %v767_v14  ;;  %v7763_v56 = vld [vmem:[#allocation11_spill] sm:$0xff] }
 0x1d6   :  { %v1309_v45 = vsel %vm1307_vm3, %v1304_v43, %v1305_v13 }
 0x1d7   :  { %v6110_v24 = vadd.f32 %v1309_v45, %v1141_v1  ;;  %v1120_v55 = vadd.f32 %v5799_v0, %v957_v49  ;;  %v1119_v18 = vadd.f32 %v5779_v21, %v956_v6  ;;  %v690_v36 = vpop.f32.mrf.mxu2  ;;  %v7762_v21 = vrot.slane %v5781_v33, 1  ;;  %v79_v6 = vld [vmem:[%s7690_s1 + $0x88] sm:$0xff] }
 0x1d9   :  { %v904_v3 = vpop.f32.mrf.mxu3  ;;  %v1115_v63 = vpop.f32.mrf.mxu0  ;;  %v1333_v46 = vadd.f32 %v5814_v29, %v1119_v18  ;;  %v6116_v31 = vadd.f32 %v5828_v17, %v1120_v55  ;;  %v73_v29 = vld [vmem:[%s7690_s1 + $0x58] sm:$0xff] }
 0x1da   :  { %v1143_v43 = vadd.f32 %v1115_v63, %v980_v41  ;;  %v81_v17 = vld [vmem:[%s7690_s1 + $0x98] sm:$0xff]  ;;  %2056 = vperm.xlu2 %5262, %v73_v29  }
 0x1db   :  { %v1278_v14 = vpop.f32.mrf.mxu1 }
 0x1dc   :  { %v1306_v47 = vrot.slane %v1278_v14, 1  ;;  %1471 = vmatmul.bf16.gmra.mxu2 %v5463_v39  ;;  %1893 = vmatmul.bf16.gmra.mxu0 %v5443_v23 }
 0x1dd   :  { %2096 = vperm.xlu1 %5261, %v81_v17  }
 0x1de   :  { %v1308_v0 = vsel %vm1307_vm3, %v1305_v13, %v1306_v47  ;;  %v1332_v1 = vsel %vm1307_vm3, %v1306_v47, %v7762_v21  ;;  %1684 = vmatmul.bf16.gmra.mxu3 %v5463_v39  ;;  %v82_v21 = vld [vmem:[%s7690_s1 + $0xa0] sm:$0xff] }
 0x1df   :  { %v6133_v10 = vadd.f32 %v1308_v0, %v1142_v12  ;;  %v1357_v23 = vadd.f32 %v1332_v1, %v1143_v43  ;;  %v6135_v34 = vpop.f32.mrf.mxu2 }
 0x1e0   :  { %v7705_v7 = vrot.slane %v6135_v34, 1 }
 0x1e1   :  { %v6137_v33 = vpop.f32.mrf.mxu3  ;;  %v1117_v30 = vpop.f32.mrf.mxu0 }
 0x1e2   :  { %v7704_v57 = vrot.slane %v6137_v33, 2  ;;  %2071 = vperm.xlu2 %5262, %v76_v19  }
 0x1e3   :  { %v1280_v44 = vpop.f32.mrf.mxu1 }
 0x1e5   :  { %2111 = vperm.xlu1 %5261, %v84_v40  }
 0x1e7   :  { %v1434_v26 = vpop.f32.mrf.mxu2 }
 0x1e8   :  { %v1497_v12 = vrot.slane %v1434_v26, 1 }
 0x1e9   :  { %v1647_v25 = vpop.f32.mrf.mxu3  ;;  %v6148_v9 = vpop.f32.mrf.mxu0 }
 0x1ea   :  { %v1710_v51 = vrot.slane %v1647_v25, 2  ;;  %v1544_v27 = vsel %vm1307_vm3, %v7705_v7, %v1497_v12  ;;  %2086 = vperm.xlu2 %5262, %v79_v6   ;;  %v7703_v36 = vrot.slane %v6148_v9, 3 }
 0x1eb   :  { %v1570_v59 = vadd.f32 %v1544_v27, %v1357_v23 }
 0x1ec   :  { %v1758_v13 = vsel %vm1734_vm4, %v7704_v57, %v1710_v51  ;;  %1476 = vmatmul.bf16.gmra.mxu2 %v7763_v56  ;;  %1898 = vmatmul.bf16.gmra.mxu0 %v5463_v39 }
 0x1ed   :  { %v1784_v49 = vadd.f32 %v1758_v13, %v1570_v59 }
 0x1ee   :  { %1689 = vmatmul.bf16.gmra.mxu3 %v7763_v56 }
 0x1ef   :  { %v1437_v45 = vpop.f32.mrf.mxu2 }
 0x1f0   :  { %v1498_v41 = vrot.slane %v1437_v45, 1 }
 0x1f1   :  { %v1650_v15 = vpop.f32.mrf.mxu3  ;;  %v1861_v18 = vpop.f32.mrf.mxu0 }
 0x1f2   :  { %v1711_v55 = vrot.slane %v1650_v15, 2  ;;  %v1543_v39 = vsel %vm1307_vm3, %v1497_v12, %v1498_v41  ;;  %v1924_v3 = vrot.slane %v1861_v18, 3  ;;  %2101 = vperm.xlu2 %5262, %v82_v21  }
 0x1f3   :  { %v1546_v63 = vadd.f32 %v1543_v39, %v1333_v46 }
 0x1f4   :  { %v1757_v43 = vsel %vm1734_vm4, %v1710_v51, %v1711_v55  ;;  %v1972_v14 = vsel %vm1948_vm5, %v7703_v36, %v1924_v3  ;;  %v5171_v51 = vld [vmem:[#allocation5 + $0x38] sm:$0xff] }
 0x1f5   :  { %v1760_v47 = vadd.f32 %v1757_v43, %v1546_v63  ;;  %v6174_v0 = vadd.f32 %v1972_v14, %v1784_v49  ;;  %2435 = vmatpush.bf16.msra.mxu1 %v5171_v51 }
 0x1f7   :  { %v1439_v1 = vpop.f32.mrf.mxu2 }
 0x1f8   :  { %v1499_v29 = vrot.slane %v1439_v1, 1 }
 0x1f9   :  { %v1652_v17 = vpop.f32.mrf.mxu3  ;;  %v1864_v23 = vpop.f32.mrf.mxu0 }
 0x1fa   :  { %v1712_v46 = vrot.slane %v1652_v17, 2  ;;  %v1542_v30 = vsel %vm1307_vm3, %v1498_v41, %v1499_v29  ;;  %v1925_v44 = vrot.slane %v1864_v23, 3 }
 0x1fb   :  { %v1547_v40 = vadd.f32 %v1542_v30, %v6116_v31  ;;  %v85_v31 = vld [vmem:[%s7690_s1 + $0xb8] sm:$0xff]  ;;  %s5375_s1 = smov [#allocation7]  }
 0x1fc   :  { %v1756_v26 = vsel %vm1734_vm4, %v1711_v55, %v1712_v46  ;;  %v1971_v19 = vsel %vm1948_vm5, %v1924_v3, %v1925_v44  ;;  %1481 = vmatmul.bf16.gmra.mxu2 %v5503_v58  ;;  %1903 = vmatmul.bf16.gmra.mxu0 %v7763_v56  ;;  %s4500_s19 = sshll.u32 %s5375_s1, 4  ;;  %s4501_s19 = int_to_ptr.vmem [resolvable:$true] %s4500_s19 }
 0x1fd   :  { %v1761_v12 = vadd.f32 %v1756_v26, %v1547_v40  ;;  %v6188_v25 = vadd.f32 %v1971_v19, %v1760_v47  ;;  %2116 = vperm.xlu2 %5262, %v85_v31  }
 0x1fe   :  { %1694 = vmatmul.bf16.gmra.mxu3 %v5503_v58 }
 0x1ff   :  { %v1442_v27 = vpop.f32.mrf.mxu2 }
 0x200   :  { %v1500_v59 = vrot.slane %v1442_v27, 1 }
 0x201   :  { %v1655_v13 = vpop.f32.mrf.mxu3  ;;  %v1866_v6 = vpop.f32.mrf.mxu0 }
 0x202   :  { %v1713_v49 = vrot.slane %v1655_v13, 2  ;;  %v1541_v56 = vsel %vm1307_vm3, %v1499_v29, %v1500_v59  ;;  %v1926_v45 = vrot.slane %v1866_v6, 3 }
 0x203   :  { %v1548_v41 = vadd.f32 %v1541_v56, %v5842_v28 }
 0x204   :  { %v1755_v15 = vsel %vm1734_vm4, %v1712_v46, %v1713_v49  ;;  %v1970_v55 = vsel %vm1948_vm5, %v1925_v44, %v1926_v45 }
 0x205   :  { %v1762_v18 = vadd.f32 %v1755_v15, %v1548_v41  ;;  %v6201_v39 = vadd.f32 %v1970_v55, %v1761_v12 }
 0x207   :  { %v1444_v3 = vpop.f32.mrf.mxu2 }
 0x208   :  { %v1501_v63 = vrot.slane %v1444_v3, 1 }
 0x209   :  { %v1657_v43 = vpop.f32.mrf.mxu3  ;;  %v1869_v47 = vpop.f32.mrf.mxu0 }
 0x20a   :  { %v1714_v14 = vrot.slane %v1657_v43, 2  ;;  %v1540_v21 = vsel %vm1307_vm3, %v1500_v59, %v1501_v63  ;;  %v1927_v1 = vrot.slane %v1869_v47, 3  ;;  %v5170_v43 = vld [vmem:[#allocation5 + $0x30] sm:$0xff] }
 0x20b   :  { %v1549_v28 = vadd.f32 %v1540_v21, %v5858_v61  ;;  %2436 = vmatpush.bf16.msra.mxu1 %v5170_v43 }
 0x20c   :  { %v1754_v29 = vsel %vm1734_vm4, %v1713_v49, %v1714_v14  ;;  %v1969_v17 = vsel %vm1948_vm5, %v1926_v45, %v1927_v1  ;;  %1486 = vmatmul.bf16.gmra.mxu2 %v5523_v8  ;;  %1908 = vmatmul.bf16.gmra.mxu0 %v5503_v58 }
 0x20d   :  { %v1763_v46 = vadd.f32 %v1754_v29, %v1549_v28  ;;  %v6213_v23 = vadd.f32 %v1969_v17, %v1762_v18 }
 0x20e   :  { %1699 = vmatmul.bf16.gmra.mxu3 %v5523_v8 }
 0x20f   :  { %7764 = vst [vmem:[#allocation11_spill] sm:$0xff] %v6213_v23  ;;  %v1447_v30 = vpop.f32.mrf.mxu2 }
 0x210   :  { %v1502_v44 = vrot.slane %v1447_v30, 1 }
 0x211   :  { %v1660_v40 = vpop.f32.mrf.mxu3  ;;  %v1871_v61 = vpop.f32.mrf.mxu0 }
 0x212   :  { %v1715_v26 = vrot.slane %v1660_v40, 2  ;;  %v1539_v19 = vsel %vm1307_vm3, %v1501_v63, %v1502_v44  ;;  %v1928_v12 = vrot.slane %v1871_v61, 3 }
 0x213   :  { %v1550_v51 = vadd.f32 %v1539_v19, %v5870_v54 }
 0x214   :  { %v1753_v31 = vsel %vm1734_vm4, %v1714_v14, %v1715_v26  ;;  %v1968_v58 = vsel %vm1948_vm5, %v1927_v1, %v1928_v12 }
 0x215   :  { %v1764_v27 = vadd.f32 %v1753_v31, %v1550_v51  ;;  %v6222_v59 = vadd.f32 %v1968_v58, %v1763_v46 }
 0x217   :  { %7765 = vst [vmem:[#allocation13_spill] sm:$0xff] %v6222_v59  ;;  %v1449_v13 = vpop.f32.mrf.mxu2 }
 0x218   :  { %v1503_v49 = vrot.slane %v1449_v13, 1 }
 0x219   :  { %v1662_v6 = vpop.f32.mrf.mxu3  ;;  %v1874_v45 = vpop.f32.mrf.mxu0 }
 0x21a   :  { %v1716_v56 = vrot.slane %v1662_v6, 2  ;;  %v1538_v41 = vsel %vm1307_vm3, %v1502_v44, %v1503_v49  ;;  %v1929_v15 = vrot.slane %v1874_v45, 3 }
 0x21b   :  { %v1551_v54 = vadd.f32 %v1538_v41, %v5886_v52 }
 0x21c   :  { %v1752_v55 = vsel %vm1734_vm4, %v1715_v26, %v1716_v56  ;;  %v1967_v18 = vsel %vm1948_vm5, %v1928_v12, %v1929_v15  ;;  %1491 = vmatmul.bf16.gmra.mxu2 %v5540_v20  ;;  %1913 = vmatmul.bf16.gmra.mxu0 %v5523_v8 }
 0x21d   :  { %v1765_v3 = vadd.f32 %v1752_v55, %v1551_v54  ;;  %v6234_v63 = vadd.f32 %v1967_v18, %v1764_v27 }
 0x21e   :  { %1704 = vmatmul.bf16.gmra.mxu3 %v5540_v20 }
 0x21f   :  { %7766 = vst [vmem:[#allocation14_spill] sm:$0xff] %v6234_v63  ;;  %v1452_v14 = vpop.f32.mrf.mxu2 }
 0x220   :  { %v1504_v47 = vrot.slane %v1452_v14, 1  ;;  %v5169_v14 = vld [vmem:[#allocation5 + $0x28] sm:$0xff] }
 0x221   :  { %v1665_v52 = vpop.f32.mrf.mxu3  ;;  %v1876_v1 = vpop.f32.mrf.mxu0  ;;  %2437 = vmatpush.bf16.msra.mxu1 %v5169_v14 }
 0x222   :  { %v1717_v21 = vrot.slane %v1665_v52, 2  ;;  %v1537_v28 = vsel %vm1307_vm3, %v1503_v49, %v1504_v47  ;;  %v1930_v29 = vrot.slane %v1876_v1, 3 }
 0x223   :  { %v1552_v17 = vadd.f32 %v1537_v28, %v5898_v2 }
 0x224   :  { %v1751_v8 = vsel %vm1734_vm4, %v1716_v56, %v1717_v21  ;;  %v1966_v46 = vsel %vm1948_vm5, %v1929_v15, %v1930_v29 }
 0x225   :  { %v1766_v30 = vadd.f32 %v1751_v8, %v1552_v17  ;;  %v6243_v44 = vadd.f32 %v1966_v46, %v1765_v3  ;;  %v7768_v17 = vld [vmem:[#allocation12_spill] sm:$0xff] }
 0x227   :  { %7767 = vst [vmem:[#allocation15_spill] sm:$0xff] %v6243_v44  ;;  %v1454_v40 = vpop.f32.mrf.mxu2 }
 0x228   :  { %v1505_v26 = vrot.slane %v1454_v40, 1 }
 0x229   :  { %v1667_v61 = vpop.f32.mrf.mxu3  ;;  %v1879_v12 = vpop.f32.mrf.mxu0 }
 0x22a   :  { %v1718_v19 = vrot.slane %v1667_v61, 2  ;;  %v1536_v51 = vsel %vm1307_vm3, %v1504_v47, %v1505_v26  ;;  %v1931_v31 = vrot.slane %v1879_v12, 3 }
 0x22b   :  { %v1553_v2 = vadd.f32 %v1536_v51, %v5914_v37 }
 0x22c   :  { %v1750_v58 = vsel %vm1734_vm4, %v1717_v21, %v1718_v19  ;;  %v1965_v27 = vsel %vm1948_vm5, %v1930_v29, %v1931_v31  ;;  %1918 = vmatmul.bf16.gmra.mxu0 %v5540_v20 }
 0x22d   :  { %v1767_v13 = vadd.f32 %v1750_v58, %v1553_v2  ;;  %v6253_v49 = vadd.f32 %v1965_v27, %v1766_v30 }
 0x22f   :  { %v1457_v6 = vpop.f32.mrf.mxu2 }
 0x230   :  { %v1506_v56 = vrot.slane %v1457_v6, 1 }
 0x231   :  { %v1670_v45 = vpop.f32.mrf.mxu3  ;;  %v1881_v15 = vpop.f32.mrf.mxu0 }
 0x232   :  { %v1719_v41 = vrot.slane %v1670_v45, 2  ;;  %v1535_v54 = vsel %vm1307_vm3, %v1505_v26, %v1506_v56  ;;  %v1932_v37 = vrot.slane %v1881_v15, 3 }
 0x233   :  { %v1554_v55 = vadd.f32 %v1535_v54, %v5926_v62 }
 0x234   :  { %v1749_v18 = vsel %vm1734_vm4, %v1718_v19, %v1719_v41  ;;  %v1964_v20 = vsel %vm1948_vm5, %v1931_v31, %v1932_v37 }
 0x235   :  { %v1768_v3 = vadd.f32 %v1749_v18, %v1554_v55  ;;  %v6262_v43 = vadd.f32 %v1964_v20, %v1767_v13 }
 0x237   :  { %v1459_v47 = vpop.f32.mrf.mxu2 }
 0x238   :  { %v1507_v52 = vrot.slane %v1459_v47, 1 }
 0x239   :  { %v1672_v21 = vpop.f32.mrf.mxu3  ;;  %v1884_v28 = vpop.f32.mrf.mxu0 }
 0x23a   :  { %v1720_v1 = vrot.slane %v1672_v21, 2  ;;  %v1534_v29 = vsel %vm1307_vm3, %v1506_v56, %v1507_v52  ;;  %v1933_v62 = vrot.slane %v1884_v28, 3 }
 0x23b   :  { %v1555_v8 = vadd.f32 %v1534_v29, %v7768_v17 }
 0x23c   :  { %v1748_v46 = vsel %vm1734_vm4, %v1719_v41, %v1720_v1  ;;  %v1963_v30 = vsel %vm1948_vm5, %v1932_v37, %v1933_v62 }
 0x23d   :  { %v1769_v40 = vadd.f32 %v1748_v46, %v1555_v8  ;;  %v6271_v26 = vadd.f32 %v1963_v30, %v1768_v3  ;;  %v5168_v46 = vld [vmem:[#allocation5 + $0x20] sm:$0xff] }
 0x23e   :  { %2438 = vmatpush.bf16.msra.mxu1 %v5168_v46 }
 0x23f   :  { %v1462_v61 = vpop.f32.mrf.mxu2 }
 0x240   :  { %v1508_v19 = vrot.slane %v1462_v61, 1 }
 0x241   :  { %v1675_v12 = vpop.f32.mrf.mxu3  ;;  %v1886_v31 = vpop.f32.mrf.mxu0 }
 0x242   :  { %v1721_v51 = vrot.slane %v1675_v12, 2  ;;  %v1533_v2 = vsel %vm1307_vm3, %v1507_v52, %v1508_v19  ;;  %v1934_v58 = vrot.slane %v1886_v31, 3 }
 0x243   :  { %v1556_v27 = vadd.f32 %v1533_v2, %v5947_v50 }
 0x244   :  { %v1747_v13 = vsel %vm1734_vm4, %v1720_v1, %v1721_v51  ;;  %v1962_v6 = vsel %vm1948_vm5, %v1933_v62, %v1934_v58 }
 0x245   :  { %v1770_v56 = vadd.f32 %v1747_v13, %v1556_v27  ;;  %v6280_v45 = vadd.f32 %v1962_v6, %v1769_v40  ;;  %v6320_v13 = vpop.permute.xlu0 %2001 }
 0x246   :  { %7769 = vst [vmem:[#allocation12_spill] sm:$0xff] %v6320_v13 }
 0x247   :  { %v1464_v41 = vpop.f32.mrf.mxu2 }
 0x248   :  { %v1509_v15 = vrot.slane %v1464_v41, 1 }
 0x249   :  { %v1677_v54 = vpop.f32.mrf.mxu3  ;;  %v1889_v55 = vpop.f32.mrf.mxu0 }
 0x24a   :  { %v1722_v37 = vrot.slane %v1677_v54, 2  ;;  %v1532_v18 = vsel %vm1307_vm3, %v1508_v19, %v1509_v15  ;;  %v1935_v20 = vrot.slane %v1889_v55, 3  ;;  %v6336_v55 = vpop.permute.xlu1 %2011 }
 0x24b   :  { %v1557_v50 = vadd.f32 %v1532_v18, %v5962_v60  ;;  %7771 = vst [vmem:[#allocation17_spill] sm:$0xff] %v6336_v55 }
 0x24c   :  { %v1746_v3 = vsel %vm1734_vm4, %v1721_v51, %v1722_v37  ;;  %v1961_v14 = vsel %vm1948_vm5, %v1934_v58, %v1935_v20 }
 0x24d   :  { %v1771_v47 = vadd.f32 %v1746_v3, %v1557_v50  ;;  %v6289_v52 = vadd.f32 %v1961_v14, %v1770_v56  ;;  %v5167_v3 = vld [vmem:[#allocation5 + $0x18] sm:$0xff] }
 0x24e   :  { %2439 = vmatpush.bf16.msra.mxu1 %v5167_v3 }
 0x24f   :  { %v1467_v21 = vpop.f32.mrf.mxu2 }
 0x250   :  { %v1510_v1 = vrot.slane %v1467_v21, 1 }
 0x251   :  { %v1680_v28 = vpop.f32.mrf.mxu3  ;;  %v6291_v62 = vpop.f32.mrf.mxu0 }
 0x252   :  { %v1723_v29 = vrot.slane %v1680_v28, 2  ;;  %v1531_v17 = vsel %vm1307_vm3, %v1509_v15, %v1510_v1  ;;  %v7708_v60 = vrot.slane %v6291_v62, 3  ;;  %v6354_v28 = vpop.permute.xlu1 %2016 }
 0x253   :  { %v1558_v8 = vadd.f32 %v1531_v17, %v5974_v11  ;;  %7774 = vst [vmem:[#allocation20_spill] sm:$0xff] %v6354_v28  ;;  %v2124_v17 = vmul.f32 %v6320_v13, %v6188_v25 }
 0x254   :  { %v1745_v30 = vsel %vm1734_vm4, %v1722_v37, %v1723_v29  ;;  %v1960_v40 = vsel %vm1948_vm5, %v1935_v20, %v7708_v60  ;;  %v6334_v37 = vpop.permute.xlu0 %2006  ;;  %v6342_v20 = vpop.permute.xlu2 %2021 }
 0x255   :  { %v6303_v61 = vadd.f32 %v1745_v30, %v1558_v8  ;;  %v6305_v19 = vadd.f32 %v1960_v40, %v1771_v47  ;;  %7770 = vst [vmem:[#allocation16_spill] sm:$0xff] %v6334_v37  ;;  %v2126_v8 = vmul.f32 %v6336_v55, %v6213_v23  ;;  %v2127_v40 = vmul.f32 %v6354_v28, %v6222_v59 }
 0x256   :  { %7772 = vst [vmem:[#allocation18_spill] sm:$0xff] %v6342_v20  ;;  %v2128_v3 = vmul.f32 %v6342_v20, %v6234_v63 }
 0x257   :  { %v6307_v12 = vpop.f32.mrf.mxu2 }
 0x258   :  { %v7707_v51 = vrot.slane %v6307_v12, 1  ;;  %v2183_v13 = vmul.f32 %v2128_v3, %v2128_v3 }
 0x259   :  { %v6310_v31 = vpop.f32.mrf.mxu3  ;;  %v6313_v2 = vpop.f32.mrf.mxu0 }
 0x25a   :  { %v7706_v11 = vrot.slane %v6310_v31, 2  ;;  %v1530_v58 = vsel %vm1307_vm3, %v1510_v1, %v7707_v51  ;;  %v2125_v1 = vmul.f32 %v6334_v37, %v6201_v39  ;;  %v2182_v51 = vmul.f32 %v2127_v40, %v2127_v40  ;;  %v6374_v55 = vpop.permute.xlu1 %2036 }
 0x25b   :  { %v1559_v27 = vadd.f32 %v1530_v58, %v5986_v38  ;;  %v2179_v58 = vmul.f32 %v2124_v17, %v2124_v17  ;;  %7776 = vst [vmem:[#allocation22_spill] sm:$0xff] %v6374_v55 }
 0x25c   :  { %v1744_v6 = vsel %vm1734_vm4, %v1723_v29, %v7706_v11  ;;  %v6348_v47 = vpop.permute.xlu0 %2031  ;;  %v6362_v46 = vpop.permute.xlu2 %2026  ;;  %v2180_v30 = vmul.f32 %v2125_v1, %v2125_v1 }
 0x25d   :  { %v6326_v56 = vadd.f32 %v1744_v6, %v1559_v27  ;;  %7773 = vst [vmem:[#allocation19_spill] sm:$0xff] %v6348_v47  ;;  %v2149_v27 = vadd.f32 %v2125_v1, %v2124_v17  ;;  %v2181_v6 = vmul.f32 %v2126_v8, %v2126_v8  ;;  %v2129_v60 = vmul.f32 %v6362_v46, %v6243_v44 }
 0x25e   :  { %7775 = vst [vmem:[#allocation21_spill] sm:$0xff] %v6362_v46  ;;  %v2204_v11 = vadd.f32 %v2180_v30, %v2179_v58  ;;  %v2130_v20 = vmul.f32 %v6348_v47, %v6253_v49 }
 0x25f   :  { %v6328_v41 = vpop.f32.mrf.mxu2  ;;  %v2150_v7 = vadd.f32 %v2149_v27, %v2126_v8  ;;  %v2184_v58 = vmul.f32 %v2129_v60, %v2129_v60  ;;  %v2131_v27 = vmul.f32 %v6374_v55, %v6262_v43 }
 0x260   :  { %v2205_v1 = vadd.f32 %v2204_v11, %v2181_v6  ;;  %v2185_v59 = vmul.f32 %v2130_v20, %v2130_v20  ;;  %v1937_v11 = vrot.slane %v6313_v2, 3 }
 0x261   :  { %v6330_v15 = vpop.f32.mrf.mxu3  ;;  %v6332_v54 = vpop.f32.mrf.mxu0  ;;  %v2151_v17 = vadd.f32 %v2150_v7, %v2127_v40 }
 0x262   :  { %v2206_v8 = vadd.f32 %v2205_v1, %v2182_v51  ;;  %v2186_v51 = vmul.f32 %v2131_v27, %v2131_v27 }
 0x263   :  { %v2152_v30 = vadd.f32 %v2151_v17, %v2128_v3  ;;  %v6393_v3 = vpop.permute.xlu1 %2051 }
 0x264   :  { %v6378_v28 = vpop.permute.xlu0 %2046  ;;  %v6382_v63 = vpop.permute.xlu2 %2041  ;;  %v2207_v46 = vadd.f32 %v2206_v8, %v2183_v13  ;;  %7779 = vst [vmem:[#allocation25_spill] sm:$0xff] %v6393_v3  ;;  %v1938_v13 = vrot.slane %v6332_v54, 3  ;;  %v5166_v54 = vld [vmem:[#allocation5 + $0x10] sm:$0xff] }
 0x265   :  { %7777 = vst [vmem:[#allocation23_spill] sm:$0xff] %v6378_v28  ;;  %v2153_v44 = vadd.f32 %v2152_v30, %v2129_v60  ;;  %v2132_v7 = vmul.f32 %v6382_v63, %v6271_v26  ;;  %v2133_v60 = vmul.f32 %v6378_v28, %v6280_v45  ;;  %v1512_v28 = vrot.slane %v6328_v41, 1  ;;  %2440 = vmatpush.bf16.msra.mxu1 %v5166_v54 }
 0x266   :  { %7778 = vst [vmem:[#allocation24_spill] sm:$0xff] %v6382_v63  ;;  %v2208_v6 = vadd.f32 %v2207_v46, %v2184_v58 }
 0x267   :  { %v6338_v38 = vpop.f32.mrf.mxu2  ;;  %v2154_v47 = vadd.f32 %v2153_v44, %v2130_v20  ;;  %v2187_v2 = vmul.f32 %v2132_v7, %v2132_v7  ;;  %v2134_v44 = vmul.f32 %v6393_v3, %v6289_v52  ;;  %v7782_v20 = vrot.slane %v6291_v62, 3 }
 0x268   :  { %v2209_v8 = vadd.f32 %v2208_v6, %v2185_v59  ;;  %v1513_v6 = vrot.slane %v6338_v38, 1 }
 0x269   :  { %v6340_v18 = vpop.f32.mrf.mxu3  ;;  %v6344_v50 = vpop.f32.mrf.mxu0  ;;  %v2155_v17 = vadd.f32 %v2154_v47, %v2131_v27  ;;  %v1959_v46 = vsel %vm1948_vm5, %v7782_v20, %v1937_v11  ;;  %v2188_v47 = vmul.f32 %v2133_v60, %v2133_v60  ;;  %v1958_v27 = vsel %vm1948_vm5, %v1937_v11, %v1938_v13 }
 0x26a   :  { %v2210_v58 = vadd.f32 %v2209_v8, %v2186_v51  ;;  %v6417_v3 = vadd.f32 %v1959_v46, %v6303_v61  ;;  %v7783_v8 = vrot.slane %v6307_v12, 1  ;;  %v6428_v11 = vadd.f32 %v1958_v27, %v6326_v56 }
 0x26b   :  { %v2156_v55 = vadd.f32 %v2155_v17, %v2132_v7  ;;  %v2189_v17 = vmul.f32 %v2134_v44, %v2134_v44  ;;  %v1939_v12 = vrot.slane %v6344_v50, 3  ;;  %v6439_v56 = vpop.permute.xlu1 %2066 }
 0x26c   :  { %v6400_v30 = vpop.permute.xlu2 %2056  ;;  %v6402_v63 = vpop.permute.xlu0 %2061  ;;  %v2211_v51 = vadd.f32 %v2210_v58, %v2187_v2  ;;  %v1529_v20 = vsel %vm1307_vm3, %v7783_v8, %v1512_v28  ;;  %v1528_v2 = vsel %vm1307_vm3, %v1512_v28, %v1513_v6  ;;  %7784 = vst [vmem:[#allocation28_spill] sm:$0xff] %v6439_v56  ;;  %v2137_v28 = vmul.f32 %v6439_v56, %v6428_v11 }
 0x26d   :  { %7780 = vst [vmem:[#allocation26_spill] sm:$0xff] %v6400_v30  ;;  %v2135_v59 = vmul.f32 %v6400_v30, %v6305_v19  ;;  %v2157_v7 = vadd.f32 %v2156_v55, %v2133_v60  ;;  %v2136_v55 = vmul.f32 %v6402_v63, %v6417_v3  ;;  %v1725_v60 = vrot.slane %v6330_v15, 2 }
 0x26e   :  { %7781 = vst [vmem:[#allocation27_spill] sm:$0xff] %v6402_v63  ;;  %v2212_v46 = vadd.f32 %v2211_v51, %v2188_v47  ;;  %v1560_v27 = vadd.f32 %v1529_v20, %v5995_v42  ;;  %v1561_v51 = vadd.f32 %v1528_v2, %v6007_v22  ;;  %v7786_v8 = vrot.slane %v6310_v31, 2 }
 0x26f   :  { %v6346_v14 = vpop.f32.mrf.mxu2  ;;  %v2158_v61 = vadd.f32 %v2157_v7, %v2134_v44  ;;  %v2190_v30 = vmul.f32 %v2135_v59, %v2135_v59  ;;  %v1726_v44 = vrot.slane %v6340_v18, 2  ;;  %v1957_v18 = vsel %vm1948_vm5, %v1938_v13, %v1939_v12 }
 0x270   :  { %v1514_v58 = vrot.slane %v6346_v14, 1  ;;  %v2213_v54 = vadd.f32 %v2212_v46, %v2189_v17  ;;  %v2191_v17 = vmul.f32 %v2136_v55, %v2136_v55  ;;  %v1743_v42 = vsel %vm1734_vm4, %v7786_v8, %v1725_v60 }
 0x271   :  { %v6350_v21 = vpop.f32.mrf.mxu3  ;;  %v6356_v29 = vpop.f32.mrf.mxu0  ;;  %v2159_v15 = vadd.f32 %v2158_v61, %v2135_v59  ;;  %v1774_v46 = vadd.f32 %v1743_v42, %v1560_v27  ;;  %v2192_v59 = vmul.f32 %v2137_v28, %v2137_v28 }
 0x272   :  { %v1940_v47 = vrot.slane %v6356_v29, 3  ;;  %v2214_v50 = vadd.f32 %v2213_v54, %v2190_v30  ;;  %v1527_v29 = vsel %vm1307_vm3, %v1513_v6, %v1514_v58  ;;  %v1727_v13 = vrot.slane %v6350_v21, 2 }
 0x273   :  { %v2160_v22 = vadd.f32 %v2159_v15, %v2136_v55  ;;  %v6470_v55 = vadd.f32 %v1957_v18, %v1774_v46  ;;  %v1562_v27 = vadd.f32 %v1527_v29, %v6022_v16 }
 0x274   :  { %v6447_v7 = vpop.permute.xlu0 %2076  ;;  %v6458_v2 = vpop.permute.xlu2 %2071  ;;  %v1956_v31 = vsel %vm1948_vm5, %v1939_v12, %v1940_v47  ;;  %v2215_v12 = vadd.f32 %v2214_v50, %v2191_v17  ;;  %v1741_v18 = vsel %vm1734_vm4, %v1726_v44, %v1727_v13 }
 0x275   :  { %7785 = vst [vmem:[#allocation29_spill] sm:$0xff] %v6447_v7  ;;  %v2161_v42 = vadd.f32 %v2160_v22, %v2137_v28  ;;  %v1776_v50 = vadd.f32 %v1741_v18, %v1562_v27 }
 0x276   :  { %7787 = vst [vmem:[#allocation30_spill] sm:$0xff] %v6458_v2 }
 0x277   :  { %v6368_v36 = vpop.f32.mrf.mxu2 }
 0x278   :  { %v1515_v14 = vrot.slane %v6368_v36, 1  ;;  %v1742_v36 = vsel %vm1734_vm4, %v1725_v60, %v1726_v44 }
 0x279   :  { %v6370_v57 = vpop.f32.mrf.mxu3  ;;  %v6376_v37 = vpop.f32.mrf.mxu0  ;;  %v1775_v61 = vadd.f32 %v1742_v36, %v1561_v51  ;;  %v2216_v36 = vadd.f32 %v2215_v12, %v2192_v59 }
 0x27a   :  { %v1526_v60 = vsel %vm1307_vm3, %v1514_v58, %v1515_v14  ;;  %v1941_v15 = vrot.slane %v6376_v37, 3  ;;  %v1728_v21 = vrot.slane %v6370_v57, 2  ;;  %v2138_v37 = vmul.f32 %v6458_v2, %v6470_v55 }
 0x27b   :  { %v6476_v8 = vadd.f32 %v1956_v31, %v1775_v61  ;;  %v1563_v16 = vadd.f32 %v1526_v60, %v6037_v48 }
 0x27c   :  { %v1740_v29 = vsel %vm1734_vm4, %v1727_v13, %v1728_v21  ;;  %v6511_v27 = vpop.permute.xlu2 %2086  ;;  %v2162_v13 = vadd.f32 %v2161_v42, %v2138_v37 }
 0x27d   :  { %v2139_v57 = vmul.f32 %v6447_v7, %v6476_v8  ;;  %v1777_v31 = vadd.f32 %v1740_v29, %v1563_v16  ;;  %7790 = vst [vmem:[#allocation33_spill] sm:$0xff] %v6511_v27 }
 0x27f   :  { %v6386_v23 = vpop.f32.mrf.mxu2  ;;  %v2194_v12 = vmul.f32 %v2139_v57, %v2139_v57 }
 0x280   :  { %v1516_v54 = vrot.slane %v6386_v23, 1 }
 0x281   :  { %v6391_v40 = vpop.f32.mrf.mxu3  ;;  %v6395_v1 = vpop.f32.mrf.mxu0 }
 0x282   :  { %v1942_v23 = vrot.slane %v6395_v1, 3  ;;  %v1525_v58 = vsel %vm1307_vm3, %v1515_v14, %v1516_v54  ;;  %v1729_v1 = vrot.slane %v6391_v40, 2  ;;  %v6496_v14 = vpop.permute.xlu0 %2091  ;;  %v6505_v40 = vpop.permute.xlu1 %2081 }
 0x283   :  { %7788 = vst [vmem:[#allocation31_spill] sm:$0xff] %v6496_v14  ;;  %v1564_v22 = vadd.f32 %v1525_v58, %v6046_v4  ;;  %v2193_v4 = vmul.f32 %v2138_v37, %v2138_v37 }
 0x284   :  { %7789 = vst [vmem:[#allocation32_spill] sm:$0xff] %v6505_v40  ;;  %v1739_v18 = vsel %vm1734_vm4, %v1728_v21, %v1729_v1 }
 0x287   :  { %v6419_v62 = vpop.f32.mrf.mxu2 }
 0x288   :  { %v1517_v51 = vrot.slane %v6419_v62, 1  ;;  %v1955_v62 = vsel %vm1948_vm5, %v1940_v47, %v1941_v15  ;;  %v1954_v47 = vsel %vm1948_vm5, %v1941_v15, %v1942_v23 }
 0x289   :  { %v6421_v41 = vpop.f32.mrf.mxu3  ;;  %v6430_v38 = vpop.f32.mrf.mxu0  ;;  %v6507_v59 = vadd.f32 %v1955_v62, %v1776_v50  ;;  %v6518_v16 = vadd.f32 %v1954_v47, %v1777_v31 }
 0x28a   :  { %v1524_v44 = vsel %vm1307_vm3, %v1516_v54, %v1517_v51  ;;  %v1943_v48 = vrot.slane %v6430_v38, 3  ;;  %v1730_v38 = vrot.slane %v6421_v41, 2 }
 0x28b   :  { %v1565_v60 = vadd.f32 %v1524_v44, %v6061_v5  ;;  %v2140_v5 = vmul.f32 %v6505_v40, %v6507_v59  ;;  %v2217_v44 = vadd.f32 %v2216_v36, %v2193_v4 }
 0x28c   :  { %v1953_v41 = vsel %vm1948_vm5, %v1942_v23, %v1943_v48 }
 0x28f   :  { %v1487_v20 = vpop.f32.mrf.mxu2 }
 0x290   :  { %v1518_v28 = vrot.slane %v1487_v20, 1 }
 0x291   :  { %v6464_v30 = vpop.f32.mrf.mxu3  ;;  %v6468_v6 = vpop.f32.mrf.mxu0 }
 0x292   :  { %v1944_v61 = vrot.slane %v6468_v6, 3  ;;  %v1523_v15 = vsel %vm1307_vm3, %v1517_v51, %v1518_v28  ;;  %v1778_v6 = vadd.f32 %v1739_v18, %v1564_v22  ;;  %v1731_v58 = vrot.slane %v6464_v30, 2  ;;  %v6554_v18 = vpop.permute.xlu1 %2096 }
 0x293   :  { %v1738_v51 = vsel %vm1734_vm4, %v1729_v1, %v1730_v38  ;;  %v1566_v21 = vadd.f32 %v1523_v15, %v6073_v32  ;;  %7793 = vst [vmem:[#allocation35_spill] sm:$0xff] %v6554_v18 }
 0x294   :  { %v1952_v50 = vsel %vm1948_vm5, %v1943_v48, %v1944_v61  ;;  %v1779_v62 = vadd.f32 %v1738_v51, %v1565_v60  ;;  %v6532_v23 = vadd.f32 %v1953_v41, %v1778_v6  ;;  %v1737_v1 = vsel %vm1734_vm4, %v1730_v38, %v1731_v58  ;;  %v6559_v51 = vpop.permute.xlu2 %2101 }
 0x295   :  { %v1780_v36 = vadd.f32 %v1737_v1, %v1566_v21  ;;  %v7791_v38 = vrot.slane %v6135_v34, 1  ;;  %7794 = vst [vmem:[#allocation36_spill] sm:$0xff] %v6559_v51  ;;  %v7795_v21 = vrot.slane %v6137_v33, 2 }
 0x296   :  { %v6540_v32 = vadd.f32 %v1952_v50, %v1779_v62  ;;  %v2142_v4 = vmul.f32 %v6496_v14, %v6532_v23 }
 0x297   :  { %v1489_v17 = vpop.f32.mrf.mxu2 }
 0x298   :  { %v1519_v20 = vrot.slane %v1489_v17, 1  ;;  %v2163_v17 = vadd.f32 %v2162_v13, %v2139_v57  ;;  %v2197_v1 = vmul.f32 %v2142_v4, %v2142_v4 }
 0x299   :  { %v6503_v46 = vpop.f32.mrf.mxu3  ;;  %v1914_v54 = vpop.f32.mrf.mxu0 }
 0x29a   :  { %v1522_v42 = vsel %vm1307_vm3, %v1518_v28, %v1519_v20  ;;  %v1945_v37 = vrot.slane %v1914_v54, 3  ;;  %v1732_v30 = vrot.slane %v6503_v46, 2  ;;  %v2141_v28 = vmul.f32 %v6511_v27, %v6518_v16 }
 0x29b   :  { %v1567_v29 = vadd.f32 %v1522_v42, %v6088_v53  ;;  %v2218_v54 = vadd.f32 %v2217_v44, %v2194_v12  ;;  %v2195_v46 = vmul.f32 %v2140_v5, %v2140_v5  ;;  %v2164_v44 = vadd.f32 %v2163_v17, %v2140_v5 }
 0x29c   :  { %v1951_v48 = vsel %vm1948_vm5, %v1944_v61, %v1945_v37  ;;  %v1736_v53 = vsel %vm1734_vm4, %v1731_v58, %v1732_v30  ;;  %v6552_v61 = vpop.permute.xlu0 %2106  ;;  %v2196_v12 = vmul.f32 %v2141_v28, %v2141_v28  ;;  %v2143_v58 = vmul.f32 %v6554_v18, %v6540_v32 }
 0x29d   :  { %7792 = vst [vmem:[#allocation34_spill] sm:$0xff] %v6552_v61  ;;  %v1781_v41 = vadd.f32 %v1736_v53, %v1567_v29  ;;  %v6556_v6 = vadd.f32 %v1951_v48, %v1780_v36  ;;  %v2165_v48 = vadd.f32 %v2164_v44, %v2141_v28  ;;  %v5187_v44 = vld [vmem:[#allocation5 + $0xb8] sm:$0xff] }
 0x29e   :  { %v2198_v36 = vmul.f32 %v2143_v58, %v2143_v58  ;;  %2861 = vmatpush.bf16.msrb.mxu3 %v5187_v44  ;;  %v5192_v44 = vld [vmem:[#allocation5 + $0xe0] sm:$0xff] }
 0x29f   :  { %v1492_v22 = vpop.f32.mrf.mxu2  ;;  %v2166_v53 = vadd.f32 %v2165_v48, %v2142_v4 }
 0x2a0   :  { %v1520_v47 = vrot.slane %v1492_v22, 1 }
 0x2a1   :  { %v1705_v31 = vpop.f32.mrf.mxu3  ;;  %v1916_v13 = vpop.f32.mrf.mxu0  ;;  %v2167_v28 = vadd.f32 %v2166_v53, %v2143_v58  ;;  %v5194_v53 = vld [vmem:[#allocation5 + $0xf0] sm:$0xff] }
 0x2a2   :  { %v1733_v57 = vrot.slane %v1705_v31, 2  ;;  %v1545_v60 = vsel %vm1307_vm3, %v1520_v47, %v7791_v38  ;;  %v1946_v15 = vrot.slane %v1916_v13, 3  ;;  %v1521_v34 = vsel %vm1307_vm3, %v1519_v20, %v1520_v47  ;;  %v6594_v58 = vpop.permute.xlu2 %2116 }
 0x2a3   :  { %v1569_v42 = vadd.f32 %v1545_v60, %v6133_v10  ;;  %v2219_v10 = vadd.f32 %v2218_v54, %v2195_v46  ;;  %v2144_v31 = vmul.f32 %v6559_v51, %v6556_v6  ;;  %v1568_v20 = vadd.f32 %v1521_v34, %v6110_v24  ;;  %7799 = vst [vmem:[#allocation39_spill] sm:$0xff] %v6594_v58 }
 0x2a4   :  { %v1759_v50 = vsel %vm1734_vm4, %v1733_v57, %v7795_v21  ;;  %v1950_v62 = vsel %vm1948_vm5, %v1945_v37, %v1946_v15  ;;  %v1735_v54 = vsel %vm1734_vm4, %v1732_v30, %v1733_v57  ;;  %v6592_v57 = vpop.permute.xlu1 %2111 }
 0x2a5   :  { %v1783_v29 = vadd.f32 %v1759_v50, %v1569_v42  ;;  %v6571_v22 = vadd.f32 %v1950_v62, %v1781_v41  ;;  %v2220_v33 = vadd.f32 %v2219_v10, %v2196_v12  ;;  %v2199_v38 = vmul.f32 %v2144_v31, %v2144_v31  ;;  %v6586_v42 = vpop.permute.xlu0 %2121  ;;  %7798 = vst [vmem:[#allocation38_spill] sm:$0xff] %v6592_v57  ;;  %v5179_v62 = vld [vmem:[#allocation5 + $0x78] sm:$0xff] }
 0x2a6   :  { %v1782_v60 = vadd.f32 %v1735_v54, %v1568_v20  ;;  %v7796_v12 = vrot.slane %v6148_v9, 3  ;;  %7797 = vst [vmem:[#allocation37_spill] sm:$0xff] %v6586_v42  ;;  %v2168_v34 = vadd.f32 %v2167_v28, %v2144_v31  ;;  %2648 = vmatpush.bf16.msrb.mxu2 %v5179_v62  ;;  %v5184_v62 = vld [vmem:[#allocation5 + $0xa0] sm:$0xff] }
 0x2a7   :  { %v1494_v47 = vpop.f32.mrf.mxu2  ;;  %v2145_v37 = vmul.f32 %v6552_v61, %v6571_v22  ;;  %v2221_v17 = vadd.f32 %v2220_v33, %v2197_v1 }
 0x2a9   :  { %v1707_v13 = vpop.f32.mrf.mxu3  ;;  %v1919_v5 = vpop.f32.mrf.mxu0  ;;  %v2222_v41 = vadd.f32 %v2221_v17, %v2198_v36  ;;  %v2200_v21 = vmul.f32 %v2145_v37, %v2145_v37  ;;  %v2169_v9 = vadd.f32 %v2168_v34, %v2145_v37  ;;  %v5178_v36 = vld [vmem:[#allocation5 + $0x70] sm:$0xff] }
 0x2aa   :  { %v1947_v46 = vrot.slane %v1919_v5, 3  ;;  %v5186_v13 = vld [vmem:[#allocation5 + $0xb0] sm:$0xff]  ;;  %2649 = vmatpush.bf16.msrb.mxu2 %v5178_v36 }
 0x2ab   :  { %v2223_v10 = vadd.f32 %v2222_v41, %v2199_v38  ;;  %2862 = vmatpush.bf16.msrb.mxu3 %v5186_v13  ;;  %v5177_v38 = vld [vmem:[#allocation5 + $0x68] sm:$0xff]  ;;  %v5174_v13 = vld [vmem:[#allocation5 + $0x50] sm:$0xff] }
 0x2ac   :  { %v1949_v24 = vsel %vm1948_vm5, %v1946_v15, %v1947_v46  ;;  %v1973_v4 = vsel %vm1948_vm5, %v1947_v46, %v7796_v12  ;;  %v5195_v15 = vld [vmem:[#allocation5 + $0xf8] sm:$0xff]  ;;  %v5193_v41 = vld [vmem:[#allocation5 + $0xe8] sm:$0xff] }
 0x2ad   :  { %v6588_v50 = vadd.f32 %v1949_v24, %v1782_v60  ;;  %v6590_v30 = vadd.f32 %v1973_v4, %v1783_v29  ;;  %v2148_v29 = vmul.f32 %v6586_v42, %v6174_v0  ;;  %v2224_v31 = vadd.f32 %v2223_v10, %v2200_v21  ;;  %3074 = vmatpush.bf16.msrb.mxu0 %v5195_v15  ;;  %v5185_v60 = vld [vmem:[#allocation5 + $0xa8] sm:$0xff]  ;;  %v5176_v21 = vld [vmem:[#allocation5 + $0x60] sm:$0xff] }
 0x2ae   :  { %2650 = vmatpush.bf16.msrb.mxu2 %v5177_v38  ;;  %v5173_v38 = vld [vmem:[#allocation5 + $0x48] sm:$0xff] }
 0x2af   :  { %v2146_v1 = vmul.f32 %v6592_v57, %v6588_v50  ;;  %v2147_v48 = vmul.f32 %v6594_v58, %v6590_v30  ;;  %v2203_v54 = vmul.f32 %v2148_v29, %v2148_v29  ;;  %2863 = vmatpush.bf16.msrb.mxu3 %v5185_v60  ;;  %v5181_v60 = vld [vmem:[#allocation5 + $0x88] sm:$0xff] }
 0x2b1   :  { %v2170_v20 = vadd.f32 %v2169_v9, %v2146_v1  ;;  %v2201_v47 = vmul.f32 %v2146_v1, %v2146_v1  ;;  %v1921_v33 = vpop.f32.mrf.mxu0  ;;  %v2202_v5 = vmul.f32 %v2147_v48, %v2147_v48  ;;  %3075 = vmatpush.bf16.msrb.mxu0 %v5194_v53  ;;  %v5182_v53 = vld [vmem:[#allocation5 + $0x90] sm:$0xff] }
 0x2b2   :  { %2651 = vmatpush.bf16.msrb.mxu2 %v5176_v21  ;;  %v5180_v21 = vld [vmem:[#allocation5 + $0x80] sm:$0xff] }
 0x2b3   :  { %v2171_v37 = vadd.f32 %v2170_v20, %v2147_v48  ;;  %v2225_v17 = vadd.f32 %v2224_v31, %v2201_v47  ;;  %2864 = vmatpush.bf16.msrb.mxu3 %v5184_v62  ;;  %v5175_v48 = vld [vmem:[#allocation5 + $0x58] sm:$0xff]  ;;  %v5188_v62 = vld [vmem:[#allocation5 + $0xc0] sm:$0xff] }
 0x2b4   :  { %v5191_v31 = vld [vmem:[#allocation5 + $0xd8] sm:$0xff] }
 0x2b5   :  { %v2172_v46 = vadd.f32 %v2171_v37, %v2148_v29  ;;  %v2226_v28 = vadd.f32 %v2225_v17, %v2202_v5  ;;  %3076 = vmatpush.bf16.msrb.mxu0 %v5193_v41  ;;  %v5183_v29 = vld [vmem:[#allocation5 + $0x98] sm:$0xff]  ;;  %v5190_v37 = vld [vmem:[#allocation5 + $0xd0] sm:$0xff] }
 0x2b6   :  { %2652 = vmatpush.bf16.msrb.mxu2 %v5175_v48 }
 0x2b7   :  { %v2173_v24 = vrot.slane %v2172_v46, 4  ;;  %v2227_v12 = vadd.f32 %v2226_v28, %v2203_v54  ;;  %2865 = vmatpush.bf16.msrb.mxu3 %v5183_v29  ;;  %v5165_v28 = vld [vmem:[#allocation5 + $0x8] sm:$0xff] }
 0x2b8   :  { %2441 = vmatpush.bf16.msra.mxu1 %v5165_v28 }
 0x2b9   :  { %v2174_v4 = vadd.f32 %v2173_v24, %v2172_v46  ;;  %v2228_v34 = vrot.slane %v2227_v12, 4  ;;  %3077 = vmatpush.bf16.msrb.mxu0 %v5192_v44  ;;  %v5189_v24 = vld [vmem:[#allocation5 + $0xc8] sm:$0xff]  ;;  %v5203_v44 = vld [vmem:[#allocation5 + $0x138] sm:$0xff] }
 0x2ba   :  { %2653 = vmatpush.bf16.msrb.mxu2 %v5174_v13 }
 0x2bb   :  { %v2175_v15 = vrot.slane %v2174_v4, 2  ;;  %v2229_v10 = vadd.f32 %v2228_v34, %v2227_v12  ;;  %2866 = vmatpush.bf16.msrb.mxu3 %v5182_v53  ;;  %v5172_v34 = vld [vmem:[#allocation5 + $0x40] sm:$0xff] }
 0x2bd   :  { %v2176_v9 = vadd.f32 %v2175_v15, %v2174_v4  ;;  %v2230_v1 = vrot.slane %v2229_v10, 2  ;;  %3078 = vmatpush.bf16.msrb.mxu0 %v5191_v31  ;;  %v5164_v4 = vld [vmem:[#allocation5] sm:$0xff] }
 0x2be   :  { %2654 = vmatpush.bf16.msrb.mxu2 %v5173_v38  ;;  %2442 = vmatpush.bf16.msra.mxu1 %v5164_v4  ;;  %v2249_v31 = vld [vmem:[%s7693_s4] sm:$0x1]  ;;  %v7800_v38 = vld [vmem:[#allocation11_spill] sm:$0xff]  ;;  %s4502_s4 = sshll.u32 %s7697_s8, 4  ;;  %s4503_s4 = int_to_ptr.hbm [resolvable:$true] %s4502_s4 }
 0x2bf   :  { %v2177_v20 = vrot.slane %v2176_v9, 1  ;;  %v2231_v47 = vadd.f32 %v2230_v1, %v2229_v10  ;;  %2867 = vmatpush.bf16.msrb.mxu3 %v5181_v60 }
 0x2c1   :  { %v2178_v33 = vadd.f32 %v2177_v20, %v2176_v9  ;;  %v2232_v36 = vrot.slane %v2231_v47, 1  ;;  %3079 = vmatpush.bf16.msrb.mxu0 %v5190_v37 }
 0x2c2   :  { %2655 = vmatpush.bf16.msrb.mxu2 %v5172_v34  ;;  %3287 = vmatpush.bf16.msrb.mxu1 %v5203_v44 }
 0x2c3   :  { %v2233_v5 = vadd.f32 %v2232_v36, %v2231_v47  ;;  %v2234_v17 = vmul.f32 0.0078125, %v2178_v33  ;;  %2868 = vmatpush.bf16.msrb.mxu3 %v5180_v21  ;;  %v2251_v33 = vld [vmem:[%s7694_s5] sm:$0x1]  ;;  %v5202_v36 = vld [vmem:[#allocation5 + $0x130] sm:$0xff]  ;;  %s5377_s5 = smov 8  }
 0x2c5   :  { %v2235_v54 = vmul.f32 0.0078125, %v2233_v5  ;;  %v2236_v46 = vmul.f32 %v2234_v17, %v2234_v17  ;;  %3080 = vmatpush.bf16.msrb.mxu0 %v5189_v24  ;;  %v7802_v24 = vld [vmem:[#allocation14_spill] sm:$0xff] }
 0x2c6   :  { %3288 = vmatpush.bf16.msrb.mxu1 %v5202_v36 }
 0x2c7   :  { %v2237_v41 = vsub.f32 %v2235_v54, %v2236_v46 }
 0x2c9   :  { %v2238_v12 = vadd.f32 1e-05, %v2237_v41  ;;  %3081 = vmatpush.bf16.msrb.mxu0 %v5188_v62 }
 0x2cb   :  { %5263 = vrsqrt.f32 %v2238_v12  ;;  %vm2245_vm7 = vweird.f32 %v2238_v12 }
 0x2d1   :  { %v5264_v15 = vpop.eup %5263 }
 0x2d2   :  { %v2240_v10 = vmul.f32 %v5264_v15, %v2238_v12  ;;  %vm2246_vm6 = vweird.f32 %v5264_v15 }
 0x2d3   :  { %vm2247_vm8 = vmor %vm2245_vm7, %vm2246_vm6 }
 0x2d4   :  { %v2241_v9 = vmul.f32 %v5264_v15, %v2240_v10 }
 0x2d6   :  { %v2242_v1 = vmul.f32 0.5, %v2241_v9 }
 0x2d8   :  { %v2243_v48 = vsub.f32 1.5, %v2242_v1 }
 0x2da   :  { %v2244_v29 = vmul.f32 %v5264_v15, %v2243_v48 }
 0x2dc   :  { %v2248_v20 = vsel %vm2247_vm8, %v5264_v15, %v2244_v29 }
 0x2dd   :  { %v2250_v47 = vmul.f32 %v2249_v31, %v2248_v20 }
 0x2df   :  { %v2252_v13 = vmul.f32 %v2250_v47, %v2234_v17  ;;  %v6608_v53 = vperm.slane %v2250_v47, 0  ;;  %v7801_v17 = vld [vmem:[#allocation13_spill] sm:$0xff] }
 0x2e1   :  { %v2253_v37 = vsub.f32 %v2251_v33, %v2252_v13  ;;  %v2277_v5 = vmul.f32 %v6608_v53, %v6588_v50  ;;  %v2278_v54 = vmul.f32 %v6608_v53, %v6590_v30  ;;  %v2255_v46 = vmul.f32 %v6608_v53, %v6188_v25  ;;  %v7803_v50 = vld [vmem:[#allocation15_spill] sm:$0xff] }
 0x2e2   :  { %v2256_v28 = vmul.f32 %v6608_v53, %v6201_v39  ;;  %v2257_v60 = vmul.f32 %v6608_v53, %v7800_v38  ;;  %v2258_v41 = vmul.f32 %v6608_v53, %v7801_v17  ;;  %v2259_v12 = vmul.f32 %v6608_v53, %v7802_v24 }
 0x2e3   :  { %v6624_v4 = vperm.slane %v2253_v37, 0  ;;  %v2260_v30 = vmul.f32 %v6608_v53, %v7803_v50  ;;  %v2261_v25 = vmul.f32 %v6608_v53, %v6253_v49  ;;  %v2262_v39 = vmul.f32 %v6608_v53, %v6262_v43  ;;  %v7804_v37 = vld [vmem:[#allocation12_spill] sm:$0xff] }
 0x2e4   :  { %v2263_v34 = vmul.f32 %v6608_v53, %v6271_v26  ;;  %v2264_v21 = vmul.f32 %v6608_v53, %v6280_v45  ;;  %v2265_v62 = vmul.f32 %v6608_v53, %v6289_v52  ;;  %v2266_v44 = vmul.f32 %v6608_v53, %v6305_v19 }
 0x2e5   :  { %v2305_v15 = vadd.f32 %v6624_v4, %v2277_v5  ;;  %v2306_v10 = vadd.f32 %v6624_v4, %v2278_v54  ;;  %v2283_v49 = vadd.f32 %v6624_v4, %v2255_v46  ;;  %v2284_v43 = vadd.f32 %v6624_v4, %v2256_v28  ;;  %v7805_v54 = vld [vmem:[#allocation16_spill] sm:$0xff]  ;;  %v7806_v28 = vld [vmem:[#allocation17_spill] sm:$0xff] }
 0x2e6   :  { %v2285_v9 = vadd.f32 %v6624_v4, %v2257_v60  ;;  %v2286_v26 = vadd.f32 %v6624_v4, %v2258_v41  ;;  %v2287_v45 = vadd.f32 %v6624_v4, %v2259_v12  ;;  %v2288_v1 = vadd.f32 %v6624_v4, %v2260_v30  ;;  %v7807_v60 = vld [vmem:[#allocation20_spill] sm:$0xff]  ;;  %v7808_v41 = vld [vmem:[#allocation18_spill] sm:$0xff]  ;;  %v7809_v12 = vld [vmem:[#allocation21_spill] sm:$0xff] }
 0x2e7   :  { %v2330_v52 = vmax.f32 %v2305_v15, 0.0  ;;  %v2331_v48 = vmax.f32 %v2306_v10, 0.0  ;;  %v2308_v29 = vmax.f32 %v2283_v49, 0.0  ;;  %v2309_v19 = vmax.f32 %v2284_v43, 0.0 }
 0x2e8   :  { %v2310_v31 = vmax.f32 %v2285_v9, 0.0  ;;  %v2311_v20 = vmax.f32 %v2286_v26, 0.0  ;;  %v2312_v47 = vmax.f32 %v2287_v45, 0.0  ;;  %v2313_v33 = vmax.f32 %v2288_v1, 0.0 }
 0x2e9   :  { %v2355_v36 = vmul.f32 %v2330_v52, %v6592_v57  ;;  %v2356_v13 = vmul.f32 %v2331_v48, %v6594_v58  ;;  %v2333_v5 = vmul.f32 %v2308_v29, %v7804_v37  ;;  %v2334_v46 = vmul.f32 %v2309_v19, %v7805_v54  ;;  %v7810_v19 = vld [vmem:[#allocation19_spill] sm:$0xff] }
 0x2ea   :  { %v2335_v38 = vmul.f32 %v2310_v31, %v7806_v28  ;;  %v2336_v17 = vmul.f32 %v2311_v20, %v7807_v60  ;;  %v2337_v24 = vmul.f32 %v2312_v47, %v7808_v41  ;;  %v2338_v50 = vmul.f32 %v2313_v33, %v7809_v12  ;;  %v7811_v20 = vld [vmem:[#allocation22_spill] sm:$0xff] }
 0x2eb   :  { %v6656_v30 = vpack.c.bf16 %v2356_v13, %v2355_v36  ;;  %v6658_v15 = vpack.c.bf16 %v2334_v46, %v2333_v5  ;;  %v2289_v10 = vadd.f32 %v6624_v4, %v2261_v25  ;;  %v2290_v49 = vadd.f32 %v6624_v4, %v2262_v39  ;;  %v7812_v36 = vld [vmem:[#allocation24_spill] sm:$0xff]  ;;  %v7813_v13 = vld [vmem:[#allocation23_spill] sm:$0xff] }
 0x2ec   :  { %v6662_v43 = vpack.c.bf16 %v2336_v17, %v2335_v38  ;;  %v6664_v9 = vpack.c.bf16 %v2338_v50, %v2337_v24  ;;  %v2291_v26 = vadd.f32 %v6624_v4, %v2263_v34  ;;  %v2292_v45 = vadd.f32 %v6624_v4, %v2264_v21  ;;  %v7815_v50 = vld [vmem:[#allocation26_spill] sm:$0xff] }
 0x2ed   :  { %2443 = vmatmul.bf16.vlgmr.msra.gmra.mxu1 %v6658_v15  ;;  %2656 = vmatmul.bf16.vlgmr.msrb.gmra.mxu2 %v6658_v15  ;;  %v2314_v1 = vmax.f32 %v2289_v10, 0.0  ;;  %v2315_v52 = vmax.f32 %v2290_v49, 0.0  ;;  %v2293_v48 = vadd.f32 %v6624_v4, %v2265_v62  ;;  %v2294_v25 = vadd.f32 %v6624_v4, %v2266_v44 }
 0x2ee   :  { %2869 = vmatmul.bf16.vlgmr.msrb.gmra.mxu3 %v6658_v15  ;;  %3082 = vmatmul.bf16.vlgmr.msrb.gmra.mxu0 %v6658_v15  ;;  %v2316_v39 = vmax.f32 %v2291_v26, 0.0  ;;  %v2317_v29 = vmax.f32 %v2292_v45, 0.0  ;;  %v2267_v34 = vmul.f32 %v6608_v53, %v6417_v3  ;;  %v2268_v21 = vmul.f32 %v6608_v53, %v6428_v11  ;;  %v7814_v3 = vld [vmem:[#allocation25_spill] sm:$0xff] }
 0x2ef   :  { %v2339_v31 = vmul.f32 %v2314_v1, %v7810_v19  ;;  %v2340_v47 = vmul.f32 %v2315_v52, %v7811_v20  ;;  %v2318_v33 = vmax.f32 %v2293_v48, 0.0  ;;  %v2319_v62 = vmax.f32 %v2294_v25, 0.0 }
 0x2f0   :  { %v2341_v44 = vmul.f32 %v2316_v39, %v7812_v36  ;;  %v2342_v5 = vmul.f32 %v2317_v29, %v7813_v13  ;;  %v2295_v46 = vadd.f32 %v6624_v4, %v2267_v34  ;;  %v2296_v38 = vadd.f32 %v6624_v4, %v2268_v21 }
 0x2f1   :  { %v6684_v17 = vpack.c.bf16 %v2340_v47, %v2339_v31  ;;  %v2343_v24 = vmul.f32 %v2318_v33, %v7814_v3  ;;  %v2344_v11 = vmul.f32 %v2319_v62, %v7815_v50  ;;  %v2269_v10 = vmul.f32 %v6608_v53, %v6470_v55 }
 0x2f2   :  { %v6690_v49 = vpack.c.bf16 %v2342_v5, %v2341_v44  ;;  %v2320_v26 = vmax.f32 %v2295_v46, 0.0  ;;  %v2321_v45 = vmax.f32 %v2296_v38, 0.0  ;;  %v2270_v1 = vmul.f32 %v6608_v53, %v6476_v8 }
 0x2f3   :  { %v6694_v52 = vpack.c.bf16 %v2344_v11, %v2343_v24  ;;  %v2297_v48 = vadd.f32 %v6624_v4, %v2269_v10  ;;  %v2271_v25 = vmul.f32 %v6608_v53, %v6507_v59  ;;  %v2272_v39 = vmul.f32 %v6608_v53, %v6518_v16 }
 0x2f4   :  { %v2345_v29 = vmul.f32 %v2320_v26, %v6402_v63  ;;  %v2346_v55 = vmul.f32 %v2321_v45, %v6439_v56  ;;  %v2298_v34 = vadd.f32 %v6624_v4, %v2270_v1  ;;  %v2273_v21 = vmul.f32 %v6608_v53, %v6532_v23 }
 0x2f5   :  { %v2322_v8 = vmax.f32 %v2297_v48, 0.0  ;;  %v2299_v31 = vadd.f32 %v6624_v4, %v2271_v25  ;;  %v2300_v47 = vadd.f32 %v6624_v4, %v2272_v39  ;;  %v2274_v59 = vmul.f32 %v6608_v53, %v6540_v32 }
 0x2f6   :  { %v6710_v33 = vpack.c.bf16 %v2346_v55, %v2345_v29  ;;  %v2323_v16 = vmax.f32 %v2298_v34, 0.0  ;;  %v2301_v62 = vadd.f32 %v6624_v4, %v2273_v21  ;;  %v2275_v44 = vmul.f32 %v6608_v53, %v6556_v6 }
 0x2f7   :  { %v2347_v5 = vmul.f32 %v2322_v8, %v6458_v2  ;;  %v2324_v46 = vmax.f32 %v2299_v31, 0.0  ;;  %v2325_v23 = vmax.f32 %v2300_v47, 0.0  ;;  %v2302_v38 = vadd.f32 %v6624_v4, %v2274_v59  ;;  %v5199_v59 = vld [vmem:[#allocation5 + $0x118] sm:$0xff] }
 0x2f8   :  { %v2348_v24 = vmul.f32 %v2323_v16, %v6447_v7  ;;  %v2326_v11 = vmax.f32 %v2301_v62, 0.0  ;;  %v2276_v32 = vmul.f32 %v6608_v53, %v6571_v22  ;;  %v2303_v10 = vadd.f32 %v6624_v4, %v2275_v44  ;;  %v5198_v16 = vld [vmem:[#allocation5 + $0x110] sm:$0xff] }
 0x2f9   :  { %v2349_v26 = vmul.f32 %v2324_v46, %v6505_v40  ;;  %v2350_v45 = vmul.f32 %v2325_v23, %v6511_v27  ;;  %v2327_v1 = vmax.f32 %v2302_v38, 0.0  ;;  %v2279_v6 = vmul.f32 %v6608_v53, %v6174_v0  ;;  %v5201_v53 = vld [vmem:[#allocation5 + $0x128] sm:$0xff] }
 0x2fa   :  { %v6725_v48 = vpack.c.bf16 %v2348_v24, %v2347_v5  ;;  %v2351_v25 = vmul.f32 %v2326_v11, %v6496_v14  ;;  %v2304_v39 = vadd.f32 %v6624_v4, %v2276_v32  ;;  %v2328_v29 = vmax.f32 %v2303_v10, 0.0  ;;  %3289 = vmatpush.bf16.msrb.mxu1 %v5201_v53  ;;  %v5197_v5 = vld [vmem:[#allocation5 + $0x108] sm:$0xff] }
 0x2fb   :  { %v6729_v55 = vpack.c.bf16 %v2350_v45, %v2349_v26  ;;  %v2352_v22 = vmul.f32 %v2327_v1, %v6554_v18  ;;  %v6733_v34 = vadd.f32 %v6624_v4, %v2279_v6  ;;  %v5200_v4 = vld [vmem:[#allocation5 + $0x120] sm:$0xff] }
 0x2fc   :  { %v2329_v21 = vmax.f32 %v2304_v39, 0.0  ;;  %v2353_v8 = vmul.f32 %v2328_v29, %v6559_v51 }
 0x2fd   :  { %2448 = vmatmul.bf16.gmra.mxu1 %v6662_v43  ;;  %2661 = vmatmul.bf16.gmra.mxu2 %v6662_v43  ;;  %v6738_v0 = vpack.c.bf16 %v2352_v22, %v2351_v25 }
 0x2fe   :  { %2874 = vmatmul.bf16.gmra.mxu3 %v6662_v43  ;;  %3087 = vmatmul.bf16.gmra.mxu0 %v6662_v43  ;;  %v2354_v31 = vmul.f32 %v2329_v21, %v6552_v61 }
 0x2ff   :  { %7816 = vst [vmem:[#allocation11_spill] sm:$0xff] %v6738_v0  ;;  %3290 = vmatpush.bf16.msrb.mxu1 %v5200_v4 }
 0x300   :  { %v6743_v47 = vpack.c.bf16 %v2354_v31, %v2353_v8 }
 0x303   :  { %3291 = vmatpush.bf16.msrb.mxu1 %v5199_v59 }
 0x307   :  { %3292 = vmatpush.bf16.msrb.mxu1 %v5198_v16 }
 0x30b   :  { %3293 = vmatpush.bf16.msrb.mxu1 %v5197_v5 }
 0x30d   :  { %2453 = vmatmul.bf16.gmra.mxu1 %v6664_v9  ;;  %2666 = vmatmul.bf16.gmra.mxu2 %v6664_v9 }
 0x30e   :  { %2879 = vmatmul.bf16.gmra.mxu3 %v6664_v9  ;;  %3092 = vmatmul.bf16.gmra.mxu0 %v6664_v9 }
 0x31d   :  { %2458 = vmatmul.bf16.gmra.mxu1 %v6684_v17  ;;  %2671 = vmatmul.bf16.gmra.mxu2 %v6684_v17 }
 0x31e   :  { %2884 = vmatmul.bf16.gmra.mxu3 %v6684_v17  ;;  %3097 = vmatmul.bf16.gmra.mxu0 %v6684_v17 }
 0x32d   :  { %2463 = vmatmul.bf16.gmra.mxu1 %v6690_v49  ;;  %2676 = vmatmul.bf16.gmra.mxu2 %v6690_v49 }
 0x32e   :  { %2889 = vmatmul.bf16.gmra.mxu3 %v6690_v49  ;;  %3102 = vmatmul.bf16.gmra.mxu0 %v6690_v49 }
 0x33d   :  { %2468 = vmatmul.bf16.gmra.mxu1 %v6694_v52  ;;  %2681 = vmatmul.bf16.gmra.mxu2 %v6694_v52 }
 0x33e   :  { %2894 = vmatmul.bf16.gmra.mxu3 %v6694_v52  ;;  %3107 = vmatmul.bf16.gmra.mxu0 %v6694_v52 }
 0x34d   :  { %2473 = vmatmul.bf16.gmra.mxu1 %v6710_v33  ;;  %2686 = vmatmul.bf16.gmra.mxu2 %v6710_v33 }
 0x34e   :  { %2899 = vmatmul.bf16.gmra.mxu3 %v6710_v33  ;;  %3112 = vmatmul.bf16.gmra.mxu0 %v6710_v33 }
 0x35d   :  { %2478 = vmatmul.bf16.gmra.mxu1 %v6725_v48  ;;  %2691 = vmatmul.bf16.gmra.mxu2 %v6725_v48 }
 0x35e   :  { %2904 = vmatmul.bf16.gmra.mxu3 %v6725_v48  ;;  %3117 = vmatmul.bf16.gmra.mxu0 %v6725_v48 }
 0x36a   :  { %v6769_v62 = vpop.f32.mrf.mxu1 }
 0x36b   :  { %v6771_v44 = vpop.f32.mrf.mxu0  ;;  %v7740_v24 = vrot.slane %v6769_v62, 5 }
 0x36c   :  { %v7739_v10 = vrot.slane %v6771_v44, 7 }
 0x36d   :  { %2483 = vmatmul.bf16.gmra.mxu1 %v6729_v55  ;;  %2696 = vmatmul.bf16.gmra.mxu2 %v6729_v55 }
 0x36e   :  { %2909 = vmatmul.bf16.gmra.mxu3 %v6729_v55  ;;  %3122 = vmatmul.bf16.gmra.mxu0 %v6729_v55 }
 0x370   :  { %v6777_v46 = vpop.f32.mrf.mxu2 }
 0x371   :  { %v6779_v23 = vpop.f32.mrf.mxu3  ;;  %v7738_v25 = vrot.slane %v6777_v46, 6 }
 0x372   :  { %v2446_v38 = vpop.f32.mrf.mxu1  ;;  %v7737_v22 = vrot.slane %v6779_v23, 7 }
 0x373   :  { %v2509_v11 = vrot.slane %v2446_v38, 5  ;;  %v3085_v32 = vpop.f32.mrf.mxu0 }
 0x374   :  { %v3148_v26 = vrot.slane %v3085_v32, 7  ;;  %v5211_v32 = vld [vmem:[#allocation5 + $0x178] sm:$0xff] }
 0x375   :  { %v2556_v45 = vsel %vm289_vm0, %v7740_v24, %v2509_v11  ;;  %3450 = vmatpush.bf16.msra.mxu2 %v5211_v32  ;;  %v5210_v32 = vld [vmem:[#allocation5 + $0x170] sm:$0xff] }
 0x376   :  { %v6791_v1 = vsel %vm717_vm2, %v7739_v10, %v3148_v26 }
 0x378   :  { %v2659_v6 = vpop.f32.mrf.mxu2 }
 0x379   :  { %v2722_v39 = vrot.slane %v2659_v6, 6  ;;  %v2872_v29 = vpop.f32.mrf.mxu3  ;;  %v5219_v6 = vld [vmem:[#allocation5 + $0x1b8] sm:$0xff]  ;;  %3451 = vmatpush.bf16.msra.mxu2 %v5210_v32 }
 0x37a   :  { %v2935_v21 = vrot.slane %v2872_v29, 7  ;;  %v2449_v8 = vpop.f32.mrf.mxu1  ;;  %v5227_v29 = vld [vmem:[#allocation5 + $0x1f8] sm:$0xff]  ;;  %3663 = vmatpush.bf16.msra.mxu3 %v5219_v6  ;;  %v5218_v6 = vld [vmem:[#allocation5 + $0x1b0] sm:$0xff] }
 0x37b   :  { %v2769_v53 = vsel %vm503_vm1, %v7738_v25, %v2722_v39  ;;  %v2510_v31 = vrot.slane %v2449_v8, 5  ;;  %v3088_v4 = vpop.f32.mrf.mxu0  ;;  %3876 = vmatpush.bf16.msra.mxu0 %v5227_v29 }
 0x37c   :  { %v3149_v59 = vrot.slane %v3088_v4, 7  ;;  %v2773_v16 = vadd.f32 %v2769_v53, %v2556_v45  ;;  %v2982_v5 = vsel %vm717_vm2, %v7737_v22, %v2935_v21 }
 0x37d   :  { %v2555_v38 = vsel %vm289_vm0, %v2509_v11, %v2510_v31  ;;  %2488 = vmatmul.bf16.gmra.mxu1 %v6738_v0  ;;  %2701 = vmatmul.bf16.gmra.mxu2 %v6738_v0 }
 0x37e   :  { %2914 = vmatmul.bf16.gmra.mxu3 %v6738_v0  ;;  %3127 = vmatmul.bf16.gmra.mxu0 %v6738_v0  ;;  %v2986_v45 = vadd.f32 %v2982_v5, %v2773_v16  ;;  %v3194_v8 = vsel %vm717_vm2, %v3148_v26, %v3149_v59 }
 0x37f   :  { %3664 = vmatpush.bf16.msra.mxu3 %v5218_v6 }
 0x380   :  { %v2662_v53 = vpop.f32.mrf.mxu2  ;;  %v6811_v4 = vadd.f32 %v3194_v8, %v2986_v45  ;;  %v5226_v45 = vld [vmem:[#allocation5 + $0x1f0] sm:$0xff]  ;;  %v5196_v8 = vld [vmem:[#allocation5 + $0x100] sm:$0xff] }
 0x381   :  { %v2723_v11 = vrot.slane %v2662_v53, 6  ;;  %v2875_v22 = vpop.f32.mrf.mxu3  ;;  %3877 = vmatpush.bf16.msra.mxu0 %v5226_v45  ;;  %3294 = vmatpush.bf16.msrb.mxu1 %v5196_v8  ;;  %v5208_v8 = vld [vmem:[#allocation5 + $0x160] sm:$0xff] }
 0x382   :  { %v2936_v25 = vrot.slane %v2875_v22, 7  ;;  %v2451_v10 = vpop.f32.mrf.mxu1 }
 0x383   :  { %v2768_v24 = vsel %vm503_vm1, %v2722_v39, %v2723_v11  ;;  %v2511_v58 = vrot.slane %v2451_v10, 5  ;;  %v3090_v57 = vpop.f32.mrf.mxu0  ;;  %v5209_v10 = vld [vmem:[#allocation5 + $0x168] sm:$0xff] }
 0x384   :  { %v2774_v61 = vadd.f32 %v2768_v24, %v2555_v38  ;;  %v2981_v16 = vsel %vm717_vm2, %v2935_v21, %v2936_v25  ;;  %v3150_v26 = vrot.slane %v3090_v57, 7  ;;  %v5217_v39 = vld [vmem:[#allocation5 + $0x1a8] sm:$0xff]  ;;  %3452 = vmatpush.bf16.msra.mxu2 %v5209_v10 }
 0x385   :  { %v2554_v5 = vsel %vm289_vm0, %v2510_v31, %v2511_v58  ;;  %v5225_v21 = vld [vmem:[#allocation5 + $0x1e8] sm:$0xff]  ;;  %3665 = vmatpush.bf16.msra.mxu3 %v5217_v39 }
 0x386   :  { %v2987_v29 = vadd.f32 %v2981_v16, %v2774_v61  ;;  %v3193_v22 = vsel %vm717_vm2, %v3149_v59, %v3150_v26  ;;  %3878 = vmatpush.bf16.msra.mxu0 %v5225_v21 }
 0x388   :  { %v2664_v24 = vpop.f32.mrf.mxu2  ;;  %v6821_v57 = vadd.f32 %v3193_v22, %v2987_v29  ;;  %v5216_v29 = vld [vmem:[#allocation5 + $0x1a0] sm:$0xff]  ;;  %3453 = vmatpush.bf16.msra.mxu2 %v5208_v8  ;;  %v5223_v22 = vld [vmem:[#allocation5 + $0x1d8] sm:$0xff] }
 0x389   :  { %v2724_v38 = vrot.slane %v2664_v24, 6  ;;  %v2877_v31 = vpop.f32.mrf.mxu3  ;;  %3666 = vmatpush.bf16.msra.mxu3 %v5216_v29 }
 0x38a   :  { %v2937_v53 = vrot.slane %v2877_v31, 7  ;;  %v2454_v51 = vpop.f32.mrf.mxu1 }
 0x38b   :  { %v2767_v61 = vsel %vm503_vm1, %v2723_v11, %v2724_v38  ;;  %v2512_v16 = vrot.slane %v2454_v51, 5  ;;  %v3093_v18 = vpop.f32.mrf.mxu0  ;;  %v5224_v11 = vld [vmem:[#allocation5 + $0x1e0] sm:$0xff] }
 0x38c   :  { %v3151_v59 = vrot.slane %v3093_v18, 7  ;;  %v2775_v32 = vadd.f32 %v2767_v61, %v2554_v5  ;;  %v2980_v6 = vsel %vm717_vm2, %v2936_v25, %v2937_v53  ;;  %v5207_v25 = vld [vmem:[#allocation5 + $0x158] sm:$0xff]  ;;  %3879 = vmatpush.bf16.msra.mxu0 %v5224_v11 }
 0x38d   :  { %v2553_v45 = vsel %vm289_vm0, %v2511_v58, %v2512_v16  ;;  %2493 = vmatmul.bf16.gmra.mxu1 %v6743_v47  ;;  %2706 = vmatmul.bf16.gmra.mxu2 %v6743_v47  ;;  %v5215_v5 = vld [vmem:[#allocation5 + $0x198] sm:$0xff] }
 0x38e   :  { %2919 = vmatmul.bf16.gmra.mxu3 %v6743_v47  ;;  %3132 = vmatmul.bf16.gmra.mxu0 %v6743_v47  ;;  %v2988_v18 = vadd.f32 %v2980_v6, %v2775_v32  ;;  %v3192_v51 = vsel %vm717_vm2, %v3150_v26, %v3151_v59 }
 0x38f   :  { %3454 = vmatpush.bf16.msra.mxu2 %v5207_v25  ;;  %3667 = vmatpush.bf16.msra.mxu3 %v5215_v5  ;;  %v5205_v25 = vld [vmem:[#allocation5 + $0x148] sm:$0xff] }
 0x390   :  { %v2667_v58 = vpop.f32.mrf.mxu2  ;;  %v6835_v10 = vadd.f32 %v3192_v51, %v2988_v18  ;;  %3880 = vmatpush.bf16.msra.mxu0 %v5223_v22  ;;  %v5206_v18 = vld [vmem:[#allocation5 + $0x150] sm:$0xff]  ;;  %v5213_v5 = vld [vmem:[#allocation5 + $0x188] sm:$0xff] }
 0x391   :  { %v2725_v39 = vrot.slane %v2667_v58, 6  ;;  %v2880_v24 = vpop.f32.mrf.mxu3  ;;  %v5214_v51 = vld [vmem:[#allocation5 + $0x190] sm:$0xff] }
 0x392   :  { %v2938_v21 = vrot.slane %v2880_v24, 7  ;;  %v2456_v31 = vpop.f32.mrf.mxu1  ;;  %v5222_v58 = vld [vmem:[#allocation5 + $0x1d0] sm:$0xff] }
 0x393   :  { %v2766_v61 = vsel %vm503_vm1, %v2724_v38, %v2725_v39  ;;  %v2513_v32 = vrot.slane %v2456_v31, 5  ;;  %v3095_v6 = vpop.f32.mrf.mxu0  ;;  %3455 = vmatpush.bf16.msra.mxu2 %v5206_v18  ;;  %3668 = vmatpush.bf16.msra.mxu3 %v5214_v51  ;;  %v5221_v31 = vld [vmem:[#allocation5 + $0x1c8] sm:$0xff] }
 0x394   :  { %v2776_v26 = vadd.f32 %v2766_v61, %v2553_v45  ;;  %v2979_v8 = vsel %vm717_vm2, %v2937_v53, %v2938_v21  ;;  %v3152_v29 = vrot.slane %v3095_v6, 7  ;;  %3881 = vmatpush.bf16.msra.mxu0 %v5222_v58 }
 0x395   :  { %v2552_v11 = vsel %vm289_vm0, %v2512_v16, %v2513_v32 }
 0x396   :  { %v2989_v24 = vadd.f32 %v2979_v8, %v2776_v26  ;;  %v3191_v38 = vsel %vm717_vm2, %v3151_v59, %v3152_v29 }
 0x397   :  { %3456 = vmatpush.bf16.msra.mxu2 %v5205_v25  ;;  %3669 = vmatpush.bf16.msra.mxu3 %v5213_v5  ;;  %v5235_v25 = vld [vmem:[#allocation5 + $0x238] sm:$0xff] }
 0x398   :  { %v2669_v45 = vpop.f32.mrf.mxu2  ;;  %v6845_v53 = vadd.f32 %v3191_v38, %v2989_v24  ;;  %3882 = vmatpush.bf16.msra.mxu0 %v5221_v31  ;;  %v5204_v24 = vld [vmem:[#allocation5 + $0x140] sm:$0xff]  ;;  %4089 = vmatpush.bf16.msra.mxu1 %v5235_v25 }
 0x399   :  { %v2726_v22 = vrot.slane %v2669_v45, 6  ;;  %v2882_v61 = vpop.f32.mrf.mxu3  ;;  %v5212_v38 = vld [vmem:[#allocation5 + $0x180] sm:$0xff] }
 0x39a   :  { %v2939_v6 = vrot.slane %v2882_v61, 7  ;;  %v2459_v16 = vpop.f32.mrf.mxu1 }
 0x39b   :  { %v2765_v14 = vsel %vm503_vm1, %v2725_v39, %v2726_v22  ;;  %v2514_v26 = vrot.slane %v2459_v16, 5  ;;  %v3098_v8 = vpop.f32.mrf.mxu0  ;;  %v5220_v39 = vld [vmem:[#allocation5 + $0x1c0] sm:$0xff]  ;;  %3457 = vmatpush.bf16.msra.mxu2 %v5204_v24  ;;  %3670 = vmatpush.bf16.msra.mxu3 %v5212_v38 }
 0x39c   :  { %v3153_v59 = vrot.slane %v3098_v8, 7  ;;  %v2777_v18 = vadd.f32 %v2765_v14, %v2552_v11  ;;  %v2978_v51 = vsel %vm717_vm2, %v2938_v21, %v2939_v6  ;;  %3883 = vmatpush.bf16.msra.mxu0 %v5220_v39 }
 0x39d   :  { %v2551_v58 = vsel %vm289_vm0, %v2513_v32, %v2514_v26  ;;  %2498 = vmatmul.bf16.gmra.mxu1 %v6656_v30  ;;  %2711 = vmatmul.bf16.gmra.mxu2 %v6656_v30 }
 0x39e   :  { %2924 = vmatmul.bf16.gmra.mxu3 %v6656_v30  ;;  %3137 = vmatmul.bf16.gmra.mxu0 %v6656_v30  ;;  %v2990_v5 = vadd.f32 %v2978_v51, %v2777_v18  ;;  %v3190_v14 = vsel %vm717_vm2, %v3152_v29, %v3153_v59  ;;  %v2332_v18 = vmax.f32 %v6733_v34, 0.0 }
 0x3a0   :  { %v2672_v21 = vpop.f32.mrf.mxu2  ;;  %v6859_v32 = vadd.f32 %v3190_v14, %v2990_v5  ;;  %v2357_v5 = vmul.f32 %v2332_v18, %v6586_v42 }
 0x3a1   :  { %v2727_v11 = vrot.slane %v2672_v21, 6  ;;  %v2885_v45 = vpop.f32.mrf.mxu3 }
 0x3a2   :  { %v2940_v31 = vrot.slane %v2885_v45, 7  ;;  %v2461_v61 = vpop.f32.mrf.mxu1 }
 0x3a3   :  { %v2764_v16 = vsel %vm503_vm1, %v2726_v22, %v2727_v11  ;;  %v2515_v8 = vrot.slane %v2461_v61, 5  ;;  %v3100_v27 = vpop.f32.mrf.mxu0 }
 0x3a4   :  { %v2778_v51 = vadd.f32 %v2764_v16, %v2551_v58  ;;  %v2977_v29 = vsel %vm717_vm2, %v2939_v6, %v2940_v31  ;;  %v3154_v24 = vrot.slane %v3100_v27, 7  ;;  %v6875_v16 = vpack.c.bf16 %v2357_v5, %v2357_v5 }
 0x3a5   :  { %v2550_v38 = vsel %vm289_vm0, %v2514_v26, %v2515_v8 }
 0x3a6   :  { %v2991_v39 = vadd.f32 %v2977_v29, %v2778_v51  ;;  %v3189_v25 = vsel %vm717_vm2, %v3153_v59, %v3154_v24 }
 0x3a8   :  { %v2674_v14 = vpop.f32.mrf.mxu2  ;;  %v6871_v22 = vadd.f32 %v3189_v25, %v2991_v39 }
 0x3a9   :  { %v2728_v21 = vrot.slane %v2674_v14, 6  ;;  %v2887_v45 = vpop.f32.mrf.mxu3 }
 0x3aa   :  { %v2941_v34 = vrot.slane %v2887_v45, 7  ;;  %v2464_v58 = vpop.f32.mrf.mxu1 }
 0x3ab   :  { %v2763_v6 = vsel %vm503_vm1, %v2727_v11, %v2728_v21  ;;  %v2516_v27 = vrot.slane %v2464_v58, 5  ;;  %v3103_v61 = vpop.f32.mrf.mxu0 }
 0x3ac   :  { %v3155_v26 = vrot.slane %v3103_v61, 7  ;;  %v2779_v51 = vadd.f32 %v2763_v6, %v2550_v38  ;;  %v2976_v59 = vsel %vm717_vm2, %v2940_v31, %v2941_v34 }
 0x3ad   :  { %v2549_v18 = vsel %vm289_vm0, %v2515_v8, %v2516_v27  ;;  %2503 = vmatmul.bf16.gmra.mxu1 %v6875_v16  ;;  %2716 = vmatmul.bf16.gmra.mxu2 %v6875_v16 }
 0x3ae   :  { %2929 = vmatmul.bf16.gmra.mxu3 %v6875_v16  ;;  %3142 = vmatmul.bf16.gmra.mxu0 %v6875_v16  ;;  %v2992_v11 = vadd.f32 %v2976_v59, %v2779_v51  ;;  %v3188_v29 = vsel %vm717_vm2, %v3154_v24, %v3155_v26  ;;  %v5234_v59 = vld [vmem:[#allocation5 + $0x230] sm:$0xff] }
 0x3af   :  { %4090 = vmatpush.bf16.msra.mxu1 %v5234_v59 }
 0x3b0   :  { %v2677_v39 = vpop.f32.mrf.mxu2  ;;  %v6887_v38 = vadd.f32 %v3188_v29, %v2992_v11 }
 0x3b1   :  { %v2729_v25 = vrot.slane %v2677_v39, 6  ;;  %v2890_v31 = vpop.f32.mrf.mxu3 }
 0x3b2   :  { %v2942_v5 = vrot.slane %v2890_v31, 7  ;;  %v2466_v14 = vpop.f32.mrf.mxu1 }
 0x3b3   :  { %v2762_v8 = vsel %vm503_vm1, %v2728_v21, %v2729_v25  ;;  %v2517_v45 = vrot.slane %v2466_v14, 5  ;;  %v3105_v58 = vpop.f32.mrf.mxu0 }
 0x3b4   :  { %v2780_v6 = vadd.f32 %v2762_v8, %v2549_v18  ;;  %v2975_v61 = vsel %vm717_vm2, %v2941_v34, %v2942_v5  ;;  %v3156_v51 = vrot.slane %v3105_v58, 7 }
 0x3b5   :  { %v2548_v24 = vsel %vm289_vm0, %v2516_v27, %v2517_v45 }
 0x3b6   :  { %v2993_v11 = vadd.f32 %v2975_v61, %v2780_v6  ;;  %v3187_v29 = vsel %vm717_vm2, %v3155_v26, %v3156_v51 }
 0x3b8   :  { %v2679_v39 = vpop.f32.mrf.mxu2  ;;  %v6897_v31 = vadd.f32 %v3187_v29, %v2993_v11 }
 0x3b9   :  { %v2730_v21 = vrot.slane %v2679_v39, 6  ;;  %v2892_v14 = vpop.f32.mrf.mxu3 }
 0x3ba   :  { %v2943_v42 = vrot.slane %v2892_v14, 7  ;;  %v2469_v18 = vpop.f32.mrf.mxu1 }
 0x3bb   :  { %v2761_v34 = vsel %vm503_vm1, %v2729_v25, %v2730_v21  ;;  %v2518_v8 = vrot.slane %v2469_v18, 5  ;;  %v3108_v58 = vpop.f32.mrf.mxu0 }
 0x3bc   :  { %v3157_v40 = vrot.slane %v3108_v58, 7  ;;  %v2781_v27 = vadd.f32 %v2761_v34, %v2548_v24  ;;  %v2974_v6 = vsel %vm717_vm2, %v2942_v5, %v2943_v42 }
 0x3bd   :  { %v2547_v26 = vsel %vm289_vm0, %v2517_v45, %v2518_v8  ;;  %3295 = vmatmul.bf16.vlgmr.msrb.gmra.mxu1 %v6658_v15  ;;  %3458 = vmatmul.bf16.vlgmr.msra.gmra.mxu2 %v6658_v15 }
 0x3be   :  { %3671 = vmatmul.bf16.vlgmr.msra.gmra.mxu3 %v6658_v15  ;;  %3884 = vmatmul.bf16.vlgmr.msra.gmra.mxu0 %v6658_v15  ;;  %v2994_v61 = vadd.f32 %v2974_v6, %v2781_v27  ;;  %v3186_v25 = vsel %vm717_vm2, %v3156_v51, %v3157_v40 }
 0x3c0   :  { %v2682_v59 = vpop.f32.mrf.mxu2  ;;  %v6911_v24 = vadd.f32 %v3186_v25, %v2994_v61 }
 0x3c1   :  { %v2731_v11 = vrot.slane %v2682_v59, 6  ;;  %v2895_v5 = vpop.f32.mrf.mxu3 }
 0x3c2   :  { %v2944_v29 = vrot.slane %v2895_v5, 7  ;;  %v2471_v39 = vpop.f32.mrf.mxu1 }
 0x3c3   :  { %v2760_v45 = vsel %vm503_vm1, %v2730_v21, %v2731_v11  ;;  %v2519_v14 = vrot.slane %v2471_v39, 5  ;;  %v3110_v18 = vpop.f32.mrf.mxu0 }
 0x3c4   :  { %v2782_v34 = vadd.f32 %v2760_v45, %v2547_v26  ;;  %v2973_v58 = vsel %vm717_vm2, %v2943_v42, %v2944_v29  ;;  %v3158_v27 = vrot.slane %v3110_v18, 7 }
 0x3c5   :  { %v2546_v51 = vsel %vm289_vm0, %v2518_v8, %v2519_v14 }
 0x3c6   :  { %v2995_v6 = vadd.f32 %v2973_v58, %v2782_v34  ;;  %v3185_v61 = vsel %vm717_vm2, %v3157_v40, %v3158_v27 }
 0x3c8   :  { %v2684_v25 = vpop.f32.mrf.mxu2  ;;  %v6921_v59 = vadd.f32 %v3185_v61, %v2995_v6 }
 0x3c9   :  { %v2732_v5 = vrot.slane %v2684_v25, 6  ;;  %v2897_v7 = vpop.f32.mrf.mxu3 }
 0x3ca   :  { %v2945_v21 = vrot.slane %v2897_v7, 7  ;;  %v2474_v39 = vpop.f32.mrf.mxu1 }
 0x3cb   :  { %v2759_v26 = vsel %vm503_vm1, %v2731_v11, %v2732_v5  ;;  %v2520_v45 = vrot.slane %v2474_v39, 5  ;;  %v3113_v42 = vpop.f32.mrf.mxu0 }
 0x3cc   :  { %v3159_v18 = vrot.slane %v3113_v42, 7  ;;  %v2783_v2 = vadd.f32 %v2759_v26, %v2546_v51  ;;  %v2972_v8 = vsel %vm717_vm2, %v2944_v29, %v2945_v21 }
 0x3cd   :  { %v2545_v40 = vsel %vm289_vm0, %v2519_v14, %v2520_v45  ;;  %3300 = vmatmul.bf16.gmra.mxu1 %v6662_v43  ;;  %3463 = vmatmul.bf16.gmra.mxu2 %v6662_v43 }
 0x3ce   :  { %3676 = vmatmul.bf16.gmra.mxu3 %v6662_v43  ;;  %3889 = vmatmul.bf16.gmra.mxu0 %v6662_v43  ;;  %v2996_v7 = vadd.f32 %v2972_v8, %v2783_v2  ;;  %v3184_v11 = vsel %vm717_vm2, %v3158_v27, %v3159_v18  ;;  %v5233_v8 = vld [vmem:[#allocation5 + $0x228] sm:$0xff] }
 0x3cf   :  { %4091 = vmatpush.bf16.msra.mxu1 %v5233_v8 }
 0x3d0   :  { %v2687_v34 = vpop.f32.mrf.mxu2  ;;  %v6935_v58 = vadd.f32 %v3184_v11, %v2996_v7 }
 0x3d1   :  { %v2733_v51 = vrot.slane %v2687_v34, 6  ;;  %v2900_v29 = vpop.f32.mrf.mxu3 }
 0x3d2   :  { %v2946_v6 = vrot.slane %v2900_v29, 7  ;;  %v2476_v61 = vpop.f32.mrf.mxu1 }
 0x3d3   :  { %v2758_v14 = vsel %vm503_vm1, %v2732_v5, %v2733_v51  ;;  %v2521_v25 = vrot.slane %v2476_v61, 5  ;;  %v3115_v39 = vpop.f32.mrf.mxu0 }
 0x3d4   :  { %v2784_v26 = vadd.f32 %v2758_v14, %v2545_v40  ;;  %v2971_v42 = vsel %vm717_vm2, %v2945_v21, %v2946_v6  ;;  %v3160_v2 = vrot.slane %v3115_v39, 7 }
 0x3d5   :  { %v2544_v27 = vsel %vm289_vm0, %v2520_v45, %v2521_v25 }
 0x3d6   :  { %v2997_v7 = vadd.f32 %v2971_v42, %v2784_v26  ;;  %v3183_v11 = vsel %vm717_vm2, %v3159_v18, %v3160_v2 }
 0x3d8   :  { %v2689_v34 = vpop.f32.mrf.mxu2  ;;  %v6945_v29 = vadd.f32 %v3183_v11, %v2997_v7 }
 0x3d9   :  { %v2734_v5 = vrot.slane %v2689_v34, 6  ;;  %v2902_v61 = vpop.f32.mrf.mxu3 }
 0x3da   :  { %v2947_v56 = vrot.slane %v2902_v61, 7  ;;  %v2479_v40 = vpop.f32.mrf.mxu1 }
 0x3db   :  { %v2757_v21 = vsel %vm503_vm1, %v2733_v51, %v2734_v5  ;;  %v2522_v14 = vrot.slane %v2479_v40, 5  ;;  %v3118_v39 = vpop.f32.mrf.mxu0 }
 0x3dc   :  { %v3161_v63 = vrot.slane %v3118_v39, 7  ;;  %v2785_v50 = vadd.f32 %v2757_v21, %v2544_v27  ;;  %v2970_v45 = vsel %vm717_vm2, %v2946_v6, %v2947_v56 }
 0x3dd   :  { %v2543_v18 = vsel %vm289_vm0, %v2521_v25, %v2522_v14  ;;  %3305 = vmatmul.bf16.gmra.mxu1 %v6664_v9  ;;  %3468 = vmatmul.bf16.gmra.mxu2 %v6664_v9 }
 0x3de   :  { %3681 = vmatmul.bf16.gmra.mxu3 %v6664_v9  ;;  %3894 = vmatmul.bf16.gmra.mxu0 %v6664_v9  ;;  %v2998_v26 = vadd.f32 %v2970_v45, %v2785_v50  ;;  %v3182_v51 = vsel %vm717_vm2, %v3160_v2, %v3161_v63 }
 0x3e0   :  { %v2692_v42 = vpop.f32.mrf.mxu2  ;;  %v6959_v8 = vadd.f32 %v3182_v51, %v2998_v26 }
 0x3e1   :  { %v2735_v27 = vrot.slane %v2692_v42, 6  ;;  %v2905_v6 = vpop.f32.mrf.mxu3 }
 0x3e2   :  { %v2948_v7 = vrot.slane %v2905_v6, 7  ;;  %v2481_v11 = vpop.f32.mrf.mxu1 }
 0x3e3   :  { %v2756_v25 = vsel %vm503_vm1, %v2734_v5, %v2735_v27  ;;  %v2523_v34 = vrot.slane %v2481_v11, 5  ;;  %v3120_v61 = vpop.f32.mrf.mxu0 }
 0x3e4   :  { %v2786_v40 = vadd.f32 %v2756_v25, %v2543_v18  ;;  %v2969_v21 = vsel %vm717_vm2, %v2947_v56, %v2948_v7  ;;  %v3162_v50 = vrot.slane %v3120_v61, 7 }
 0x3e5   :  { %v2542_v2 = vsel %vm289_vm0, %v2522_v14, %v2523_v34 }
 0x3e6   :  { %v2999_v39 = vadd.f32 %v2969_v21, %v2786_v40  ;;  %v3181_v45 = vsel %vm717_vm2, %v3161_v63, %v3162_v50  ;;  %v5232_v40 = vld [vmem:[#allocation5 + $0x220] sm:$0xff] }
 0x3e7   :  { %4092 = vmatpush.bf16.msra.mxu1 %v5232_v40 }
 0x3e8   :  { %v2694_v26 = vpop.f32.mrf.mxu2  ;;  %v6969_v51 = vadd.f32 %v3181_v45, %v2999_v39 }
 0x3e9   :  { %v2736_v42 = vrot.slane %v2694_v26, 6  ;;  %v2907_v6 = vpop.f32.mrf.mxu3 }
 0x3ea   :  { %v2949_v5 = vrot.slane %v2907_v6, 7  ;;  %v2484_v11 = vpop.f32.mrf.mxu1 }
 0x3eb   :  { %v2755_v18 = vsel %vm503_vm1, %v2735_v27, %v2736_v42  ;;  %v2524_v25 = vrot.slane %v2484_v11, 5  ;;  %v3123_v56 = vpop.f32.mrf.mxu0 }
 0x3ec   :  { %v3163_v61 = vrot.slane %v3123_v56, 7  ;;  %v2787_v3 = vadd.f32 %v2755_v18, %v2542_v2  ;;  %v2968_v14 = vsel %vm717_vm2, %v2948_v7, %v2949_v5 }
 0x3ed   :  { %v2541_v63 = vsel %vm289_vm0, %v2523_v34, %v2524_v25  ;;  %3310 = vmatmul.bf16.gmra.mxu1 %v6684_v17  ;;  %3473 = vmatmul.bf16.gmra.mxu2 %v6684_v17 }
 0x3ee   :  { %3686 = vmatmul.bf16.gmra.mxu3 %v6684_v17  ;;  %3899 = vmatmul.bf16.gmra.mxu0 %v6684_v17  ;;  %v3000_v27 = vadd.f32 %v2968_v14, %v2787_v3  ;;  %v3180_v21 = vsel %vm717_vm2, %v3162_v50, %v3163_v61 }
 0x3f0   :  { %v2697_v2 = vpop.f32.mrf.mxu2  ;;  %v6983_v39 = vadd.f32 %v3180_v21, %v3000_v27 }
 0x3f1   :  { %v2737_v7 = vrot.slane %v2697_v2, 6  ;;  %v2910_v45 = vpop.f32.mrf.mxu3 }
 0x3f2   :  { %v2950_v34 = vrot.slane %v2910_v45, 7  ;;  %v2486_v26 = vpop.f32.mrf.mxu1 }
 0x3f3   :  { %v2754_v6 = vsel %vm503_vm1, %v2736_v42, %v2737_v7  ;;  %v2525_v11 = vrot.slane %v2486_v26, 5  ;;  %v3125_v18 = vpop.f32.mrf.mxu0 }
 0x3f4   :  { %v2788_v56 = vadd.f32 %v2754_v6, %v2541_v63  ;;  %v2967_v3 = vsel %vm717_vm2, %v2949_v5, %v2950_v34  ;;  %v3164_v14 = vrot.slane %v3125_v18, 7 }
 0x3f5   :  { %v2540_v50 = vsel %vm289_vm0, %v2524_v25, %v2525_v11 }
 0x3f6   :  { %v3001_v40 = vadd.f32 %v2967_v3, %v2788_v56  ;;  %v3179_v27 = vsel %vm717_vm2, %v3163_v61, %v3164_v14 }
 0x3f8   :  { %v2699_v21 = vpop.f32.mrf.mxu2  ;;  %v6993_v2 = vadd.f32 %v3179_v27, %v3001_v40 }
 0x3f9   :  { %v2738_v45 = vrot.slane %v2699_v21, 6  ;;  %v2912_v13 = vpop.f32.mrf.mxu3 }
 0x3fa   :  { %v2951_v42 = vrot.slane %v2912_v13, 7  ;;  %v2489_v26 = vpop.f32.mrf.mxu1 }
 0x3fb   :  { %v2753_v63 = vsel %vm503_vm1, %v2737_v7, %v2738_v45  ;;  %v2526_v6 = vrot.slane %v2489_v26, 5  ;;  %v3128_v5 = vpop.f32.mrf.mxu0 }
 0x3fc   :  { %v3165_v18 = vrot.slane %v3128_v5, 7  ;;  %v2789_v36 = vadd.f32 %v2753_v63, %v2540_v50  ;;  %v2966_v25 = vsel %vm717_vm2, %v2950_v34, %v2951_v42 }
 0x3fd   :  { %v2539_v61 = vsel %vm289_vm0, %v2525_v11, %v2526_v6  ;;  %3315 = vmatmul.bf16.gmra.mxu1 %v6690_v49  ;;  %3478 = vmatmul.bf16.gmra.mxu2 %v6690_v49 }
 0x3fe   :  { %3691 = vmatmul.bf16.gmra.mxu3 %v6690_v49  ;;  %3904 = vmatmul.bf16.gmra.mxu0 %v6690_v49  ;;  %v3002_v13 = vadd.f32 %v2966_v25, %v2789_v36  ;;  %v3178_v7 = vsel %vm717_vm2, %v3164_v14, %v3165_v18  ;;  %v5231_v25 = vld [vmem:[#allocation5 + $0x218] sm:$0xff] }
 0x3ff   :  { %4093 = vmatpush.bf16.msra.mxu1 %v5231_v25 }
 0x400   :  { %v2702_v56 = vpop.f32.mrf.mxu2  ;;  %v7007_v3 = vadd.f32 %v3178_v7, %v3002_v13 }
 0x401   :  { %v2739_v50 = vrot.slane %v2702_v56, 6  ;;  %v2915_v34 = vpop.f32.mrf.mxu3 }
 0x402   :  { %v2952_v40 = vrot.slane %v2915_v34, 7  ;;  %v2491_v27 = vpop.f32.mrf.mxu1 }
 0x403   :  { %v2752_v11 = vsel %vm503_vm1, %v2738_v45, %v2739_v50  ;;  %v2527_v21 = vrot.slane %v2491_v27, 5  ;;  %v3130_v26 = vpop.f32.mrf.mxu0 }
 0x404   :  { %v2790_v63 = vadd.f32 %v2752_v11, %v2539_v61  ;;  %v2965_v5 = vsel %vm717_vm2, %v2951_v42, %v2952_v40  ;;  %v3166_v36 = vrot.slane %v3130_v26, 7 }
 0x405   :  { %v2538_v14 = vsel %vm289_vm0, %v2526_v6, %v2527_v21 }
 0x406   :  { %v3003_v13 = vadd.f32 %v2965_v5, %v2790_v63  ;;  %v3177_v7 = vsel %vm717_vm2, %v3165_v18, %v3166_v36 }
 0x408   :  { %v2704_v56 = vpop.f32.mrf.mxu2  ;;  %v7017_v34 = vadd.f32 %v3177_v7, %v3003_v13 }
 0x409   :  { %v2740_v45 = vrot.slane %v2704_v56, 6  ;;  %v2917_v27 = vpop.f32.mrf.mxu3 }
 0x40a   :  { %v2953_v20 = vrot.slane %v2917_v27, 7  ;;  %v2494_v61 = vpop.f32.mrf.mxu1 }
 0x40b   :  { %v2751_v42 = vsel %vm503_vm1, %v2739_v50, %v2740_v45  ;;  %v2528_v11 = vrot.slane %v2494_v61, 5  ;;  %v3133_v26 = vpop.f32.mrf.mxu0 }
 0x40c   :  { %v3167_v19 = vrot.slane %v3133_v26, 7  ;;  %v2791_v6 = vadd.f32 %v2751_v42, %v2538_v14  ;;  %v2964_v63 = vsel %vm717_vm2, %v2952_v40, %v2953_v20 }
 0x40d   :  { %v2537_v18 = vsel %vm289_vm0, %v2527_v21, %v2528_v11  ;;  %3320 = vmatmul.bf16.gmra.mxu1 %v6694_v52  ;;  %3483 = vmatmul.bf16.gmra.mxu2 %v6694_v52 }
 0x40e   :  { %3696 = vmatmul.bf16.gmra.mxu3 %v6694_v52  ;;  %3909 = vmatmul.bf16.gmra.mxu0 %v6694_v52  ;;  %v3004_v5 = vadd.f32 %v2964_v63, %v2791_v6  ;;  %v3176_v50 = vsel %vm717_vm2, %v3166_v36, %v3167_v19 }
 0x410   :  { %v2707_v25 = vpop.f32.mrf.mxu2  ;;  %v7031_v14 = vadd.f32 %v3176_v50, %v3004_v5 }
 0x411   :  { %v2741_v13 = vrot.slane %v2707_v25, 6  ;;  %v2920_v40 = vpop.f32.mrf.mxu3 }
 0x412   :  { %v2954_v7 = vrot.slane %v2920_v40, 7  ;;  %v2496_v56 = vpop.f32.mrf.mxu1 }
 0x413   :  { %v2750_v21 = vsel %vm503_vm1, %v2740_v45, %v2741_v13  ;;  %v2529_v27 = vrot.slane %v2496_v56, 5  ;;  %v3135_v61 = vpop.f32.mrf.mxu0 }
 0x414   :  { %v2792_v42 = vadd.f32 %v2750_v21, %v2537_v18  ;;  %v2963_v26 = vsel %vm717_vm2, %v2953_v20, %v2954_v7  ;;  %v3168_v6 = vrot.slane %v3135_v61, 7 }
 0x415   :  { %v2536_v36 = vsel %vm289_vm0, %v2528_v11, %v2529_v27 }
 0x416   :  { %v3005_v63 = vadd.f32 %v2963_v26, %v2792_v42  ;;  %v3175_v5 = vsel %vm717_vm2, %v3167_v19, %v3168_v6 }
 0x418   :  { %v2709_v50 = vpop.f32.mrf.mxu2  ;;  %v7041_v25 = vadd.f32 %v3175_v5, %v3005_v63 }
 0x419   :  { %v2742_v40 = vrot.slane %v2709_v50, 6  ;;  %v2922_v12 = vpop.f32.mrf.mxu3 }
 0x41a   :  { %v2955_v45 = vrot.slane %v2922_v12, 7  ;;  %v2499_v56 = vpop.f32.mrf.mxu1  ;;  %v5230_v12 = vld [vmem:[#allocation5 + $0x210] sm:$0xff] }
 0x41b   :  { %v2749_v18 = vsel %vm503_vm1, %v2741_v13, %v2742_v40  ;;  %v2530_v21 = vrot.slane %v2499_v56, 5  ;;  %v3138_v20 = vpop.f32.mrf.mxu0  ;;  %4094 = vmatpush.bf16.msra.mxu1 %v5230_v12 }
 0x41c   :  { %v3169_v61 = vrot.slane %v3138_v20, 7  ;;  %v2793_v41 = vadd.f32 %v2749_v18, %v2536_v36  ;;  %v2962_v11 = vsel %vm717_vm2, %v2954_v7, %v2955_v45 }
 0x41d   :  { %v2535_v19 = vsel %vm289_vm0, %v2529_v27, %v2530_v21  ;;  %3325 = vmatmul.bf16.gmra.mxu1 %v6710_v33  ;;  %3488 = vmatmul.bf16.gmra.mxu2 %v6710_v33 }
 0x41e   :  { %3701 = vmatmul.bf16.gmra.mxu3 %v6710_v33  ;;  %3914 = vmatmul.bf16.gmra.mxu0 %v6710_v33  ;;  %v3006_v13 = vadd.f32 %v2962_v11, %v2793_v41  ;;  %v3174_v42 = vsel %vm717_vm2, %v3168_v6, %v3169_v61 }
 0x420   :  { %v2712_v26 = vpop.f32.mrf.mxu2  ;;  %v7055_v36 = vadd.f32 %v3174_v42, %v3006_v13 }
 0x421   :  { %v2743_v7 = vrot.slane %v2712_v26, 6  ;;  %v2925_v63 = vpop.f32.mrf.mxu3 }
 0x422   :  { %v2956_v27 = vrot.slane %v2925_v63, 7  ;;  %v2501_v5 = vpop.f32.mrf.mxu1 }
 0x423   :  { %v2748_v50 = vsel %vm503_vm1, %v2742_v40, %v2743_v7  ;;  %v2531_v56 = vrot.slane %v2501_v5, 5  ;;  %v3140_v18 = vpop.f32.mrf.mxu0 }
 0x424   :  { %v2794_v20 = vadd.f32 %v2748_v50, %v2535_v19  ;;  %v2961_v41 = vsel %vm717_vm2, %v2955_v45, %v2956_v27  ;;  %v3170_v11 = vrot.slane %v3140_v18, 7 }
 0x425   :  { %v2534_v6 = vsel %vm289_vm0, %v2530_v21, %v2531_v56 }
 0x426   :  { %v3007_v12 = vadd.f32 %v2961_v41, %v2794_v20  ;;  %v3173_v13 = vsel %vm717_vm2, %v3169_v61, %v3170_v11  ;;  %v7817_v20 = vrot.slane %v6769_v62, 5 }
 0x428   :  { %v2714_v42 = vpop.f32.mrf.mxu2  ;;  %v7065_v26 = vadd.f32 %v3173_v13, %v3007_v12 }
 0x429   :  { %v2744_v63 = vrot.slane %v2714_v42, 6  ;;  %v2927_v60 = vpop.f32.mrf.mxu3 }
 0x42a   :  { %v2957_v40 = vrot.slane %v2927_v60, 7  ;;  %v2504_v5 = vpop.f32.mrf.mxu1  ;;  %v7818_v60 = vrot.slane %v6771_v44, 7 }
 0x42b   :  { %v2747_v19 = vsel %vm503_vm1, %v2743_v7, %v2744_v63  ;;  %v2532_v50 = vrot.slane %v2504_v5, 5  ;;  %v3143_v45 = vpop.f32.mrf.mxu0 }
 0x42c   :  { %v3171_v18 = vrot.slane %v3143_v45, 7  ;;  %v2795_v28 = vadd.f32 %v2747_v19, %v2534_v6  ;;  %v2960_v21 = vsel %vm717_vm2, %v2956_v27, %v2957_v40 }
 0x42d   :  { %v2533_v61 = vsel %vm289_vm0, %v2531_v56, %v2532_v50  ;;  %v2557_v41 = vsel %vm289_vm0, %v2532_v50, %v7817_v20  ;;  %3330 = vmatmul.bf16.gmra.mxu1 %v6725_v48  ;;  %3493 = vmatmul.bf16.gmra.mxu2 %v6725_v48  ;;  %v7819_v50 = vrot.slane %v6777_v46, 6 }
 0x42e   :  { %3706 = vmatmul.bf16.gmra.mxu3 %v6725_v48  ;;  %3919 = vmatmul.bf16.gmra.mxu0 %v6725_v48  ;;  %v3196_v7 = vsel %vm717_vm2, %v3171_v18, %v7818_v60  ;;  %v3008_v27 = vadd.f32 %v2960_v21, %v2795_v28  ;;  %v3172_v62 = vsel %vm717_vm2, %v3170_v11, %v3171_v18  ;;  %v7820_v18 = vrot.slane %v6779_v23, 7 }
 0x430   :  { %v2717_v56 = vpop.f32.mrf.mxu2  ;;  %v7087_v6 = vadd.f32 %v3172_v62, %v3008_v27 }
 0x431   :  { %v2745_v12 = vrot.slane %v2717_v56, 6  ;;  %v2930_v13 = vpop.f32.mrf.mxu3 }
 0x432   :  { %v2958_v42 = vrot.slane %v2930_v13, 7  ;;  %v2506_v5 = vpop.f32.mrf.mxu1 }
 0x433   :  { %v2746_v19 = vsel %vm503_vm1, %v2744_v63, %v2745_v12  ;;  %v2770_v44 = vsel %vm503_vm1, %v2745_v12, %v7819_v50  ;;  %v3145_v45 = vpop.f32.mrf.mxu0 }
 0x434   :  { %v2771_v28 = vadd.f32 %v2746_v19, %v2533_v61  ;;  %v2772_v21 = vadd.f32 %v2770_v44, %v2557_v41  ;;  %v2959_v11 = vsel %vm717_vm2, %v2957_v40, %v2958_v42  ;;  %v2983_v20 = vsel %vm717_vm2, %v2958_v42, %v7820_v18  ;;  %v5229_v40 = vld [vmem:[#allocation5 + $0x208] sm:$0xff] }
 0x435   :  { %4095 = vmatpush.bf16.msra.mxu1 %v5229_v40 }
 0x436   :  { %v2984_v60 = vadd.f32 %v2959_v11, %v2771_v28  ;;  %v2985_v27 = vadd.f32 %v2983_v20, %v2772_v21 }
 0x438   :  { %v2719_v62 = vpop.f32.mrf.mxu2  ;;  %v3197_v63 = vadd.f32 %v3196_v7, %v2984_v60  ;;  %v3198_v46 = vadd.f32 %v6791_v1, %v2985_v27 }
 0x439   :  { %v2932_v56 = vpop.f32.mrf.mxu3 }
 0x43a   :  { %v3296_v13 = vpop.f32.mrf.mxu1 }
 0x43b   :  { %v3360_v12 = vadd.f32 %v3296_v13, %v3197_v63  ;;  %v7102_v5 = vpop.f32.mrf.mxu0 }
 0x43c   :  { %v7756_v42 = vrot.slane %v7102_v5, 2 }
 0x43d   :  { %3335 = vmatmul.bf16.gmra.mxu1 %v6729_v55  ;;  %3498 = vmatmul.bf16.gmra.mxu2 %v6729_v55 }
 0x43e   :  { %3711 = vmatmul.bf16.gmra.mxu3 %v6729_v55  ;;  %3924 = vmatmul.bf16.gmra.mxu0 %v6729_v55 }
 0x440   :  { %v7108_v23 = vpop.f32.mrf.mxu2 }
 0x441   :  { %v7110_v61 = vpop.f32.mrf.mxu3  ;;  %v7755_v45 = vrot.slane %v7108_v23, 1 }
 0x442   :  { %v3298_v1 = vpop.f32.mrf.mxu1  ;;  %v7754_v11 = vrot.slane %v7110_v61, 1 }
 0x443   :  { %v3361_v41 = vadd.f32 %v3298_v1, %v3198_v46  ;;  %v3887_v7 = vpop.f32.mrf.mxu0 }
 0x444   :  { %v3950_v19 = vrot.slane %v3887_v7, 2 }
 0x446   :  { %v7117_v50 = vsel %vm1734_vm4, %v7756_v42, %v3950_v19  ;;  %v5228_v42 = vld [vmem:[#allocation5 + $0x200] sm:$0xff] }
 0x447   :  { %4096 = vmatpush.bf16.msra.mxu1 %v5228_v42 }
 0x448   :  { %v3461_v44 = vpop.f32.mrf.mxu2 }
 0x449   :  { %v3524_v28 = vrot.slane %v3461_v44, 1  ;;  %v3674_v21 = vpop.f32.mrf.mxu3 }
 0x44a   :  { %v3737_v18 = vrot.slane %v3674_v21, 1  ;;  %v3301_v20 = vpop.f32.mrf.mxu1 }
 0x44b   :  { %v3571_v60 = vsel %vm1307_vm3, %v7755_v45, %v3524_v28  ;;  %v3362_v27 = vadd.f32 %v3301_v20, %v6811_v4  ;;  %v3890_v62 = vpop.f32.mrf.mxu0 }
 0x44c   :  { %v3573_v63 = vadd.f32 %v3571_v60, %v3360_v12  ;;  %v7130_v46 = vsel %vm1307_vm3, %v7754_v11, %v3737_v18  ;;  %v3951_v56 = vrot.slane %v3890_v62, 2 }
 0x44d   :  { %3340 = vmatmul.bf16.gmra.mxu1 %v6738_v0  ;;  %3503 = vmatmul.bf16.gmra.mxu2 %v6738_v0 }
 0x44e   :  { %v3996_v13 = vsel %vm1734_vm4, %v3950_v19, %v3951_v56  ;;  %3716 = vmatmul.bf16.gmra.mxu3 %v6738_v0  ;;  %3929 = vmatmul.bf16.gmra.mxu0 %v6738_v0 }
 0x450   :  { %v3464_v4 = vpop.f32.mrf.mxu2 }
 0x451   :  { %v3525_v12 = vrot.slane %v3464_v4, 1  ;;  %v3677_v40 = vpop.f32.mrf.mxu3 }
 0x452   :  { %v3738_v1 = vrot.slane %v3677_v40, 1  ;;  %v3303_v7 = vpop.f32.mrf.mxu1 }
 0x453   :  { %v3570_v44 = vsel %vm1307_vm3, %v3524_v28, %v3525_v12  ;;  %v3363_v21 = vadd.f32 %v3303_v7, %v6821_v57  ;;  %v3892_v20 = vpop.f32.mrf.mxu0 }
 0x454   :  { %v3574_v60 = vadd.f32 %v3570_v44, %v3361_v41  ;;  %v3783_v62 = vsel %vm1307_vm3, %v3737_v18, %v3738_v1  ;;  %v3952_v19 = vrot.slane %v3892_v20, 2 }
 0x455   :  { %v3786_v11 = vadd.f32 %v3783_v62, %v3573_v63 }
 0x456   :  { %v3995_v45 = vsel %vm1734_vm4, %v3951_v56, %v3952_v19 }
 0x457   :  { %v7145_v4 = vadd.f32 %v3996_v13, %v3786_v11 }
 0x458   :  { %v3466_v40 = vpop.f32.mrf.mxu2 }
 0x459   :  { %v3526_v37 = vrot.slane %v3466_v40, 1  ;;  %v3679_v54 = vpop.f32.mrf.mxu3 }
 0x45a   :  { %v3739_v28 = vrot.slane %v3679_v54, 1  ;;  %v3306_v0 = vpop.f32.mrf.mxu1 }
 0x45b   :  { %v3569_v57 = vsel %vm1307_vm3, %v3525_v12, %v3526_v37  ;;  %v3364_v41 = vadd.f32 %v3306_v0, %v6835_v10  ;;  %v3895_v18 = vpop.f32.mrf.mxu0 }
 0x45c   :  { %v3575_v7 = vadd.f32 %v3569_v57, %v3362_v27  ;;  %v3782_v63 = vsel %vm1307_vm3, %v3738_v1, %v3739_v28  ;;  %v3953_v56 = vrot.slane %v3895_v18, 2 }
 0x45d   :  { %v3787_v44 = vadd.f32 %v3782_v63, %v3574_v60  ;;  %3345 = vmatmul.bf16.gmra.mxu1 %v6743_v47  ;;  %3508 = vmatmul.bf16.gmra.mxu2 %v6743_v47 }
 0x45e   :  { %v3994_v54 = vsel %vm1734_vm4, %v3952_v19, %v3953_v56  ;;  %3721 = vmatmul.bf16.gmra.mxu3 %v6743_v47  ;;  %3934 = vmatmul.bf16.gmra.mxu0 %v6743_v47 }
 0x45f   :  { %v7158_v42 = vadd.f32 %v3995_v45, %v3787_v44 }
 0x460   :  { %v3469_v0 = vpop.f32.mrf.mxu2 }
 0x461   :  { %v3527_v10 = vrot.slane %v3469_v0, 1  ;;  %v3682_v11 = vpop.f32.mrf.mxu3 }
 0x462   :  { %v3740_v27 = vrot.slane %v3682_v11, 1  ;;  %v3308_v13 = vpop.f32.mrf.mxu1 }
 0x463   :  { %v3568_v12 = vsel %vm1307_vm3, %v3526_v37, %v3527_v10  ;;  %v3365_v1 = vadd.f32 %v3308_v13, %v6845_v53  ;;  %v3897_v20 = vpop.f32.mrf.mxu0 }
 0x464   :  { %v3576_v60 = vadd.f32 %v3568_v12, %v3363_v21  ;;  %v3781_v62 = vsel %vm1307_vm3, %v3739_v28, %v3740_v27  ;;  %v3954_v19 = vrot.slane %v3897_v20, 2 }
 0x465   :  { %v3788_v40 = vadd.f32 %v3781_v62, %v3575_v7 }
 0x466   :  { %v3993_v45 = vsel %vm1734_vm4, %v3953_v56, %v3954_v19 }
 0x467   :  { %v7167_v57 = vadd.f32 %v3994_v54, %v3788_v40 }
 0x468   :  { %v3471_v18 = vpop.f32.mrf.mxu2 }
 0x469   :  { %v3528_v63 = vrot.slane %v3471_v18, 1  ;;  %v3684_v44 = vpop.f32.mrf.mxu3 }
 0x46a   :  { %v3741_v0 = vrot.slane %v3684_v44, 1  ;;  %v3311_v11 = vpop.f32.mrf.mxu1 }
 0x46b   :  { %v3567_v37 = vsel %vm1307_vm3, %v3527_v10, %v3528_v63  ;;  %v3366_v53 = vadd.f32 %v3311_v11, %v6859_v32  ;;  %v3900_v21 = vpop.f32.mrf.mxu0 }
 0x46c   :  { %v3577_v13 = vadd.f32 %v3567_v37, %v3364_v41  ;;  %v3780_v28 = vsel %vm1307_vm3, %v3740_v27, %v3741_v0  ;;  %v3955_v7 = vrot.slane %v3900_v21, 2 }
 0x46d   :  { %v3789_v12 = vadd.f32 %v3780_v28, %v3576_v60  ;;  %3350 = vmatmul.bf16.gmra.mxu1 %v6656_v30  ;;  %3513 = vmatmul.bf16.gmra.mxu2 %v6656_v30 }
 0x46e   :  { %v3992_v56 = vsel %vm1734_vm4, %v3954_v19, %v3955_v7  ;;  %3726 = vmatmul.bf16.gmra.mxu3 %v6656_v30  ;;  %3939 = vmatmul.bf16.gmra.mxu0 %v6656_v30 }
 0x46f   :  { %v7180_v54 = vadd.f32 %v3993_v45, %v3789_v12 }
 0x470   :  { %v3474_v32 = vpop.f32.mrf.mxu2 }
 0x471   :  { %v3529_v41 = vrot.slane %v3474_v32, 1  ;;  %v3687_v10 = vpop.f32.mrf.mxu3 }
 0x472   :  { %v3742_v20 = vrot.slane %v3687_v10, 1  ;;  %v3313_v27 = vpop.f32.mrf.mxu1 }
 0x473   :  { %v3566_v60 = vsel %vm1307_vm3, %v3528_v63, %v3529_v41  ;;  %v3367_v62 = vadd.f32 %v3313_v27, %v6871_v22  ;;  %v3902_v40 = vpop.f32.mrf.mxu0 }
 0x474   :  { %v3578_v18 = vadd.f32 %v3566_v60, %v3365_v1  ;;  %v3779_v19 = vsel %vm1307_vm3, %v3741_v0, %v3742_v20  ;;  %v3956_v44 = vrot.slane %v3902_v40, 2 }
 0x475   :  { %v3790_v11 = vadd.f32 %v3779_v19, %v3577_v13 }
 0x476   :  { %v3991_v45 = vsel %vm1734_vm4, %v3955_v7, %v3956_v44 }
 0x477   :  { %v7189_v37 = vadd.f32 %v3992_v56, %v3790_v11 }
 0x478   :  { %v3476_v21 = vpop.f32.mrf.mxu2 }
 0x479   :  { %v3530_v28 = vrot.slane %v3476_v21, 1  ;;  %v3689_v12 = vpop.f32.mrf.mxu3 }
 0x47a   :  { %v3743_v32 = vrot.slane %v3689_v12, 1  ;;  %v3316_v10 = vpop.f32.mrf.mxu1 }
 0x47b   :  { %v3565_v22 = vsel %vm1307_vm3, %v3529_v41, %v3530_v28  ;;  %v3368_v1 = vadd.f32 %v3316_v10, %v6887_v38  ;;  %v3905_v63 = vpop.f32.mrf.mxu0 }
 0x47c   :  { %v3579_v27 = vadd.f32 %v3565_v22, %v3366_v53  ;;  %v3778_v0 = vsel %vm1307_vm3, %v3742_v20, %v3743_v32  ;;  %v3957_v13 = vrot.slane %v3905_v63, 2 }
 0x47d   :  { %v3791_v60 = vadd.f32 %v3778_v0, %v3578_v18  ;;  %3355 = vmatmul.bf16.gmra.mxu1 %v6875_v16  ;;  %3518 = vmatmul.bf16.gmra.mxu2 %v6875_v16 }
 0x47e   :  { %v3990_v7 = vsel %vm1734_vm4, %v3956_v44, %v3957_v13  ;;  %3731 = vmatmul.bf16.gmra.mxu3 %v6875_v16  ;;  %3944 = vmatmul.bf16.gmra.mxu0 %v6875_v16 }
 0x47f   :  { %v7202_v56 = vadd.f32 %v3991_v45, %v3791_v60 }
 0x480   :  { %v3479_v38 = vpop.f32.mrf.mxu2 }
 0x481   :  { %v3531_v53 = vrot.slane %v3479_v38, 1  ;;  %v3692_v41 = vpop.f32.mrf.mxu3 }
 0x482   :  { %v3744_v40 = vrot.slane %v3692_v41, 1  ;;  %v3318_v20 = vpop.f32.mrf.mxu1 }
 0x483   :  { %v3564_v18 = vsel %vm1307_vm3, %v3530_v28, %v3531_v53  ;;  %v3369_v19 = vadd.f32 %v3318_v20, %v6897_v31  ;;  %v3907_v11 = vpop.f32.mrf.mxu0 }
 0x484   :  { %v3580_v21 = vadd.f32 %v3564_v18, %v3367_v62  ;;  %v3777_v44 = vsel %vm1307_vm3, %v3743_v32, %v3744_v40  ;;  %v3958_v12 = vrot.slane %v3907_v11, 2 }
 0x485   :  { %v3792_v10 = vadd.f32 %v3777_v44, %v3579_v27 }
 0x486   :  { %v3989_v45 = vsel %vm1734_vm4, %v3957_v13, %v3958_v12 }
 0x487   :  { %v7211_v22 = vadd.f32 %v3990_v7, %v3792_v10 }
 0x488   :  { %v3481_v63 = vpop.f32.mrf.mxu2 }
 0x489   :  { %v3532_v0 = vrot.slane %v3481_v63, 1  ;;  %v3694_v60 = vpop.f32.mrf.mxu3 }
 0x48a   :  { %v3745_v38 = vrot.slane %v3694_v60, 1  ;;  %v3321_v41 = vpop.f32.mrf.mxu1 }
 0x48b   :  { %v3563_v31 = vsel %vm1307_vm3, %v3531_v53, %v3532_v0  ;;  %v3370_v62 = vadd.f32 %v3321_v41, %v6911_v24  ;;  %v3910_v28 = vpop.f32.mrf.mxu0 }
 0x48c   :  { %v3581_v20 = vadd.f32 %v3563_v31, %v3368_v1  ;;  %v3776_v32 = vsel %vm1307_vm3, %v3744_v40, %v3745_v38  ;;  %v3959_v27 = vrot.slane %v3910_v28, 2 }
 0x48d   :  { %v3793_v18 = vadd.f32 %v3776_v32, %v3580_v21  ;;  %4097 = vmatmul.bf16.vlgmr.msra.gmra.mxu1 %v6658_v15 }
 0x48e   :  { %v3988_v13 = vsel %vm1734_vm4, %v3958_v12, %v3959_v27 }
 0x48f   :  { %v7221_v7 = vadd.f32 %v3989_v45, %v3793_v18 }
 0x490   :  { %v3484_v11 = vpop.f32.mrf.mxu2 }
 0x491   :  { %v3533_v44 = vrot.slane %v3484_v11, 1  ;;  %v3697_v10 = vpop.f32.mrf.mxu3 }
 0x492   :  { %v3746_v53 = vrot.slane %v3697_v10, 1  ;;  %v3323_v63 = vpop.f32.mrf.mxu1 }
 0x493   :  { %v3562_v24 = vsel %vm1307_vm3, %v3532_v0, %v3533_v44  ;;  %v3371_v1 = vadd.f32 %v3323_v63, %v6921_v59  ;;  %v3912_v40 = vpop.f32.mrf.mxu0 }
 0x494   :  { %v3582_v60 = vadd.f32 %v3562_v24, %v3369_v19  ;;  %v3775_v15 = vsel %vm1307_vm3, %v3745_v38, %v3746_v53  ;;  %v3960_v21 = vrot.slane %v3912_v40, 2 }
 0x495   :  { %v3794_v41 = vadd.f32 %v3775_v15, %v3581_v20 }
 0x496   :  { %v3987_v12 = vsel %vm1734_vm4, %v3959_v27, %v3960_v21 }
 0x497   :  { %v7230_v45 = vadd.f32 %v3988_v13, %v3794_v41 }
 0x498   :  { %v3486_v31 = vpop.f32.mrf.mxu2 }
 0x499   :  { %v3534_v28 = vrot.slane %v3486_v31, 1  ;;  %v3699_v32 = vpop.f32.mrf.mxu3 }
 0x49a   :  { %v3747_v18 = vrot.slane %v3699_v32, 1  ;;  %v3326_v11 = vpop.f32.mrf.mxu1 }
 0x49b   :  { %v3561_v59 = vsel %vm1307_vm3, %v3533_v44, %v3534_v28  ;;  %v3372_v19 = vadd.f32 %v3326_v11, %v6935_v58  ;;  %v3915_v0 = vpop.f32.mrf.mxu0 }
 0x49c   :  { %v3583_v10 = vadd.f32 %v3561_v59, %v3370_v62  ;;  %v3774_v38 = vsel %vm1307_vm3, %v3746_v53, %v3747_v18  ;;  %v3961_v20 = vrot.slane %v3915_v0, 2 }
 0x49d   :  { %v3795_v63 = vadd.f32 %v3774_v38, %v3582_v60  ;;  %4102 = vmatmul.bf16.gmra.mxu1 %v6662_v43 }
 0x49e   :  { %v3986_v27 = vsel %vm1734_vm4, %v3960_v21, %v3961_v20 }
 0x49f   :  { %v7240_v13 = vadd.f32 %v3987_v12, %v3795_v63 }
 0x4a0   :  { %v3489_v24 = vpop.f32.mrf.mxu2 }
 0x4a1   :  { %v3535_v40 = vrot.slane %v3489_v24, 1  ;;  %v3702_v15 = vpop.f32.mrf.mxu3 }
 0x4a2   :  { %v3748_v44 = vrot.slane %v3702_v15, 1  ;;  %v3328_v41 = vpop.f32.mrf.mxu1 }
 0x4a3   :  { %v3560_v58 = vsel %vm1307_vm3, %v3534_v28, %v3535_v40  ;;  %v3373_v62 = vadd.f32 %v3328_v41, %v6945_v29  ;;  %v3917_v53 = vpop.f32.mrf.mxu0 }
 0x4a4   :  { %v3584_v31 = vadd.f32 %v3560_v58, %v3371_v1  ;;  %v3773_v43 = vsel %vm1307_vm3, %v3747_v18, %v3748_v44  ;;  %v3962_v60 = vrot.slane %v3917_v53, 2 }
 0x4a5   :  { %v3796_v32 = vadd.f32 %v3773_v43, %v3583_v10 }
 0x4a6   :  { %v3985_v21 = vsel %vm1734_vm4, %v3961_v20, %v3962_v60 }
 0x4a7   :  { %v7249_v12 = vadd.f32 %v3986_v27, %v3796_v32 }
 0x4a8   :  { %v3491_v11 = vpop.f32.mrf.mxu2 }
 0x4a9   :  { %v3536_v59 = vrot.slane %v3491_v11, 1  ;;  %v3704_v0 = vpop.f32.mrf.mxu3 }
 0x4aa   :  { %v3749_v38 = vrot.slane %v3704_v0, 1  ;;  %v3331_v63 = vpop.f32.mrf.mxu1 }
 0x4ab   :  { %v3559_v29 = vsel %vm1307_vm3, %v3535_v40, %v3536_v59  ;;  %v3374_v1 = vadd.f32 %v3331_v63, %v6959_v8  ;;  %v3920_v28 = vpop.f32.mrf.mxu0 }
 0x4ac   :  { %v3585_v24 = vadd.f32 %v3559_v29, %v3372_v19  ;;  %v3772_v18 = vsel %vm1307_vm3, %v3748_v44, %v3749_v38  ;;  %v3963_v10 = vrot.slane %v3920_v28, 2 }
 0x4ad   :  { %v3797_v15 = vadd.f32 %v3772_v18, %v3584_v31  ;;  %4107 = vmatmul.bf16.gmra.mxu1 %v6664_v9 }
 0x4ae   :  { %v3984_v20 = vsel %vm1734_vm4, %v3962_v60, %v3963_v10 }
 0x4af   :  { %v7259_v27 = vadd.f32 %v3985_v21, %v3797_v15 }
 0x4b0   :  { %v3494_v41 = vpop.f32.mrf.mxu2 }
 0x4b1   :  { %v3537_v58 = vrot.slane %v3494_v41, 1  ;;  %v3707_v53 = vpop.f32.mrf.mxu3 }
 0x4b2   :  { %v3750_v40 = vrot.slane %v3707_v53, 1  ;;  %v3333_v43 = vpop.f32.mrf.mxu1 }
 0x4b3   :  { %v3558_v8 = vsel %vm1307_vm3, %v3536_v59, %v3537_v58  ;;  %v3375_v19 = vadd.f32 %v3333_v43, %v6969_v51  ;;  %v3922_v44 = vpop.f32.mrf.mxu0 }
 0x4b4   :  { %v3586_v32 = vadd.f32 %v3558_v8, %v3373_v62  ;;  %v3771_v9 = vsel %vm1307_vm3, %v3749_v38, %v3750_v40  ;;  %v3964_v31 = vrot.slane %v3922_v44, 2 }
 0x4b5   :  { %v3798_v11 = vadd.f32 %v3771_v9, %v3585_v24 }
 0x4b6   :  { %v3983_v60 = vsel %vm1734_vm4, %v3963_v10, %v3964_v31 }
 0x4b7   :  { %v7268_v21 = vadd.f32 %v3984_v20, %v3798_v11 }
 0x4b8   :  { %v3496_v0 = vpop.f32.mrf.mxu2 }
 0x4b9   :  { %v3538_v63 = vrot.slane %v3496_v0, 1  ;;  %v3709_v29 = vpop.f32.mrf.mxu3 }
 0x4ba   :  { %v3751_v28 = vrot.slane %v3709_v29, 1  ;;  %v3336_v18 = vpop.f32.mrf.mxu1 }
 0x4bb   :  { %v3557_v51 = vsel %vm1307_vm3, %v3537_v58, %v3538_v63  ;;  %v3376_v62 = vadd.f32 %v3336_v18, %v6983_v39  ;;  %v3925_v59 = vpop.f32.mrf.mxu0 }
 0x4bc   :  { %v3587_v15 = vadd.f32 %v3557_v51, %v3374_v1  ;;  %v3770_v38 = vsel %vm1307_vm3, %v3750_v40, %v3751_v28  ;;  %v3965_v24 = vrot.slane %v3925_v59, 2 }
 0x4bd   :  { %v3799_v41 = vadd.f32 %v3770_v38, %v3586_v32  ;;  %4112 = vmatmul.bf16.gmra.mxu1 %v6684_v17 }
 0x4be   :  { %v3982_v10 = vsel %vm1734_vm4, %v3964_v31, %v3965_v24 }
 0x4bf   :  { %v7278_v20 = vadd.f32 %v3983_v60, %v3799_v41 }
 0x4c0   :  { %v3499_v53 = vpop.f32.mrf.mxu2 }
 0x4c1   :  { %v3539_v43 = vrot.slane %v3499_v53, 1  ;;  %v3712_v8 = vpop.f32.mrf.mxu3 }
 0x4c2   :  { %v3752_v58 = vrot.slane %v3712_v8, 1  ;;  %v3338_v44 = vpop.f32.mrf.mxu1 }
 0x4c3   :  { %v3556_v39 = vsel %vm1307_vm3, %v3538_v63, %v3539_v43  ;;  %v3377_v1 = vadd.f32 %v3338_v44, %v6993_v2  ;;  %v3927_v40 = vpop.f32.mrf.mxu0 }
 0x4c4   :  { %v3588_v9 = vadd.f32 %v3556_v39, %v3375_v19  ;;  %v3769_v17 = vsel %vm1307_vm3, %v3751_v28, %v3752_v58  ;;  %v3966_v32 = vrot.slane %v3927_v40, 2 }
 0x4c5   :  { %v3800_v11 = vadd.f32 %v3769_v17, %v3587_v15 }
 0x4c6   :  { %v3981_v31 = vsel %vm1734_vm4, %v3965_v24, %v3966_v32 }
 0x4c7   :  { %v7287_v60 = vadd.f32 %v3982_v10, %v3800_v11 }
 0x4c8   :  { %v3501_v0 = vpop.f32.mrf.mxu2 }
 0x4c9   :  { %v3540_v29 = vrot.slane %v3501_v0, 1  ;;  %v3714_v18 = vpop.f32.mrf.mxu3 }
 0x4ca   :  { %v3753_v51 = vrot.slane %v3714_v18, 1  ;;  %v3341_v59 = vpop.f32.mrf.mxu1 }
 0x4cb   :  { %v3555_v2 = vsel %vm1307_vm3, %v3539_v43, %v3540_v29  ;;  %v3378_v19 = vadd.f32 %v3341_v59, %v7007_v3  ;;  %v3930_v63 = vpop.f32.mrf.mxu0 }
 0x4cc   :  { %v3589_v38 = vadd.f32 %v3555_v2, %v3376_v62  ;;  %v3768_v28 = vsel %vm1307_vm3, %v3752_v58, %v3753_v51  ;;  %v3967_v15 = vrot.slane %v3930_v63, 2 }
 0x4cd   :  { %v3801_v41 = vadd.f32 %v3768_v28, %v3588_v9  ;;  %4117 = vmatmul.bf16.gmra.mxu1 %v6690_v49 }
 0x4ce   :  { %v3980_v24 = vsel %vm1734_vm4, %v3966_v32, %v3967_v15 }
 0x4cf   :  { %v7297_v10 = vadd.f32 %v3981_v31, %v3801_v41 }
 0x4d0   :  { %v3504_v53 = vpop.f32.mrf.mxu2 }
 0x4d1   :  { %v3541_v8 = vrot.slane %v3504_v53, 1  ;;  %v3717_v44 = vpop.f32.mrf.mxu3 }
 0x4d2   :  { %v3754_v43 = vrot.slane %v3717_v44, 1  ;;  %v3343_v39 = vpop.f32.mrf.mxu1 }
 0x4d3   :  { %v3554_v3 = vsel %vm1307_vm3, %v3540_v29, %v3541_v8  ;;  %v3379_v62 = vadd.f32 %v3343_v39, %v7017_v34  ;;  %v3932_v58 = vpop.f32.mrf.mxu0 }
 0x4d4   :  { %v3590_v40 = vadd.f32 %v3554_v3, %v3377_v1  ;;  %v3767_v49 = vsel %vm1307_vm3, %v3753_v51, %v3754_v43  ;;  %v3968_v9 = vrot.slane %v3932_v58, 2 }
 0x4d5   :  { %v3802_v17 = vadd.f32 %v3767_v49, %v3589_v38 }
 0x4d6   :  { %v3979_v32 = vsel %vm1734_vm4, %v3967_v15, %v3968_v9 }
 0x4d7   :  { %v7306_v11 = vadd.f32 %v3980_v24, %v3802_v17 }
 0x4d8   :  { %v3506_v31 = vpop.f32.mrf.mxu2 }
 0x4d9   :  { %v3542_v0 = vrot.slane %v3506_v31, 1  ;;  %v3719_v18 = vpop.f32.mrf.mxu3 }
 0x4da   :  { %v3755_v59 = vrot.slane %v3719_v18, 1  ;;  %v3346_v2 = vpop.f32.mrf.mxu1 }
 0x4db   :  { %v3553_v34 = vsel %vm1307_vm3, %v3541_v8, %v3542_v0  ;;  %v3380_v1 = vadd.f32 %v3346_v2, %v7031_v14  ;;  %v3935_v29 = vpop.f32.mrf.mxu0 }
 0x4dc   :  { %v3591_v63 = vadd.f32 %v3553_v34, %v3378_v19  ;;  %v3766_v51 = vsel %vm1307_vm3, %v3754_v43, %v3755_v59  ;;  %v3969_v38 = vrot.slane %v3935_v29, 2 }
 0x4dd   :  { %v3803_v28 = vadd.f32 %v3766_v51, %v3590_v40  ;;  %4122 = vmatmul.bf16.gmra.mxu1 %v6694_v52 }
 0x4de   :  { %v3978_v15 = vsel %vm1734_vm4, %v3968_v9, %v3969_v38 }
 0x4df   :  { %v7316_v41 = vadd.f32 %v3979_v32, %v3803_v28 }
 0x4e0   :  { %v3509_v24 = vpop.f32.mrf.mxu2 }
 0x4e1   :  { %v3543_v53 = vrot.slane %v3509_v24, 1  ;;  %v3722_v44 = vpop.f32.mrf.mxu3 }
 0x4e2   :  { %v3756_v8 = vrot.slane %v3722_v44, 1  ;;  %v3348_v39 = vpop.f32.mrf.mxu1 }
 0x4e3   :  { %v3552_v14 = vsel %vm1307_vm3, %v3542_v0, %v3543_v53  ;;  %v3381_v19 = vadd.f32 %v3348_v39, %v7041_v25  ;;  %v3937_v43 = vpop.f32.mrf.mxu0 }
 0x4e4   :  { %v3592_v3 = vadd.f32 %v3552_v14, %v3379_v62  ;;  %v3765_v52 = vsel %vm1307_vm3, %v3755_v59, %v3756_v8  ;;  %v3970_v58 = vrot.slane %v3937_v43, 2 }
 0x4e5   :  { %v3804_v40 = vadd.f32 %v3765_v52, %v3591_v63 }
 0x4e6   :  { %v3977_v49 = vsel %vm1734_vm4, %v3969_v38, %v3970_v58 }
 0x4e7   :  { %v7325_v9 = vadd.f32 %v3978_v15, %v3804_v40 }
 0x4e8   :  { %v3511_v17 = vpop.f32.mrf.mxu2 }
 0x4e9   :  { %v3544_v32 = vrot.slane %v3511_v17, 1  ;;  %v3724_v31 = vpop.f32.mrf.mxu3 }
 0x4ea   :  { %v3757_v18 = vrot.slane %v3724_v31, 1  ;;  %v3351_v2 = vpop.f32.mrf.mxu1 }
 0x4eb   :  { %v3551_v25 = vsel %vm1307_vm3, %v3543_v53, %v3544_v32  ;;  %v3382_v62 = vadd.f32 %v3351_v2, %v7055_v36  ;;  %v3940_v0 = vpop.f32.mrf.mxu0 }
 0x4ec   :  { %v3593_v34 = vadd.f32 %v3551_v25, %v3380_v1  ;;  %v3764_v59 = vsel %vm1307_vm3, %v3756_v8, %v3757_v18  ;;  %v3971_v29 = vrot.slane %v3940_v0, 2 }
 0x4ed   :  { %v3805_v63 = vadd.f32 %v3764_v59, %v3592_v3  ;;  %4127 = vmatmul.bf16.gmra.mxu1 %v6710_v33  ;;  %v7821_v59 = vrot.slane %v7102_v5, 2 }
 0x4ee   :  { %v3976_v51 = vsel %vm1734_vm4, %v3970_v58, %v3971_v29 }
 0x4ef   :  { %v7335_v38 = vadd.f32 %v3977_v49, %v3805_v63 }
 0x4f0   :  { %v3514_v28 = vpop.f32.mrf.mxu2 }
 0x4f1   :  { %v3545_v15 = vrot.slane %v3514_v28, 1  ;;  %v3727_v24 = vpop.f32.mrf.mxu3 }
 0x4f2   :  { %v3758_v53 = vrot.slane %v3727_v24, 1  ;;  %v3353_v44 = vpop.f32.mrf.mxu1 }
 0x4f3   :  { %v3550_v36 = vsel %vm1307_vm3, %v3544_v32, %v3545_v15  ;;  %v3383_v1 = vadd.f32 %v3353_v44, %v7065_v26  ;;  %v3942_v8 = vpop.f32.mrf.mxu0 }
 0x4f4   :  { %v3594_v39 = vadd.f32 %v3550_v36, %v3381_v19  ;;  %v3763_v33 = vsel %vm1307_vm3, %v3757_v18, %v3758_v53  ;;  %v3972_v14 = vrot.slane %v3942_v8, 2 }
 0x4f5   :  { %v3806_v43 = vadd.f32 %v3763_v33, %v3593_v34 }
 0x4f6   :  { %v3975_v3 = vsel %vm1734_vm4, %v3971_v29, %v3972_v14 }
 0x4f7   :  { %v7344_v52 = vadd.f32 %v3976_v51, %v3806_v43 }
 0x4f8   :  { %v3516_v58 = vpop.f32.mrf.mxu2 }
 0x4f9   :  { %v3546_v40 = vrot.slane %v3516_v58, 1  ;;  %v3729_v49 = vpop.f32.mrf.mxu3 }
 0x4fa   :  { %v3759_v17 = vrot.slane %v3729_v49, 1  ;;  %v3356_v31 = vpop.f32.mrf.mxu1 }
 0x4fb   :  { %v3549_v26 = vsel %vm1307_vm3, %v3545_v15, %v3546_v40  ;;  %v3384_v19 = vadd.f32 %v3356_v31, %v7087_v6  ;;  %v3945_v32 = vpop.f32.mrf.mxu0 }
 0x4fc   :  { %v3595_v2 = vadd.f32 %v3549_v26, %v3382_v62  ;;  %v3762_v18 = vsel %vm1307_vm3, %v3758_v53, %v3759_v17  ;;  %v3973_v25 = vrot.slane %v3945_v32, 2 }
 0x4fd   :  { %v3807_v0 = vadd.f32 %v3762_v18, %v3594_v39  ;;  %4132 = vmatmul.bf16.gmra.mxu1 %v6725_v48  ;;  %v7822_v48 = vrot.slane %v7108_v23, 1  ;;  %v7823_v39 = vrot.slane %v7110_v61, 1  ;;  %v7824_v18 = vld [vmem:[#allocation11_spill] sm:$0xff] }
 0x4fe   :  { %v3974_v34 = vsel %vm1734_vm4, %v3972_v14, %v3973_v25  ;;  %v3998_v29 = vsel %vm1734_vm4, %v3973_v25, %v7821_v59 }
 0x4ff   :  { %v7358_v63 = vadd.f32 %v3975_v3, %v3807_v0 }
 0x500   :  { %v3519_v6 = vpop.f32.mrf.mxu2 }
 0x501   :  { %v3547_v51 = vrot.slane %v3519_v6, 1  ;;  %v3732_v62 = vpop.f32.mrf.mxu3 }
 0x502   :  { %v3760_v28 = vrot.slane %v3732_v62, 1  ;;  %v3358_v15 = vpop.f32.mrf.mxu1 }
 0x503   :  { %v3548_v24 = vsel %vm1307_vm3, %v3546_v40, %v3547_v51  ;;  %v3572_v53 = vsel %vm1307_vm3, %v3547_v51, %v7822_v48  ;;  %v3947_v44 = vpop.f32.mrf.mxu0 }
 0x504   :  { %v3596_v5 = vadd.f32 %v3548_v24, %v3383_v1  ;;  %v3597_v36 = vadd.f32 %v3572_v53, %v3384_v19  ;;  %v3761_v8 = vsel %vm1307_vm3, %v3759_v17, %v3760_v28  ;;  %v3785_v33 = vsel %vm1307_vm3, %v3760_v28, %v7823_v39 }
 0x505   :  { %v3808_v14 = vadd.f32 %v3761_v8, %v3595_v2 }
 0x506   :  { %v3810_v43 = vadd.f32 %v7130_v46, %v3597_v36  ;;  %v3809_v3 = vadd.f32 %v3785_v33, %v3596_v5 }
 0x507   :  { %v7373_v58 = vadd.f32 %v3974_v34, %v3808_v14 }
 0x508   :  { %v3521_v23 = vpop.f32.mrf.mxu2  ;;  %v4023_v40 = vadd.f32 %v7117_v50, %v3810_v43  ;;  %v7376_v49 = vadd.f32 %v3998_v29, %v3809_v3 }
 0x509   :  { %v3734_v1 = vpop.f32.mrf.mxu3 }
 0x50a   :  { %v7378_v31 = vpop.f32.mrf.mxu1 }
 0x50b   :  { %v4162_v17 = vrot.slane %v7378_v31, 3 }
 0x50d   :  { %4137 = vmatmul.bf16.gmra.mxu1 %v6729_v55 }
 0x512   :  { %v4100_v61 = vpop.f32.mrf.mxu1 }
 0x513   :  { %v4163_v26 = vrot.slane %v4100_v61, 3 }
 0x515   :  { %v4210_v46 = vsel %vm1948_vm5, %v4162_v17, %v4163_v26 }
 0x516   :  { %v7386_v19 = vadd.f32 %v4210_v46, %v4023_v40 }
 0x51a   :  { %v4103_v32 = vpop.f32.mrf.mxu1 }
 0x51b   :  { %v4164_v50 = vrot.slane %v4103_v32, 3 }
 0x51d   :  { %v4209_v2 = vsel %vm1948_vm5, %v4163_v26, %v4164_v50  ;;  %4142 = vmatmul.bf16.gmra.mxu1 %v7824_v18 }
 0x51e   :  { %v7392_v55 = vadd.f32 %v4209_v2, %v7145_v4 }
 0x522   :  { %v4105_v25 = vpop.f32.mrf.mxu1 }
 0x523   :  { %v4165_v0 = vrot.slane %v4105_v25, 3 }
 0x525   :  { %v4208_v34 = vsel %vm1948_vm5, %v4164_v50, %v4165_v0 }
 0x526   :  { %v7397_v59 = vadd.f32 %v4208_v34, %v7158_v42 }
 0x52a   :  { %v4108_v29 = vpop.f32.mrf.mxu1 }
 0x52b   :  { %v4166_v6 = vrot.slane %v4108_v29, 3 }
 0x52d   :  { %v4207_v51 = vsel %vm1948_vm5, %v4165_v0, %v4166_v6  ;;  %4147 = vmatmul.bf16.gmra.mxu1 %v6743_v47 }
 0x52e   :  { %v7403_v62 = vadd.f32 %v4207_v51, %v7167_v57 }
 0x532   :  { %v4110_v4 = vpop.f32.mrf.mxu1 }
 0x533   :  { %v4167_v28 = vrot.slane %v4110_v4, 3  ;;  %v7825_v4 = vld [vmem:[#allocation16_spill] sm:$0xff] }
 0x535   :  { %v4206_v15 = vsel %vm1948_vm5, %v4166_v6, %v4167_v28 }
 0x536   :  { %v7408_v24 = vadd.f32 %v4206_v15, %v7180_v54  ;;  %v7826_v15 = vld [vmem:[#allocation12_spill] sm:$0xff] }
 0x53a   :  { %v4113_v42 = vpop.f32.mrf.mxu1 }
 0x53b   :  { %v4168_v48 = vrot.slane %v4113_v42, 3  ;;  %v7827_v42 = vld [vmem:[#allocation17_spill] sm:$0xff] }
 0x53d   :  { %v4205_v53 = vsel %vm1948_vm5, %v4167_v28, %v4168_v48  ;;  %4152 = vmatmul.bf16.gmra.mxu1 %v6656_v30  ;;  %v4238_v28 = vmul.f32 %v7397_v59, %v7825_v4 }
 0x53e   :  { %v7414_v47 = vadd.f32 %v4205_v53, %v7189_v37 }
 0x542   :  { %v4115_v57 = vpop.f32.mrf.mxu1 }
 0x543   :  { %v4169_v44 = vrot.slane %v4115_v57, 3  ;;  %v4293_v57 = vmul.f32 %v4238_v28, %v4238_v28 }
 0x545   :  { %v4204_v5 = vsel %vm1948_vm5, %v4168_v48, %v4169_v44  ;;  %v4239_v48 = vmul.f32 %v7403_v62, %v7827_v42 }
 0x546   :  { %v7419_v36 = vadd.f32 %v4204_v5, %v7202_v56 }
 0x54a   :  { %v4118_v54 = vpop.f32.mrf.mxu1 }
 0x54b   :  { %v4170_v8 = vrot.slane %v4118_v54, 3  ;;  %v4294_v54 = vmul.f32 %v4239_v48, %v4239_v48 }
 0x54d   :  { %v4203_v39 = vsel %vm1948_vm5, %v4169_v44, %v4170_v8  ;;  %4157 = vmatmul.bf16.gmra.mxu1 %v6875_v16  ;;  %v7828_v44 = vld [vmem:[#allocation20_spill] sm:$0xff] }
 0x54e   :  { %v7425_v30 = vadd.f32 %v4203_v39, %v7211_v22 }
 0x552   :  { %v4120_v37 = vpop.f32.mrf.mxu1 }
 0x553   :  { %v4171_v33 = vrot.slane %v4120_v37, 3 }
 0x555   :  { %v4202_v14 = vsel %vm1948_vm5, %v4170_v8, %v4171_v33  ;;  %v7829_v8 = vld [vmem:[#allocation18_spill] sm:$0xff] }
 0x556   :  { %v7430_v43 = vadd.f32 %v4202_v14, %v7221_v7  ;;  %v4241_v39 = vmul.f32 %v7414_v47, %v7829_v8 }
 0x55a   :  { %v4123_v56 = vpop.f32.mrf.mxu1 }
 0x55b   :  { %v4172_v3 = vrot.slane %v4123_v56, 3  ;;  %v7830_v56 = vld [vmem:[#allocation21_spill] sm:$0xff] }
 0x55d   :  { %v4201_v23 = vsel %vm1948_vm5, %v4171_v33, %v4172_v3 }
 0x55e   :  { %v7435_v40 = vadd.f32 %v4201_v23, %v7230_v45 }
 0x562   :  { %v4125_v16 = vpop.f32.mrf.mxu1 }
 0x563   :  { %v4173_v1 = vrot.slane %v4125_v16, 3 }
 0x565   :  { %v4200_v22 = vsel %vm1948_vm5, %v4172_v3, %v4173_v1  ;;  %v4242_v3 = vmul.f32 %v7419_v36, %v7830_v56 }
 0x566   :  { %v7440_v61 = vadd.f32 %v4200_v22, %v7240_v13  ;;  %v7831_v22 = vld [vmem:[#allocation19_spill] sm:$0xff] }
 0x56a   :  { %v4128_v26 = vpop.f32.mrf.mxu1 }
 0x56b   :  { %v4174_v46 = vrot.slane %v4128_v26, 3  ;;  %v4243_v26 = vmul.f32 %v7425_v30, %v7831_v22  ;;  %v7836_v22 = vld [vmem:[#allocation26_spill] sm:$0xff] }
 0x56d   :  { %v4199_v7 = vsel %vm1948_vm5, %v4173_v1, %v4174_v46  ;;  %v4296_v1 = vmul.f32 %v4241_v39, %v4241_v39 }
 0x56e   :  { %v7445_v32 = vadd.f32 %v4199_v7, %v7249_v12 }
 0x572   :  { %v4130_v50 = vpop.f32.mrf.mxu1 }
 0x573   :  { %v4175_v2 = vrot.slane %v4130_v50, 3 }
 0x575   :  { %v4198_v45 = vsel %vm1948_vm5, %v4174_v46, %v4175_v2 }
 0x576   :  { %v7450_v18 = vadd.f32 %v4198_v45, %v7259_v27  ;;  %v4237_v27 = vmul.f32 %v7392_v55, %v7826_v15  ;;  %v7832_v45 = vld [vmem:[#allocation22_spill] sm:$0xff]  ;;  %v7833_v15 = vld [vmem:[#allocation24_spill] sm:$0xff] }
 0x578   :  { %v4292_v5 = vmul.f32 %v4237_v27, %v4237_v27  ;;  %v4262_v37 = vadd.f32 %v4238_v28, %v4237_v27  ;;  %v4298_v28 = vmul.f32 %v4243_v26, %v4243_v26  ;;  %v4245_v27 = vmul.f32 %v7435_v40, %v7833_v15 }
 0x57a   :  { %v4133_v25 = vpop.f32.mrf.mxu1  ;;  %v4317_v33 = vadd.f32 %v4293_v57, %v4292_v5  ;;  %v4263_v23 = vadd.f32 %v4262_v37, %v4239_v48  ;;  %v7834_v5 = vld [vmem:[#allocation23_spill] sm:$0xff] }
 0x57b   :  { %v4176_v0 = vrot.slane %v4133_v25, 3  ;;  %v4244_v25 = vmul.f32 %v7430_v43, %v7832_v45 }
 0x57c   :  { %v4318_v16 = vadd.f32 %v4317_v33, %v4294_v54  ;;  %v4246_v54 = vmul.f32 %v7440_v61, %v7834_v5  ;;  %v4300_v33 = vmul.f32 %v4245_v27, %v4245_v27 }
 0x57d   :  { %v4197_v13 = vsel %vm1948_vm5, %v4175_v2, %v4176_v0  ;;  %v4297_v2 = vmul.f32 %v4242_v3, %v4242_v3 }
 0x57e   :  { %v7455_v34 = vadd.f32 %v4197_v13, %v7268_v21  ;;  %v4240_v21 = vmul.f32 %v7408_v24, %v7828_v44  ;;  %v4299_v44 = vmul.f32 %v4244_v25, %v4244_v25 }
 0x580   :  { %v4295_v14 = vmul.f32 %v4240_v21, %v4240_v21  ;;  %v4264_v46 = vadd.f32 %v4263_v23, %v4240_v21 }
 0x582   :  { %v4135_v29 = vpop.f32.mrf.mxu1  ;;  %v4319_v50 = vadd.f32 %v4318_v16, %v4295_v14  ;;  %v4265_v13 = vadd.f32 %v4264_v46, %v4241_v39  ;;  %v7835_v39 = vld [vmem:[#allocation25_spill] sm:$0xff]  ;;  %v4248_v46 = vmul.f32 %v7450_v18, %v7836_v22 }
 0x583   :  { %v4177_v42 = vrot.slane %v4135_v29, 3  ;;  %v4247_v56 = vmul.f32 %v7445_v32, %v7835_v39 }
 0x584   :  { %v4320_v4 = vadd.f32 %v4319_v50, %v4296_v1  ;;  %v4266_v48 = vadd.f32 %v4265_v13, %v4242_v3  ;;  %v4301_v3 = vmul.f32 %v4246_v54, %v4246_v54  ;;  %v7837_v13 = vld [vmem:[#allocation27_spill] sm:$0xff] }
 0x585   :  { %v4196_v14 = vsel %vm1948_vm5, %v4176_v0, %v4177_v42  ;;  %v4302_v45 = vmul.f32 %v4247_v56, %v4247_v56 }
 0x586   :  { %v4321_v57 = vadd.f32 %v4320_v4, %v4297_v2  ;;  %v4267_v8 = vadd.f32 %v4266_v48, %v4243_v26  ;;  %v7488_v50 = vadd.f32 %v4196_v14, %v7278_v20  ;;  %v4303_v48 = vmul.f32 %v4248_v46, %v4248_v46 }
 0x588   :  { %v4322_v37 = vadd.f32 %v4321_v57, %v4298_v28  ;;  %v4268_v1 = vadd.f32 %v4267_v8, %v4244_v25 }
 0x58a   :  { %v4138_v6 = vpop.f32.mrf.mxu1  ;;  %v4323_v29 = vadd.f32 %v4322_v37, %v4299_v44  ;;  %v4269_v0 = vadd.f32 %v4268_v1, %v4245_v27  ;;  %v7839_v37 = vld [vmem:[#allocation30_spill] sm:$0xff] }
 0x58b   :  { %v4178_v21 = vrot.slane %v4138_v6, 3 }
 0x58c   :  { %v4324_v2 = vadd.f32 %v4323_v29, %v4300_v33  ;;  %v4270_v28 = vadd.f32 %v4269_v0, %v4246_v54 }
 0x58d   :  { %v4195_v6 = vsel %vm1948_vm5, %v4177_v42, %v4178_v21  ;;  %v7838_v42 = vld [vmem:[#allocation28_spill] sm:$0xff] }
 0x58e   :  { %v4325_v15 = vadd.f32 %v4324_v2, %v4301_v3  ;;  %v7499_v20 = vadd.f32 %v4195_v6, %v7287_v60  ;;  %v4271_v44 = vadd.f32 %v4270_v28, %v4247_v56  ;;  %v7840_v56 = vld [vmem:[#allocation29_spill] sm:$0xff] }
 0x590   :  { %v4251_v33 = vmul.f32 %v7499_v20, %v7839_v37  ;;  %v4272_v39 = vadd.f32 %v4271_v44, %v4248_v46 }
 0x592   :  { %v4140_v12 = vpop.f32.mrf.mxu1 }
 0x593   :  { %v4179_v23 = vrot.slane %v4140_v12, 3  ;;  %v4249_v12 = vmul.f32 %v7455_v34, %v7837_v13 }
 0x595   :  { %v4194_v25 = vsel %vm1948_vm5, %v4178_v21, %v4179_v23  ;;  %v4326_v21 = vadd.f32 %v4325_v15, %v4302_v45  ;;  %v4304_v8 = vmul.f32 %v4249_v12, %v4249_v12  ;;  %v4273_v3 = vadd.f32 %v4272_v39, %v4249_v12 }
 0x596   :  { %v7506_v5 = vadd.f32 %v4194_v25, %v7297_v10  ;;  %v7842_v25 = vld [vmem:[#allocation33_spill] sm:$0xff] }
 0x598   :  { %v4252_v1 = vmul.f32 %v7506_v5, %v7840_v56 }
 0x59a   :  { %v7457_v51 = vpop.f32.mrf.mxu1  ;;  %v4307_v13 = vmul.f32 %v4252_v1, %v4252_v1 }
 0x59b   :  { %v4180_v26 = vrot.slane %v7457_v51, 3  ;;  %v4250_v51 = vmul.f32 %v7488_v50, %v7838_v42 }
 0x59d   :  { %v4193_v27 = vsel %vm1948_vm5, %v4179_v23, %v4180_v26  ;;  %v4327_v23 = vadd.f32 %v4326_v21, %v4303_v48  ;;  %v4274_v2 = vadd.f32 %v4273_v3, %v4250_v51  ;;  %v7846_v3 = vld [vmem:[#allocation34_spill] sm:$0xff] }
 0x59e   :  { %v7513_v14 = vadd.f32 %v4193_v27, %v7306_v11  ;;  %v4306_v11 = vmul.f32 %v4251_v33, %v4251_v33  ;;  %v7843_v27 = vld [vmem:[#allocation31_spill] sm:$0xff] }
 0x59f   :  { %v4328_v22 = vadd.f32 %v4327_v23, %v4304_v8  ;;  %v4275_v28 = vadd.f32 %v4274_v2, %v4251_v33 }
 0x5a2   :  { %v7465_v53 = vpop.f32.mrf.mxu1 }
 0x5a3   :  { %v4181_v4 = vrot.slane %v7465_v53, 3 }
 0x5a5   :  { %v4192_v53 = vsel %vm1948_vm5, %v4180_v26, %v4181_v4  ;;  %v7841_v26 = vld [vmem:[#allocation32_spill] sm:$0xff] }
 0x5a6   :  { %v7520_v29 = vadd.f32 %v4192_v53, %v7316_v41  ;;  %v4253_v46 = vmul.f32 %v7513_v14, %v7841_v26  ;;  %v7844_v53 = vld [vmem:[#allocation35_spill] sm:$0xff] }
 0x5a8   :  { %v4254_v41 = vmul.f32 %v7520_v29, %v7842_v25  ;;  %v4308_v42 = vmul.f32 %v4253_v46, %v4253_v46 }
 0x5aa   :  { %v4148_v7 = vpop.f32.mrf.mxu1  ;;  %v4309_v8 = vmul.f32 %v4254_v41, %v4254_v41 }
 0x5ab   :  { %v4182_v57 = vrot.slane %v4148_v7, 3  ;;  %v4305_v7 = vmul.f32 %v4250_v51, %v4250_v51  ;;  %v4276_v51 = vadd.f32 %v4275_v28, %v4252_v1 }
 0x5ad   :  { %v4191_v10 = vsel %vm1948_vm5, %v4181_v4, %v4182_v57  ;;  %v4329_v45 = vadd.f32 %v4328_v22, %v4305_v7  ;;  %v7845_v7 = vld [vmem:[#allocation36_spill] sm:$0xff] }
 0x5ae   :  { %v7527_v0 = vadd.f32 %v4191_v10, %v7325_v9 }
 0x5af   :  { %v4330_v48 = vadd.f32 %v4329_v45, %v4306_v11 }
 0x5b0   :  { %v4255_v9 = vmul.f32 %v7527_v0, %v7843_v27  ;;  %v7848_v27 = vld [vmem:[#allocation39_spill] sm:$0xff] }
 0x5b1   :  { %v4331_v21 = vadd.f32 %v4330_v48, %v4307_v13  ;;  %v7847_v48 = vld [vmem:[#allocation38_spill] sm:$0xff] }
 0x5b2   :  { %v4150_v16 = vpop.f32.mrf.mxu1  ;;  %v4310_v39 = vmul.f32 %v4255_v9, %v4255_v9 }
 0x5b3   :  { %v4183_v54 = vrot.slane %v4150_v16, 3  ;;  %v4332_v33 = vadd.f32 %v4331_v21, %v4308_v42 }
 0x5b5   :  { %v4190_v6 = vsel %vm1948_vm5, %v4182_v57, %v4183_v54 }
 0x5b6   :  { %v7532_v4 = vadd.f32 %v4190_v6, %v7335_v38 }
 0x5b8   :  { %v4256_v38 = vmul.f32 %v7532_v4, %v7844_v53 }
 0x5ba   :  { %v4153_v60 = vpop.f32.mrf.mxu1  ;;  %v4311_v56 = vmul.f32 %v4256_v38, %v4256_v38 }
 0x5bb   :  { %v4184_v16 = vrot.slane %v4153_v60, 3  ;;  %v4277_v60 = vadd.f32 %v4276_v51, %v4253_v46  ;;  %v7849_v51 = vld [vmem:[#allocation37_spill] sm:$0xff] }
 0x5bd   :  { %v4189_v12 = vsel %vm1948_vm5, %v4183_v54, %v4184_v16  ;;  %v4278_v23 = vadd.f32 %v4277_v60, %v4254_v41 }
 0x5be   :  { %v7539_v44 = vadd.f32 %v4189_v12, %v7344_v52  ;;  %v4333_v52 = vadd.f32 %v4332_v33, %v4309_v8 }
 0x5bf   :  { %v4279_v1 = vadd.f32 %v4278_v23, %v4255_v9 }
 0x5c0   :  { %v4257_v10 = vmul.f32 %v7539_v44, %v7845_v7  ;;  %v4334_v11 = vadd.f32 %v4333_v52, %v4310_v39 }
 0x5c2   :  { %v4155_v15 = vpop.f32.mrf.mxu1  ;;  %v4312_v46 = vmul.f32 %v4257_v10, %v4257_v10  ;;  %v4335_v2 = vadd.f32 %v4334_v11, %v4311_v56 }
 0x5c3   :  { %v4185_v57 = vrot.slane %v4155_v15, 3 }
 0x5c4   :  { %v4336_v28 = vadd.f32 %v4335_v2, %v4312_v46 }
 0x5c5   :  { %v4188_v54 = vsel %vm1948_vm5, %v4184_v16, %v4185_v57  ;;  %v4280_v16 = vadd.f32 %v4279_v1, %v4256_v38 }
 0x5c6   :  { %v7546_v37 = vadd.f32 %v4188_v54, %v7358_v63 }
 0x5c7   :  { %v4281_v13 = vadd.f32 %v4280_v16, %v4257_v10 }
 0x5c8   :  { %v4258_v22 = vmul.f32 %v7546_v37, %v7846_v3 }
 0x5ca   :  { %v4158_v6 = vpop.f32.mrf.mxu1  ;;  %v4313_v25 = vmul.f32 %v4258_v22, %v4258_v22  ;;  %v4282_v15 = vadd.f32 %v4281_v13, %v4258_v22 }
 0x5cb   :  { %v4186_v26 = vrot.slane %v4158_v6, 3 }
 0x5cc   :  { %v4337_v21 = vadd.f32 %v4336_v28, %v4313_v25 }
 0x5cd   :  { %v4187_v63 = vsel %vm1948_vm5, %v4185_v57, %v4186_v26  ;;  %v4211_v45 = vsel %vm1948_vm5, %v4186_v26, %v4162_v17  ;;  %v4261_v57 = vmul.f32 %v7386_v19, %v7849_v51  ;;  %v4364_v51 = vld [vmem:[%s7696_s7] sm:$0x1] }
 0x5ce   :  { %v4234_v41 = vadd.f32 %v4187_v63, %v7373_v58  ;;  %v4235_v12 = vadd.f32 %v4211_v45, %v7376_v49 }
 0x5cf   :  { %v4316_v54 = vmul.f32 %v4261_v57, %v4261_v57 }
 0x5d0   :  { %v4259_v42 = vmul.f32 %v4234_v41, %v7847_v48  ;;  %v4260_v9 = vmul.f32 %v4235_v12, %v7848_v27 }
 0x5d2   :  { %v4283_v31 = vadd.f32 %v4282_v15, %v4259_v42  ;;  %v4314_v8 = vmul.f32 %v4259_v42, %v4259_v42  ;;  %v4160_v35 = vpop.f32.mrf.mxu1  ;;  %v4315_v53 = vmul.f32 %v4260_v9, %v4260_v9  ;;  %v4362_v42 = vld [vmem:[%s7695_s6] sm:$0x1] }
 0x5d4   :  { %v4284_v17 = vadd.f32 %v4283_v31, %v4260_v9  ;;  %v4338_v38 = vadd.f32 %v4337_v21, %v4314_v8 }
 0x5d6   :  { %v4285_v58 = vadd.f32 %v4284_v17, %v4261_v57  ;;  %v4339_v60 = vadd.f32 %v4338_v38, %v4315_v53 }
 0x5d8   :  { %v4286_v49 = vrot.slane %v4285_v58, 4  ;;  %v4340_v33 = vadd.f32 %v4339_v60, %v4316_v54 }
 0x5da   :  { %v4287_v39 = vadd.f32 %v4286_v49, %v4285_v58  ;;  %v4341_v23 = vrot.slane %v4340_v33, 4 }
 0x5dc   :  { %v4288_v7 = vrot.slane %v4287_v39, 2  ;;  %v4342_v10 = vadd.f32 %v4341_v23, %v4340_v33 }
 0x5de   :  { %v4289_v52 = vadd.f32 %v4288_v7, %v4287_v39  ;;  %v4343_v56 = vrot.slane %v4342_v10, 2 }
 0x5e0   :  { %v4290_v1 = vrot.slane %v4289_v52, 1  ;;  %v4344_v3 = vadd.f32 %v4343_v56, %v4342_v10 }
 0x5e2   :  { %v4291_v22 = vadd.f32 %v4290_v1, %v4289_v52  ;;  %v4345_v6 = vrot.slane %v4344_v3, 1 }
 0x5e4   :  { %v4346_v11 = vadd.f32 %v4345_v6, %v4344_v3  ;;  %v4347_v26 = vmul.f32 0.0078125, %v4291_v22 }
 0x5e6   :  { %v4348_v16 = vmul.f32 0.0078125, %v4346_v11  ;;  %v4349_v46 = vmul.f32 %v4347_v26, %v4347_v26 }
 0x5e8   :  { %v4350_v2 = vsub.f32 %v4348_v16, %v4349_v46 }
 0x5ea   :  { %v4351_v63 = vadd.f32 1e-05, %v4350_v2 }
 0x5ec   :  { %5265 = vrsqrt.f32 %v4351_v63  ;;  %vm4358_vm10 = vweird.f32 %v4351_v63 }
 0x5f2   :  { %v5266_v45 = vpop.eup %5265 }
 0x5f3   :  { %v4353_v13 = vmul.f32 %v5266_v45, %v4351_v63  ;;  %vm4359_vm9 = vweird.f32 %v5266_v45 }
 0x5f4   :  { %vm4360_vm11 = vmor %vm4358_vm10, %vm4359_vm9 }
 0x5f5   :  { %v4354_v25 = vmul.f32 %v5266_v45, %v4353_v13 }
 0x5f7   :  { %v4355_v28 = vmul.f32 0.5, %v4354_v25 }
 0x5f9   :  { %v4356_v15 = vsub.f32 1.5, %v4355_v28 }
 0x5fb   :  { %v4357_v48 = vmul.f32 %v5266_v45, %v4356_v15 }
 0x5fd   :  { %v4361_v27 = vsel %vm4360_vm11, %v5266_v45, %v4357_v48 }
 0x5fe   :  { %v4363_v9 = vmul.f32 %v4362_v42, %v4361_v27  ;;  %v5269_v42 = vld [vmem:[%s7689_s0] sm:$0xff] }
 0x600   :  { %v4365_v57 = vmul.f32 %v4363_v9, %v4347_v26  ;;  %v4367_v21 = vperm.slane %v4363_v9, 0  ;;  %v5270_v9 = vld [vmem:[%s7689_s0 + $0x8] sm:$0xff] }
 0x602   :  { %v4366_v31 = vsub.f32 %v4364_v51, %v4365_v57  ;;  %v4390_v8 = vmul.f32 %v4367_v21, %v4234_v41  ;;  %v4391_v35 = vmul.f32 %v4367_v21, %v4235_v12  ;;  %v4368_v17 = vmul.f32 %v4367_v21, %v7392_v55  ;;  %v5271_v57 = vld [vmem:[%s7689_s0 + $0x10] sm:$0xff] }
 0x603   :  { %v4369_v53 = vmul.f32 %v4367_v21, %v7397_v59  ;;  %v4370_v38 = vmul.f32 %v4367_v21, %v7403_v62  ;;  %v4371_v54 = vmul.f32 %v4367_v21, %v7408_v24  ;;  %v4372_v58 = vmul.f32 %v4367_v21, %v7414_v47 }
 0x604   :  { %v4394_v60 = vperm.slane %v4366_v31, 0  ;;  %v4373_v49 = vmul.f32 %v4367_v21, %v7419_v36  ;;  %v4374_v33 = vmul.f32 %v4367_v21, %v7425_v30  ;;  %v4375_v39 = vmul.f32 %v4367_v21, %v7430_v43  ;;  %v5272_v31 = vld [vmem:[%s7689_s0 + $0x18] sm:$0xff] }
 0x605   :  { %v4376_v41 = vmul.f32 %v4367_v21, %v7435_v40  ;;  %v4377_v12 = vmul.f32 %v4367_v21, %v7440_v61  ;;  %v4378_v55 = vmul.f32 %v4367_v21, %v7445_v32  ;;  %v4379_v59 = vmul.f32 %v4367_v21, %v7450_v18  ;;  %v5267_v61 = vld [vmem:[%s7689_s0 + $0xb0] sm:$0xff]  ;;  %v5268_v18 = vld [vmem:[%s7689_s0 + $0xb8] sm:$0xff] }
 0x606   :  { %v4418_v62 = vadd.f32 %v4394_v60, %v4390_v8  ;;  %v4419_v23 = vadd.f32 %v4394_v60, %v4391_v35  ;;  %v4380_v24 = vmul.f32 %v4367_v21, %v7455_v34  ;;  %v4381_v47 = vmul.f32 %v4367_v21, %v7488_v50  ;;  %v5273_v35 = vld [vmem:[%s7689_s0 + $0x20] sm:$0xff] }
 0x607   :  { %v4382_v36 = vmul.f32 %v4367_v21, %v7499_v20  ;;  %v4383_v30 = vmul.f32 %v4367_v21, %v7506_v5  ;;  %v4384_v43 = vmul.f32 %v4367_v21, %v7513_v14  ;;  %v4385_v40 = vmul.f32 %v4367_v21, %v7520_v29 }
 0x608   :  { %v4443_v32 = vadd.f32 %v5267_v61, %v4418_v62  ;;  %v4444_v34 = vadd.f32 %v5268_v18, %v4419_v23  ;;  %v4386_v50 = vmul.f32 %v4367_v21, %v7527_v0  ;;  %v4387_v20 = vmul.f32 %v4367_v21, %v7532_v4  ;;  %v5278_v23 = vld [vmem:[%s7689_s0 + $0x48] sm:$0xff]  ;;  %v5281_v18 = vld [vmem:[%s7689_s0 + $0x60] sm:$0xff] }
 0x609   :  { %v4388_v5 = vmul.f32 %v4367_v21, %v7539_v44  ;;  %v4389_v14 = vmul.f32 %v4367_v21, %v7546_v37  ;;  %v4392_v29 = vmul.f32 %v4367_v21, %v7386_v19  ;;  %v4396_v7 = vadd.f32 %v4394_v60, %v4368_v17 }
 0x60a   :  { %v4468_v10 = vmax.f32 %v4443_v32, 0.0  ;;  %v4469_v52 = vmax.f32 %v4444_v34, 0.0  ;;  %v4397_v56 = vadd.f32 %v4394_v60, %v4369_v53  ;;  %v4398_v1 = vadd.f32 %v4394_v60, %v4370_v38  ;;  %v5274_v53 = vld [vmem:[%s7689_s0 + $0x28] sm:$0xff] }
 0x60b   :  { %v4399_v3 = vadd.f32 %v4394_v60, %v4371_v54  ;;  %v4400_v22 = vadd.f32 %v4394_v60, %v4372_v58  ;;  %v4401_v6 = vadd.f32 %v4394_v60, %v4373_v49  ;;  %v4402_v11 = vadd.f32 %v4394_v60, %v4374_v33  ;;  %v5275_v54 = vld [vmem:[%s7689_s0 + $0x30] sm:$0xff]  ;;  %v5276_v49 = vld [vmem:[%s7689_s0 + $0x38] sm:$0xff] }
 0x60c   :  { %4493 = vst [vmem:[#allocation7 + $0xb0] sm:$0xff] %v4468_v10  ;;  %v4403_v26 = vadd.f32 %v4394_v60, %v4375_v39  ;;  %v4404_v0 = vadd.f32 %v4394_v60, %v4376_v41  ;;  %v4405_v16 = vadd.f32 %v4394_v60, %v4377_v12  ;;  %v4406_v4 = vadd.f32 %v4394_v60, %v4378_v55  ;;  %v5277_v55 = vld [vmem:[%s7689_s0 + $0x40] sm:$0xff] }
 0x60d   :  { %4494 = vst [vmem:[#allocation7 + $0xb8] sm:$0xff] %v4469_v52  ;;  %v4407_v44 = vadd.f32 %v4394_v60, %v4379_v59  ;;  %v4408_v46 = vadd.f32 %v4394_v60, %v4380_v24  ;;  %v4409_v37 = vadd.f32 %v4394_v60, %v4381_v47  ;;  %v4410_v2 = vadd.f32 %v4394_v60, %v4382_v36  ;;  %v5279_v36 = vld [vmem:[%s7689_s0 + $0x50] sm:$0xff]  ;;  %v5284_v52 = vld [vmem:[%s7689_s0 + $0x78] sm:$0xff] }
 0x60e   :  { %v4411_v19 = vadd.f32 %v4394_v60, %v4383_v30  ;;  %v4412_v63 = vadd.f32 %v4394_v60, %v4384_v43  ;;  %v7599_v45 = vadd.f32 %v4394_v60, %v4385_v40  ;;  %v7601_v13 = vadd.f32 %v4394_v60, %v4386_v50  ;;  %v5280_v40 = vld [vmem:[%s7689_s0 + $0x58] sm:$0xff] }
 0x60f   :  { %v7603_v25 = vadd.f32 %v4394_v60, %v4387_v20  ;;  %v7605_v28 = vadd.f32 %v4394_v60, %v4388_v5  ;;  %v7607_v15 = vadd.f32 %v4394_v60, %v4389_v14  ;;  %v7609_v48 = vadd.f32 %v4394_v60, %v4392_v29  ;;  %v5282_v20 = vld [vmem:[%s7689_s0 + $0x68] sm:$0xff]  ;;  %v5283_v29 = vld [vmem:[%s7689_s0 + $0x70] sm:$0xff] }
 0x610   :  { %v4421_v27 = vadd.f32 %v5269_v42, %v4396_v7  ;;  %v4422_v51 = vadd.f32 %v5270_v9, %v4397_v56  ;;  %v4423_v21 = vadd.f32 %v5271_v57, %v4398_v1  ;;  %v4424_v8 = vadd.f32 %v5272_v31, %v4399_v3  ;;  %v5285_v3 = vld [vmem:[%s7689_s0 + $0x80] sm:$0xff] }
 0x611   :  { %v4425_v17 = vadd.f32 %v5273_v35, %v4400_v22  ;;  %v4426_v38 = vadd.f32 %v5274_v53, %v4401_v6  ;;  %v4427_v58 = vadd.f32 %v5275_v54, %v4402_v11  ;;  %v4428_v33 = vadd.f32 %v5276_v49, %v4403_v26  ;;  %v5286_v11 = vld [vmem:[%s7689_s0 + $0x88] sm:$0xff] }
 0x612   :  { %v4446_v60 = vmax.f32 %v4421_v27, 0.0  ;;  %v4447_v39 = vmax.f32 %v4422_v51, 0.0  ;;  %v4448_v41 = vmax.f32 %v4423_v21, 0.0  ;;  %v4449_v12 = vmax.f32 %v4424_v8, 0.0 }
 0x613   :  { %v4429_v59 = vadd.f32 %v5277_v55, %v4404_v0  ;;  %v4450_v62 = vmax.f32 %v4425_v17, 0.0  ;;  %v4430_v24 = vadd.f32 %v5278_v23, %v4405_v16  ;;  %v4451_v47 = vmax.f32 %v4426_v38, 0.0  ;;  %v5287_v16 = vld [vmem:[%s7689_s0 + $0x90] sm:$0xff] }
 0x614   :  { %4471 = vst [vmem:[#allocation7] sm:$0xff] %v4446_v60  ;;  %v4431_v30 = vadd.f32 %v5279_v36, %v4406_v4  ;;  %v4452_v43 = vmax.f32 %v4427_v58, 0.0  ;;  %v4432_v61 = vadd.f32 %v5280_v40, %v4407_v44  ;;  %v4453_v32 = vmax.f32 %v4428_v33, 0.0 }
 0x615   :  { %4472 = vst [vmem:[#allocation7 + $0x8] sm:$0xff] %v4447_v39  ;;  %v4433_v34 = vadd.f32 %v5281_v18, %v4408_v46  ;;  %v4454_v50 = vmax.f32 %v4429_v59, 0.0  ;;  %v4434_v5 = vadd.f32 %v5282_v20, %v4409_v37  ;;  %v4455_v14 = vmax.f32 %v4430_v24, 0.0  ;;  %v5288_v46 = vld [vmem:[%s7689_s0 + $0x98] sm:$0xff] }
 0x616   :  { %4473 = vst [vmem:[#allocation7 + $0x10] sm:$0xff] %v4448_v41  ;;  %v4435_v7 = vadd.f32 %v5283_v29, %v4410_v2  ;;  %v4456_v10 = vmax.f32 %v4431_v30, 0.0  ;;  %v4436_v56 = vadd.f32 %v5284_v52, %v4411_v19  ;;  %v4457_v1 = vmax.f32 %v4432_v61, 0.0  ;;  %v5289_v19 = vld [vmem:[%s7689_s0 + $0xa0] sm:$0xff] }
 0x617   :  { %4474 = vst [vmem:[#allocation7 + $0x18] sm:$0xff] %v4449_v12  ;;  %v4437_v22 = vadd.f32 %v5285_v3, %v4412_v63  ;;  %v4458_v6 = vmax.f32 %v4433_v34, 0.0  ;;  %v4438_v26 = vadd.f32 %v5286_v11, %v7599_v45  ;;  %v4459_v0 = vmax.f32 %v4434_v5, 0.0 }
 0x618   :  { %4475 = vst [vmem:[#allocation7 + $0x20] sm:$0xff] %v4450_v62  ;;  %v4439_v4 = vadd.f32 %v5287_v16, %v7601_v13  ;;  %v4460_v44 = vmax.f32 %v4435_v7, 0.0  ;;  %v4440_v37 = vadd.f32 %v5288_v46, %v7603_v25  ;;  %v4461_v2 = vmax.f32 %v4436_v56, 0.0  ;;  %v5290_v13 = vld [vmem:[%s7689_s0 + $0xa8] sm:$0xff]  ;;  %v5291_v25 = vld [vmem:[%s7689_s0 + $0xc0] sm:$0xff]  ;;  %s5376_s0 = smov 128  }
 0x619   :  { %4476 = vst [vmem:[#allocation7 + $0x28] sm:$0xff] %v4451_v47  ;;  %v4441_v63 = vadd.f32 %v5289_v19, %v7605_v28  ;;  %v4462_v45 = vmax.f32 %v4437_v22, 0.0  ;;  %v4442_v42 = vadd.f32 %v5290_v13, %v7607_v15  ;;  %v4463_v27 = vmax.f32 %v4438_v26, 0.0 }
 0x61a   :  { %4477 = vst [vmem:[#allocation7 + $0x30] sm:$0xff] %v4452_v43  ;;  %v4445_v9 = vadd.f32 %v5291_v25, %v7609_v48  ;;  %v4464_v51 = vmax.f32 %v4439_v4, 0.0  ;;  %v4465_v57 = vmax.f32 %v4440_v37, 0.0 }
 0x61b   :  { %4478 = vst [vmem:[#allocation7 + $0x38] sm:$0xff] %v4453_v32  ;;  %v4466_v28 = vmax.f32 %v4441_v63, 0.0  ;;  %v4467_v15 = vmax.f32 %v4442_v42, 0.0 }
 0x61c   :  { %4479 = vst [vmem:[#allocation7 + $0x40] sm:$0xff] %v4454_v50  ;;  %v4470_v21 = vmax.f32 %v4445_v9, 0.0 }
 0x61d   :  { %4480 = vst [vmem:[#allocation7 + $0x48] sm:$0xff] %v4455_v14 }
 0x61e   :  { %4481 = vst [vmem:[#allocation7 + $0x50] sm:$0xff] %v4456_v10 }
 0x61f   :  { %4482 = vst [vmem:[#allocation7 + $0x58] sm:$0xff] %v4457_v1 }
 0x620   :  { %4483 = vst [vmem:[#allocation7 + $0x60] sm:$0xff] %v4458_v6 }
 0x621   :  { %4484 = vst [vmem:[#allocation7 + $0x68] sm:$0xff] %v4459_v0 }
 0x622   :  { %4485 = vst [vmem:[#allocation7 + $0x70] sm:$0xff] %v4460_v44 }
 0x623   :  { %4486 = vst [vmem:[#allocation7 + $0x78] sm:$0xff] %v4461_v2 }
 0x624   :  { %4487 = vst [vmem:[#allocation7 + $0x80] sm:$0xff] %v4462_v45 }
 0x625   :  { %4488 = vst [vmem:[#allocation7 + $0x88] sm:$0xff] %v4463_v27 }
 0x626   :  { %4489 = vst [vmem:[#allocation7 + $0x90] sm:$0xff] %v4464_v51 }
 0x627   :  { %4490 = vst [vmem:[#allocation7 + $0x98] sm:$0xff] %v4465_v57 }
 0x628   :  { %4491 = vst [vmem:[#allocation7 + $0xa0] sm:$0xff] %v4466_v28 }
 0x629   :  { %4492 = vst [vmem:[#allocation7 + $0xa8] sm:$0xff] %v4467_v15 }
 0x62a   :  { %4495 = vst [vmem:[#allocation7 + $0xc0] sm:$0xff] %v4470_v21 }
 0x62b   :  { %4508 = dma.vmem_to_hbm [thread:$0]  %s4501_s19, 3200, %s4503_s4, [#allocation4], %s5376_s0, %s5376_s0, %s5377_s5  }
 0x62c   :  { %5368 = dma.done.wait [#allocation4], 3200  }
 0x62d   :  { %5369 = vsyncadd [#allocation4], 4294964096 }
 0x62e   :  { %4513 = vsyncpa [#allocation3], 1 }
 0x62f   :  { %4514 = vsyncpa [#allocation6], 1 }
 0x630   :  { %4515 = vsyncpa [#allocation4], 1 }

</bundles_post_ra>
